<compile_context>
chip_gen: v5e
topology: v5e:2x2
jax: 0.10.0
libtpu: 0.0.40
codegen_flags: <defaults>
</compile_context>

<pallas_src>
import functools

import jax
import jax.numpy as jnp
import numpy as np
from jax import lax
from jax.experimental import pallas as pl
from jax.experimental.pallas import tpu as pltpu


# -----------------------------------------------------------------------------
# In-kernel helpers (all values stay VMEM-resident)
# -----------------------------------------------------------------------------
def _pad_hw(a, pad, value):
    """Pad an (H, W, C) value on both spatial dims with `value`."""
    H, W, C = a.shape
    r = jnp.full((pad, W, C), value, a.dtype)
    a = jnp.concatenate([r, a, r], axis=0)
    c = jnp.full((H + 2 * pad, pad, C), value, a.dtype)
    return jnp.concatenate([c, a, c], axis=1)


def _conv_same(t_f32, w_ref, k, H, W, cin_b, cout_b):
    """'same' kxk conv as: concat k dy-shifted slabs (leading-dim slices) along
    channels, then accumulate k matmuls over dx against (k*cin_b, cout_b)
    weight slabs. Weight rows are packed in (dx, dy, ci) order.
    Returns the f32 pre-activation (rows, cout_b)."""
    rows = H * W
    pad = k // 2
    tp = _pad_hw(t_f32.astype(jnp.bfloat16), pad, 0.0)        # (H+2p, W+2p, cin_b)
    # dy-shifted slabs: leading-dim slices, concatenated along channels.
    slabs = jnp.concatenate([tp[dy:dy + H] for dy in range(k)], axis=-1)
    kc = k * cin_b
    acc = None
    for dx in range(k):
        p = slabs[:, dx:dx + W, :].reshape(rows, kc)           # (rows, k*cin_b)
        part = jnp.dot(p, w_ref[dx * kc:(dx + 1) * kc, :],
                       preferred_element_type=jnp.float32)
        acc = part if acc is None else acc + part
    return acc


# -----------------------------------------------------------------------------
# Fused Inception-A kernel (one grid step = one batch element)
# -----------------------------------------------------------------------------
def _inception_kernel(x_ref,
                      wh_ref, bih_ref,
                      w2_ref, bi2_ref,
                      w3_ref, bi3_ref,
                      w4_ref, bi4_ref,
                      o_ref, *, H, W, cin, bo):
    """x_ref : (1, H, W, cin) bf16, unpadded NHWC tile.
    wh  : (cin, 2*bo + bo//2)  fused [b1 | b2a | b3a] 1x1 weights, BN scale folded (bf16)
    w2  : (9*bo, bo)           3x3 weights, rows in (dx, dy, ci) order, scale folded (bf16)
    w3  : (25*(bo//2), bo)     5x5 weights, same packing (bf16)
    w4  : (cin, bo)            pool-branch 1x1 weights, scale folded (bf16)
    bi* : (1, C) f32           folded BN/conv bias
    o_ref: (1, H, W, 4*bo)
    """
    c5 = bo // 2
    rows = H * W
    f32 = jnp.float32

    xc = x_ref[0]                                               # (H, W, cin) bf16
    x2d = xc.reshape(rows, cin)

    # ---- fused 1x1 heads: [branch1x1 | branch3x3.1x1 | branch5x5.1x1] -------
    # BN scale already folded into wh -> epilogue is bias-add + ReLU only.
    heads = jnp.dot(x2d, wh_ref[...], preferred_element_type=f32)   # (rows, 80)
    heads = jnp.maximum(heads + bih_ref[...], 0.0)
    b1 = heads[:, 0:bo]                         # branch 1 is already final
    t2 = heads[:, bo:2 * bo]                    # (rows, bo)   -> 3x3 branch
    t3 = heads[:, 2 * bo:2 * bo + c5]           # (rows, bo/2) -> 5x5 branch

    # ---- branch 2: 3x3 conv (pad 1): 3 dy-slabs, 3 dx matmuls ---------------
    b2 = _conv_same(t2.reshape(H, W, bo), w2_ref, 3, H, W, bo, bo)
    b2 = jnp.maximum(b2 + bi2_ref[...], 0.0)

    # ---- branch 3: 5x5 conv (pad 2): 5 dy-slabs, 5 dx matmuls ---------------
    b3 = _conv_same(t3.reshape(H, W, c5), w3_ref, 5, H, W, c5, bo)
    b3 = jnp.maximum(b3 + bi3_ref[...], 0.0)

    # ---- branch 4: separable 3x3/s1/p1 max-pool (-inf pad, max-only) + 1x1 --
    # NOTE: the -inf halo is only ever consumed by jnp.maximum; nothing may
    # multiply or matmul it.
    xp = _pad_hw(xc, 1, -jnp.inf)                               # (H+2, W+2, cin)
    v = jnp.maximum(jnp.maximum(xp[0:H], xp[1:H + 1]), xp[2:H + 2])
    pooled = jnp.maximum(jnp.maximum(v[:, 0:W], v[:, 1:W + 1]), v[:, 2:W + 2])
    b4 = jnp.dot(pooled.reshape(rows, cin), w4_ref[...],
                 preferred_element_type=f32)
    b4 = jnp.maximum(b4 + bi4_ref[...], 0.0)

    # ---- lane-dense channel concat -> single full-width (128-lane) store ----
    out = jnp.concatenate([b1, b2, b3, b4], axis=-1)            # (rows, 4*bo)
    o_ref[...] = out.reshape(1, H, W, 4 * bo).astype(o_ref.dtype)


# -----------------------------------------------------------------------------
# Wrapper: one pallas_call for the whole block
# -----------------------------------------------------------------------------
def _full_spec(arr):
    return pl.BlockSpec(arr.shape, lambda b, _nd=arr.ndim: (0,) * _nd)


def inception_block_a(x_nchw, packed, out_dtype=jnp.float32):
    B, cin, H, W = x_nchw.shape
    bo = packed["w4"].shape[-1]
    cout = 4 * bo

    # Single fused XLA transpose+cast of the tiny input; no pre-pad (the halo
    # is built in-kernel). The output transpose is kept only to match the
    # module's NCHW interface while the kernel stores lane-dense NHWC.
    x = jnp.transpose(x_nchw, (0, 2, 3, 1)).astype(jnp.bfloat16)  # NHWC bf16

    kernel = functools.partial(_inception_kernel, H=H, W=W, cin=cin, bo=bo)
    weights = [packed[k] for k in ("wh", "bih", "w2", "bi2",
                                   "w3", "bi3", "w4", "bi4")]

    out_nhwc = pl.pallas_call(
        kernel,
        out_shape=jax.ShapeDtypeStruct((B, H, W, cout), out_dtype),
        grid_spec=pltpu.PrefetchScalarGridSpec(
            num_scalar_prefetch=0,
            grid=(B,),
            in_specs=[pl.BlockSpec((1, H, W, cin), lambda b: (b, 0, 0, 0))]
                     + [_full_spec(w) for w in weights],
            out_specs=pl.BlockSpec((1, H, W, cout), lambda b: (b, 0, 0, 0)),
        ),
        compiler_params=pltpu.CompilerParams(
            dimension_semantics=("parallel",),           # v7x: one image per TC
            vmem_limit_bytes=32 * 1024 * 1024,           # safe on v5e/v6e/v7x
        ),
    )(x, *weights)
    return jnp.transpose(out_nhwc, (0, 3, 1, 2))                # NHWC -> NCHW


# -----------------------------------------------------------------------------
# Parameter construction (deterministic, synthetic) + BN folding / packing
# -----------------------------------------------------------------------------
def init_conv_bn(key, cin, cout, k):
    k1, k2, k3, k4, k5, k6 = jax.random.split(key, 6)
    w = 0.1 * jax.random.normal(k1, (cout, cin, k, k), jnp.float32)   # OIHW
    b = 0.1 * jax.random.normal(k2, (cout,), jnp.float32)             # conv bias
    gamma = 1.0 + 0.1 * jax.random.normal(k3, (cout,), jnp.float32)
    beta = 0.1 * jax.random.normal(k4, (cout,), jnp.float32)
    mean = 0.1 * jax.random.normal(k5, (cout,), jnp.float32)
    var = jnp.abs(jax.random.normal(k6, (cout,), jnp.float32)) + 0.5
    return dict(w=w, b=b, gamma=gamma, beta=beta, mean=mean, var=var)


def init_inception_block_a(key, in_channels, out_channels=128):
    assert out_channels % 4 == 0
    bo = out_channels // 4
    keys = jax.random.split(key, 6)
    return {
        "b1": init_conv_bn(keys[0], in_channels, bo, 1),
        "b2a": init_conv_bn(keys[1], in_channels, bo, 1),
        "b2b": init_conv_bn(keys[2], bo, bo, 3),
        "b3a": init_conv_bn(keys[3], in_channels, bo // 2, 1),
        "b3b": init_conv_bn(keys[4], bo // 2, bo, 5),
        "b4": init_conv_bn(keys[5], in_channels, bo, 1),
    }


def fold_and_pack(params, eps=1e-5):
    """Fold conv bias + BN (eval mode) into bias, fold the BN scale into the
    weights (f32 multiply, then bf16 cast), and repack for the kernel."""
    def fold(p):
        scale = p["gamma"] / jnp.sqrt(p["var"] + eps)
        bias = (p["b"] - p["mean"]) * scale + p["beta"]
        return scale, bias

    def w_1x1(p, scale):                 # (cout, cin, 1, 1) -> (cin, cout)
        cout, cin = p["w"].shape[0], p["w"].shape[1]
        w = p["w"].reshape(cout, cin) * scale[:, None]
        return w.T.astype(jnp.bfloat16)

    def w_kxk(p, scale):                 # OIHW -> (dx, dy, ci, co) -> (k*k*ci, co)
        cout, cin, kh, kw = p["w"].shape
        w = p["w"] * scale[:, None, None, None]
        return (jnp.transpose(w, (3, 2, 1, 0))
                .reshape(kh * kw * cin, cout).astype(jnp.bfloat16))

    s1, c1 = fold(params["b1"])
    s2a, c2a = fold(params["b2a"])
    s2b, c2b = fold(params["b2b"])
    s3a, c3a = fold(params["b3a"])
    s3b, c3b = fold(params["b3b"])
    s4, c4 = fold(params["b4"])

    row = lambda v: v.reshape(1, -1).astype(jnp.float32)
    return {
        "wh": jnp.concatenate([w_1x1(params["b1"], s1),
                               w_1x1(params["b2a"], s2a),
                               w_1x1(params["b3a"], s3a)], axis=1),
        "bih": row(jnp.concatenate([c1, c2a, c3a])),
        "w2": w_kxk(params["b2b"], s2b), "bi2": row(c2b),
        "w3": w_kxk(params["b3b"], s3b), "bi3": row(c3b),
        "w4": w_1x1(params["b4"], s4), "bi4": row(c4),
    }


# -----------------------------------------------------------------------------
# Pure-JAX reference (independent conv path; mirrors the kernel numerics:
# BN-scale folded into bf16 weights, bf16 activations, f32 accumulation)
# -----------------------------------------------------------------------------
def _ref_conv_bn_relu(x_bf, p, pad, eps=1e-5):
    scale = p["gamma"] / jnp.sqrt(p["var"] + eps)
    bias = (p["b"] - p["mean"]) * scale + p["beta"]
    w = jnp.transpose(p["w"] * scale[:, None, None, None],
                      (2, 3, 1, 0)).astype(jnp.bfloat16)           # HWIO
    y = lax.conv_general_dilated(
        x_bf, w, (1, 1), [(pad, pad), (pad, pad)],
        dimension_numbers=("NHWC", "HWIO", "NHWC"),
        preferred_element_type=jnp.float32)
    return jnp.maximum(y + bias, 0.0)


def inception_block_a_ref(x_nchw, params):
    x = jnp.transpose(x_nchw, (0, 2, 3, 1))
    x_bf = x.astype(jnp.bfloat16)
    b1 = _ref_conv_bn_relu(x_bf, params["b1"], 0)
    b2 = _ref_conv_bn_relu(
        _ref_conv_bn_relu(x_bf, params["b2a"], 0).astype(jnp.bfloat16),
        params["b2b"], 1)
    b3 = _ref_conv_bn_relu(
        _ref_conv_bn_relu(x_bf, params["b3a"], 0).astype(jnp.bfloat16),
        params["b3b"], 2)
    pooled = lax.reduce_window(x_bf.astype(jnp.float32), -jnp.inf, lax.max,
                               (1, 3, 3, 1), (1, 1, 1, 1),
                               padding=[(0, 0), (1, 1), (1, 1), (0, 0)])
    b4 = _ref_conv_bn_relu(pooled.astype(jnp.bfloat16), params["b4"], 0)
    out = jnp.concatenate([b1, b2, b3, b4], axis=-1)
    return jnp.transpose(out, (0, 3, 1, 2))


# -----------------------------------------------------------------------------
if __name__ == "__main__":
    key = jax.random.PRNGKey(0)
    kx, kp = jax.random.split(key)

    B, C_IN, H, W = 2, 4, 16, 16
    OUT_CHANNELS = 128

    x = jax.random.normal(kx, (B, C_IN, H, W), jnp.float32)   # NCHW, like PyTorch
    params = init_inception_block_a(kp, C_IN, OUT_CHANNELS)
    packed = fold_and_pack(params)          # fold BN once, outside the forward

    fwd = jax.jit(inception_block_a)
    out = jax.block_until_ready(fwd(x, packed))
    assert out.shape == (B, OUT_CHANNELS, H, W), out.shape

    ref = jax.block_until_ready(jax.jit(inception_block_a_ref)(x, params))
    # Both sides use the same BN-folded bf16 weights and bf16 MXU inputs with
    # f32 accumulation -> tight tolerance.
    np.testing.assert_allclose(np.asarray(out), np.asarray(ref),
                               rtol=2e-3, atol=2e-3)

    print("KERNEL_OK")
</pallas_src>

<mosaic_0001>
module attributes {stable_mosaic.version = 11 : i64} {
  func.func @_inception_kernel(%arg0: i32, %arg1: memref<1x16x16x4xbf16, #tpu.memory_space<vmem>>, %arg2: memref<4x80xbf16, #tpu.memory_space<vmem>>, %arg3: memref<1x80xf32, #tpu.memory_space<vmem>>, %arg4: memref<288x32xbf16, #tpu.memory_space<vmem>>, %arg5: memref<1x32xf32, #tpu.memory_space<vmem>>, %arg6: memref<400x32xbf16, #tpu.memory_space<vmem>>, %arg7: memref<1x32xf32, #tpu.memory_space<vmem>>, %arg8: memref<4x32xbf16, #tpu.memory_space<vmem>>, %arg9: memref<1x32xf32, #tpu.memory_space<vmem>>, %arg10: memref<1x16x16x128xf32, #tpu.memory_space<vmem>>) attributes {dimension_semantics = [#tpu.dimension_semantics<parallel>], iteration_bounds = array<i64: 2>, scalar_prefetch = 0 : i64, scratch_operands = 0 : i64, tpu.core_type = #tpu.core_type<tc>, window_params = [{transform_indices = @transform_0, window_bounds = array<i64: 1, 16, 16, 4>}, {pipeline_mode = #tpu.pipeline_mode<synchronous>, transform_indices = @transform_1, window_bounds = array<i64: 4, 80>}, {pipeline_mode = #tpu.pipeline_mode<synchronous>, transform_indices = @transform_2, window_bounds = array<i64: 1, 80>}, {pipeline_mode = #tpu.pipeline_mode<synchronous>, transform_indices = @transform_3, window_bounds = array<i64: 288, 32>}, {pipeline_mode = #tpu.pipeline_mode<synchronous>, transform_indices = @transform_4, window_bounds = array<i64: 1, 32>}, {pipeline_mode = #tpu.pipeline_mode<synchronous>, transform_indices = @transform_5, window_bounds = array<i64: 400, 32>}, {pipeline_mode = #tpu.pipeline_mode<synchronous>, transform_indices = @transform_6, window_bounds = array<i64: 1, 32>}, {pipeline_mode = #tpu.pipeline_mode<synchronous>, transform_indices = @transform_7, window_bounds = array<i64: 4, 32>}, {pipeline_mode = #tpu.pipeline_mode<synchronous>, transform_indices = @transform_8, window_bounds = array<i64: 1, 32>}, {transform_indices = @transform_9, window_bounds = array<i64: 1, 16, 16, 128>}]} {
    %c0 = arith.constant 0 : index
    %c0_0 = arith.constant 0 : index
    %c0_1 = arith.constant 0 : index
    %c0_2 = arith.constant 0 : index
    %0 = vector.load %arg1[%c0, %c0_0, %c0_1, %c0_2] : memref<1x16x16x4xbf16, #tpu.memory_space<vmem>>, vector<1x16x16x4xbf16>
    %1 = vector.shape_cast %0 : vector<1x16x16x4xbf16> to vector<16x16x4xbf16>
    %2 = vector.shape_cast %1 : vector<16x16x4xbf16> to vector<256x4xbf16>
    %c0_3 = arith.constant 0 : index
    %c0_4 = arith.constant 0 : index
    %3 = vector.load %arg2[%c0_3, %c0_4] : memref<4x80xbf16, #tpu.memory_space<vmem>>, vector<4x80xbf16>
    %cst = arith.constant dense<0.000000e+00> : vector<256x80xf32>
    %4 = tpu.matmul %2, %3, %cst {dimension_numbers = #tpu.dot_dimension_numbers<[1], [0], [0], [1], [0, 0, 1, 1], [], []>} : vector<256x4xbf16>, vector<4x80xbf16>, vector<256x80xf32> -> vector<256x80xf32>
    %c0_5 = arith.constant 0 : index
    %c0_6 = arith.constant 0 : index
    %5 = vector.load %arg3[%c0_5, %c0_6] : memref<1x80xf32, #tpu.memory_space<vmem>>, vector<1x80xf32>
    %6 = vector.broadcast %5 : vector<1x80xf32> to vector<256x80xf32>
    %7 = arith.addf %4, %6 : vector<256x80xf32>
    %cst_7 = arith.constant 0.000000e+00 : f32
    %8 = vector.broadcast %cst_7 : f32 to vector<256x80xf32>
    %9 = arith.maximumf %7, %8 : vector<256x80xf32>
    %10 = vector.extract_strided_slice %9 {offsets = [0, 0], sizes = [256, 32], strides = [1, 1]} : vector<256x80xf32> to vector<256x32xf32>
    %11 = vector.extract_strided_slice %9 {offsets = [0, 32], sizes = [256, 32], strides = [1, 1]} : vector<256x80xf32> to vector<256x32xf32>
    %12 = vector.extract_strided_slice %9 {offsets = [0, 64], sizes = [256, 16], strides = [1, 1]} : vector<256x80xf32> to vector<256x16xf32>
    %13 = vector.shape_cast %11 : vector<256x32xf32> to vector<16x16x32xf32>
    %14 = arith.truncf %13 : vector<16x16x32xf32> to vector<16x16x32xbf16>
    %cst_8 = arith.constant 0.000000e+00 : bf16
    %15 = vector.broadcast %cst_8 : bf16 to vector<1x16x32xbf16>
    %16 = tpu.concatenate %15, %14, %15 in 0 : vector<1x16x32xbf16>, vector<16x16x32xbf16>, vector<1x16x32xbf16> -> vector<18x16x32xbf16>
    %cst_9 = arith.constant 0.000000e+00 : bf16
    %17 = vector.broadcast %cst_9 : bf16 to vector<18x1x32xbf16>
    %18 = tpu.concatenate %17, %16, %17 in 1 : vector<18x1x32xbf16>, vector<18x16x32xbf16>, vector<18x1x32xbf16> -> vector<18x18x32xbf16>
    %19 = vector.extract_strided_slice %18 {offsets = [0, 0, 0], sizes = [16, 18, 32], strides = [1, 1, 1]} : vector<18x18x32xbf16> to vector<16x18x32xbf16>
    %20 = vector.extract_strided_slice %18 {offsets = [1, 0, 0], sizes = [16, 18, 32], strides = [1, 1, 1]} : vector<18x18x32xbf16> to vector<16x18x32xbf16>
    %21 = vector.extract_strided_slice %18 {offsets = [2, 0, 0], sizes = [16, 18, 32], strides = [1, 1, 1]} : vector<18x18x32xbf16> to vector<16x18x32xbf16>
    %22 = tpu.concatenate %19, %20, %21 in 2 : vector<16x18x32xbf16>, vector<16x18x32xbf16>, vector<16x18x32xbf16> -> vector<16x18x96xbf16>
    %23 = vector.extract_strided_slice %22 {offsets = [0, 0, 0], sizes = [16, 16, 96], strides = [1, 1, 1]} : vector<16x18x96xbf16> to vector<16x16x96xbf16>
    %24 = vector.shape_cast %23 : vector<16x16x96xbf16> to vector<256x96xbf16>
    %c0_10 = arith.constant 0 : index
    %c0_11 = arith.constant 0 : index
    %25 = vector.load %arg4[%c0_10, %c0_11] : memref<288x32xbf16, #tpu.memory_space<vmem>>, vector<96x32xbf16>
    %cst_12 = arith.constant dense<0.000000e+00> : vector<256x32xf32>
    %26 = tpu.matmul %24, %25, %cst_12 {dimension_numbers = #tpu.dot_dimension_numbers<[1], [0], [0], [1], [0, 0, 1, 1], [], []>} : vector<256x96xbf16>, vector<96x32xbf16>, vector<256x32xf32> -> vector<256x32xf32>
    %27 = vector.extract_strided_slice %22 {offsets = [0, 1, 0], sizes = [16, 16, 96], strides = [1, 1, 1]} : vector<16x18x96xbf16> to vector<16x16x96xbf16>
    %28 = vector.shape_cast %27 : vector<16x16x96xbf16> to vector<256x96xbf16>
    %c96 = arith.constant 96 : index
    %c0_13 = arith.constant 0 : index
    %29 = vector.load %arg4[%c96, %c0_13] : memref<288x32xbf16, #tpu.memory_space<vmem>>, vector<96x32xbf16>
    %cst_14 = arith.constant dense<0.000000e+00> : vector<256x32xf32>
    %30 = tpu.matmul %28, %29, %cst_14 {dimension_numbers = #tpu.dot_dimension_numbers<[1], [0], [0], [1], [0, 0, 1, 1], [], []>} : vector<256x96xbf16>, vector<96x32xbf16>, vector<256x32xf32> -> vector<256x32xf32>
    %31 = arith.addf %26, %30 : vector<256x32xf32>
    %32 = vector.extract_strided_slice %22 {offsets = [0, 2, 0], sizes = [16, 16, 96], strides = [1, 1, 1]} : vector<16x18x96xbf16> to vector<16x16x96xbf16>
    %33 = vector.shape_cast %32 : vector<16x16x96xbf16> to vector<256x96xbf16>
    %c192 = arith.constant 192 : index
    %c0_15 = arith.constant 0 : index
    %34 = vector.load %arg4[%c192, %c0_15] : memref<288x32xbf16, #tpu.memory_space<vmem>>, vector<96x32xbf16>
    %cst_16 = arith.constant dense<0.000000e+00> : vector<256x32xf32>
    %35 = tpu.matmul %33, %34, %cst_16 {dimension_numbers = #tpu.dot_dimension_numbers<[1], [0], [0], [1], [0, 0, 1, 1], [], []>} : vector<256x96xbf16>, vector<96x32xbf16>, vector<256x32xf32> -> vector<256x32xf32>
    %36 = arith.addf %31, %35 : vector<256x32xf32>
    %c0_17 = arith.constant 0 : index
    %c0_18 = arith.constant 0 : index
    %37 = vector.load %arg5[%c0_17, %c0_18] : memref<1x32xf32, #tpu.memory_space<vmem>>, vector<1x32xf32>
    %38 = vector.broadcast %37 : vector<1x32xf32> to vector<256x32xf32>
    %39 = arith.addf %36, %38 : vector<256x32xf32>
    %cst_19 = arith.constant 0.000000e+00 : f32
    %40 = vector.broadcast %cst_19 : f32 to vector<256x32xf32>
    %41 = arith.maximumf %39, %40 : vector<256x32xf32>
    %42 = vector.shape_cast %12 : vector<256x16xf32> to vector<16x16x16xf32>
    %43 = arith.truncf %42 : vector<16x16x16xf32> to vector<16x16x16xbf16>
    %cst_20 = arith.constant 0.000000e+00 : bf16
    %44 = vector.broadcast %cst_20 : bf16 to vector<2x16x16xbf16>
    %45 = tpu.concatenate %44, %43, %44 in 0 : vector<2x16x16xbf16>, vector<16x16x16xbf16>, vector<2x16x16xbf16> -> vector<20x16x16xbf16>
    %cst_21 = arith.constant 0.000000e+00 : bf16
    %46 = vector.broadcast %cst_21 : bf16 to vector<20x2x16xbf16>
    %47 = tpu.concatenate %46, %45, %46 in 1 : vector<20x2x16xbf16>, vector<20x16x16xbf16>, vector<20x2x16xbf16> -> vector<20x20x16xbf16>
    %48 = vector.extract_strided_slice %47 {offsets = [0, 0, 0], sizes = [16, 20, 16], strides = [1, 1, 1]} : vector<20x20x16xbf16> to vector<16x20x16xbf16>
    %49 = vector.extract_strided_slice %47 {offsets = [1, 0, 0], sizes = [16, 20, 16], strides = [1, 1, 1]} : vector<20x20x16xbf16> to vector<16x20x16xbf16>
    %50 = vector.extract_strided_slice %47 {offsets = [2, 0, 0], sizes = [16, 20, 16], strides = [1, 1, 1]} : vector<20x20x16xbf16> to vector<16x20x16xbf16>
    %51 = vector.extract_strided_slice %47 {offsets = [3, 0, 0], sizes = [16, 20, 16], strides = [1, 1, 1]} : vector<20x20x16xbf16> to vector<16x20x16xbf16>
    %52 = vector.extract_strided_slice %47 {offsets = [4, 0, 0], sizes = [16, 20, 16], strides = [1, 1, 1]} : vector<20x20x16xbf16> to vector<16x20x16xbf16>
    %53 = tpu.concatenate %48, %49, %50, %51, %52 in 2 : vector<16x20x16xbf16>, vector<16x20x16xbf16>, vector<16x20x16xbf16>, vector<16x20x16xbf16>, vector<16x20x16xbf16> -> vector<16x20x80xbf16>
    %54 = vector.extract_strided_slice %53 {offsets = [0, 0, 0], sizes = [16, 16, 80], strides = [1, 1, 1]} : vector<16x20x80xbf16> to vector<16x16x80xbf16>
    %55 = vector.shape_cast %54 : vector<16x16x80xbf16> to vector<256x80xbf16>
    %c0_22 = arith.constant 0 : index
    %c0_23 = arith.constant 0 : index
    %56 = vector.load %arg6[%c0_22, %c0_23] : memref<400x32xbf16, #tpu.memory_space<vmem>>, vector<80x32xbf16>
    %cst_24 = arith.constant dense<0.000000e+00> : vector<256x32xf32>
    %57 = tpu.matmul %55, %56, %cst_24 {dimension_numbers = #tpu.dot_dimension_numbers<[1], [0], [0], [1], [0, 0, 1, 1], [], []>} : vector<256x80xbf16>, vector<80x32xbf16>, vector<256x32xf32> -> vector<256x32xf32>
    %58 = vector.extract_strided_slice %53 {offsets = [0, 1, 0], sizes = [16, 16, 80], strides = [1, 1, 1]} : vector<16x20x80xbf16> to vector<16x16x80xbf16>
    %59 = vector.shape_cast %58 : vector<16x16x80xbf16> to vector<256x80xbf16>
    %c80 = arith.constant 80 : index
    %c0_25 = arith.constant 0 : index
    %60 = vector.load %arg6[%c80, %c0_25] : memref<400x32xbf16, #tpu.memory_space<vmem>>, vector<80x32xbf16>
    %cst_26 = arith.constant dense<0.000000e+00> : vector<256x32xf32>
    %61 = tpu.matmul %59, %60, %cst_26 {dimension_numbers = #tpu.dot_dimension_numbers<[1], [0], [0], [1], [0, 0, 1, 1], [], []>} : vector<256x80xbf16>, vector<80x32xbf16>, vector<256x32xf32> -> vector<256x32xf32>
    %62 = arith.addf %57, %61 : vector<256x32xf32>
    %63 = vector.extract_strided_slice %53 {offsets = [0, 2, 0], sizes = [16, 16, 80], strides = [1, 1, 1]} : vector<16x20x80xbf16> to vector<16x16x80xbf16>
    %64 = vector.shape_cast %63 : vector<16x16x80xbf16> to vector<256x80xbf16>
    %c160 = arith.constant 160 : index
    %c0_27 = arith.constant 0 : index
    %65 = vector.load %arg6[%c160, %c0_27] : memref<400x32xbf16, #tpu.memory_space<vmem>>, vector<80x32xbf16>
    %cst_28 = arith.constant dense<0.000000e+00> : vector<256x32xf32>
    %66 = tpu.matmul %64, %65, %cst_28 {dimension_numbers = #tpu.dot_dimension_numbers<[1], [0], [0], [1], [0, 0, 1, 1], [], []>} : vector<256x80xbf16>, vector<80x32xbf16>, vector<256x32xf32> -> vector<256x32xf32>
    %67 = arith.addf %62, %66 : vector<256x32xf32>
    %68 = vector.extract_strided_slice %53 {offsets = [0, 3, 0], sizes = [16, 16, 80], strides = [1, 1, 1]} : vector<16x20x80xbf16> to vector<16x16x80xbf16>
    %69 = vector.shape_cast %68 : vector<16x16x80xbf16> to vector<256x80xbf16>
    %c240 = arith.constant 240 : index
    %c0_29 = arith.constant 0 : index
    %70 = vector.load %arg6[%c240, %c0_29] : memref<400x32xbf16, #tpu.memory_space<vmem>>, vector<80x32xbf16>
    %cst_30 = arith.constant dense<0.000000e+00> : vector<256x32xf32>
    %71 = tpu.matmul %69, %70, %cst_30 {dimension_numbers = #tpu.dot_dimension_numbers<[1], [0], [0], [1], [0, 0, 1, 1], [], []>} : vector<256x80xbf16>, vector<80x32xbf16>, vector<256x32xf32> -> vector<256x32xf32>
    %72 = arith.addf %67, %71 : vector<256x32xf32>
    %73 = vector.extract_strided_slice %53 {offsets = [0, 4, 0], sizes = [16, 16, 80], strides = [1, 1, 1]} : vector<16x20x80xbf16> to vector<16x16x80xbf16>
    %74 = vector.shape_cast %73 : vector<16x16x80xbf16> to vector<256x80xbf16>
    %c320 = arith.constant 320 : index
    %c0_31 = arith.constant 0 : index
    %75 = vector.load %arg6[%c320, %c0_31] : memref<400x32xbf16, #tpu.memory_space<vmem>>, vector<80x32xbf16>
    %cst_32 = arith.constant dense<0.000000e+00> : vector<256x32xf32>
    %76 = tpu.matmul %74, %75, %cst_32 {dimension_numbers = #tpu.dot_dimension_numbers<[1], [0], [0], [1], [0, 0, 1, 1], [], []>} : vector<256x80xbf16>, vector<80x32xbf16>, vector<256x32xf32> -> vector<256x32xf32>
    %77 = arith.addf %72, %76 : vector<256x32xf32>
    %c0_33 = arith.constant 0 : index
    %c0_34 = arith.constant 0 : index
    %78 = vector.load %arg7[%c0_33, %c0_34] : memref<1x32xf32, #tpu.memory_space<vmem>>, vector<1x32xf32>
    %79 = vector.broadcast %78 : vector<1x32xf32> to vector<256x32xf32>
    %80 = arith.addf %77, %79 : vector<256x32xf32>
    %cst_35 = arith.constant 0.000000e+00 : f32
    %81 = vector.broadcast %cst_35 : f32 to vector<256x32xf32>
    %82 = arith.maximumf %80, %81 : vector<256x32xf32>
    %cst_36 = arith.constant 0xFF80 : bf16
    %83 = vector.broadcast %cst_36 : bf16 to vector<1x16x4xbf16>
    %84 = tpu.concatenate %83, %1, %83 in 0 : vector<1x16x4xbf16>, vector<16x16x4xbf16>, vector<1x16x4xbf16> -> vector<18x16x4xbf16>
    %cst_37 = arith.constant 0xFF80 : bf16
    %85 = vector.broadcast %cst_37 : bf16 to vector<18x1x4xbf16>
    %86 = tpu.concatenate %85, %84, %85 in 1 : vector<18x1x4xbf16>, vector<18x16x4xbf16>, vector<18x1x4xbf16> -> vector<18x18x4xbf16>
    %87 = vector.extract_strided_slice %86 {offsets = [0, 0, 0], sizes = [16, 18, 4], strides = [1, 1, 1]} : vector<18x18x4xbf16> to vector<16x18x4xbf16>
    %88 = vector.extract_strided_slice %86 {offsets = [1, 0, 0], sizes = [16, 18, 4], strides = [1, 1, 1]} : vector<18x18x4xbf16> to vector<16x18x4xbf16>
    %89 = arith.maximumf %87, %88 : vector<16x18x4xbf16>
    %90 = vector.extract_strided_slice %86 {offsets = [2, 0, 0], sizes = [16, 18, 4], strides = [1, 1, 1]} : vector<18x18x4xbf16> to vector<16x18x4xbf16>
    %91 = arith.maximumf %89, %90 : vector<16x18x4xbf16>
    %92 = vector.extract_strided_slice %91 {offsets = [0, 0, 0], sizes = [16, 16, 4], strides = [1, 1, 1]} : vector<16x18x4xbf16> to vector<16x16x4xbf16>
    %93 = vector.extract_strided_slice %91 {offsets = [0, 1, 0], sizes = [16, 16, 4], strides = [1, 1, 1]} : vector<16x18x4xbf16> to vector<16x16x4xbf16>
    %94 = arith.maximumf %92, %93 : vector<16x16x4xbf16>
    %95 = vector.extract_strided_slice %91 {offsets = [0, 2, 0], sizes = [16, 16, 4], strides = [1, 1, 1]} : vector<16x18x4xbf16> to vector<16x16x4xbf16>
    %96 = arith.maximumf %94, %95 : vector<16x16x4xbf16>
    %97 = vector.shape_cast %96 : vector<16x16x4xbf16> to vector<256x4xbf16>
    %c0_38 = arith.constant 0 : index
    %c0_39 = arith.constant 0 : index
    %98 = vector.load %arg8[%c0_38, %c0_39] : memref<4x32xbf16, #tpu.memory_space<vmem>>, vector<4x32xbf16>
    %cst_40 = arith.constant dense<0.000000e+00> : vector<256x32xf32>
    %99 = tpu.matmul %97, %98, %cst_40 {dimension_numbers = #tpu.dot_dimension_numbers<[1], [0], [0], [1], [0, 0, 1, 1], [], []>} : vector<256x4xbf16>, vector<4x32xbf16>, vector<256x32xf32> -> vector<256x32xf32>
    %c0_41 = arith.constant 0 : index
    %c0_42 = arith.constant 0 : index
    %100 = vector.load %arg9[%c0_41, %c0_42] : memref<1x32xf32, #tpu.memory_space<vmem>>, vector<1x32xf32>
    %101 = vector.broadcast %100 : vector<1x32xf32> to vector<256x32xf32>
    %102 = arith.addf %99, %101 : vector<256x32xf32>
    %cst_43 = arith.constant 0.000000e+00 : f32
    %103 = vector.broadcast %cst_43 : f32 to vector<256x32xf32>
    %104 = arith.maximumf %102, %103 : vector<256x32xf32>
    %105 = tpu.concatenate %10, %41, %82, %104 in 1 : vector<256x32xf32>, vector<256x32xf32>, vector<256x32xf32>, vector<256x32xf32> -> vector<256x128xf32>
    %106 = vector.shape_cast %105 : vector<256x128xf32> to vector<1x16x16x128xf32>
    %c0_44 = arith.constant 0 : index
    %c0_45 = arith.constant 0 : index
    %c0_46 = arith.constant 0 : index
    %c0_47 = arith.constant 0 : index
    %107 = vector.load %arg10[%c0_44, %c0_45, %c0_46, %c0_47] : memref<1x16x16x128xf32, #tpu.memory_space<vmem>>, vector<1x16x16x128xf32>
    tpu.vector_store %arg10[%c0_44, %c0_45, %c0_46, %c0_47], %106 {strides = array<i32>} : memref<1x16x16x128xf32, #tpu.memory_space<vmem>>, vector<1x16x16x128xf32>,
    return
  }
  func.func @transform_0(%arg0: i32) -> (i32, i32, i32, i32) {
    %c0_i32 = arith.constant 0 : i32
    %c0_i32_0 = arith.constant 0 : i32
    %c0_i32_1 = arith.constant 0 : i32
    %c0_i32_2 = arith.constant 0 : i32
    return %arg0, %c0_i32, %c0_i32_0, %c0_i32_1 : i32, i32, i32, i32
  }
  func.func @transform_1(%arg0: i32) -> (i32, i32) {
    %c0_i32 = arith.constant 0 : i32
    %c0_i32_0 = arith.constant 0 : i32
    %c0_i32_1 = arith.constant 0 : i32
    return %c0_i32, %c0_i32_0 : i32, i32
  }
  func.func @transform_2(%arg0: i32) -> (i32, i32) {
    %c0_i32 = arith.constant 0 : i32
    %c0_i32_0 = arith.constant 0 : i32
    %c0_i32_1 = arith.constant 0 : i32
    return %c0_i32, %c0_i32_0 : i32, i32
  }
  func.func @transform_3(%arg0: i32) -> (i32, i32) {
    %c0_i32 = arith.constant 0 : i32
    %c0_i32_0 = arith.constant 0 : i32
    %c0_i32_1 = arith.constant 0 : i32
    return %c0_i32, %c0_i32_0 : i32, i32
  }
  func.func @transform_4(%arg0: i32) -> (i32, i32) {
    %c0_i32 = arith.constant 0 : i32
    %c0_i32_0 = arith.constant 0 : i32
    %c0_i32_1 = arith.constant 0 : i32
    return %c0_i32, %c0_i32_0 : i32, i32
  }
  func.func @transform_5(%arg0: i32) -> (i32, i32) {
    %c0_i32 = arith.constant 0 : i32
    %c0_i32_0 = arith.constant 0 : i32
    %c0_i32_1 = arith.constant 0 : i32
    return %c0_i32, %c0_i32_0 : i32, i32
  }
  func.func @transform_6(%arg0: i32) -> (i32, i32) {
    %c0_i32 = arith.constant 0 : i32
    %c0_i32_0 = arith.constant 0 : i32
    %c0_i32_1 = arith.constant 0 : i32
    return %c0_i32, %c0_i32_0 : i32, i32
  }
  func.func @transform_7(%arg0: i32) -> (i32, i32) {
    %c0_i32 = arith.constant 0 : i32
    %c0_i32_0 = arith.constant 0 : i32
    %c0_i32_1 = arith.constant 0 : i32
    return %c0_i32, %c0_i32_0 : i32, i32
  }
  func.func @transform_8(%arg0: i32) -> (i32, i32) {
    %c0_i32 = arith.constant 0 : i32
    %c0_i32_0 = arith.constant 0 : i32
    %c0_i32_1 = arith.constant 0 : i32
    return %c0_i32, %c0_i32_0 : i32, i32
  }
  func.func @transform_9(%arg0: i32) -> (i32, i32, i32, i32) {
    %c0_i32 = arith.constant 0 : i32
    %c0_i32_0 = arith.constant 0 : i32
    %c0_i32_1 = arith.constant 0 : i32
    %c0_i32_2 = arith.constant 0 : i32
    return %arg0, %c0_i32, %c0_i32_0, %c0_i32_1 : i32, i32, i32, i32
  }
}

</mosaic_0001>

<bundles_post_ra>
// kernel: inception_block_a.1
= control target key start
LH: loop header
LB: loop body
LE: loop exit
PB: predicated region body
PF: predicated region fallthrough
CT: control target
= control target key end

     0   :  { %14 = vsyncpa [#allocation3], 0  ;;  %s10727_s0 = inlined_call_operand.vmem [shape: bf16[2,16,16,4], index: 0, kind: input, shape index: {}]   ;;  %s10728_s1 = inlined_call_operand.vmem [shape: bf16[4,80], index: 1, kind: input, shape index: {}]   ;;  %s10729_s2 = inlined_call_operand.vmem [shape: f32[1,80], index: 2, kind: input, shape index: {}]   ;;  %s10730_s3 = inlined_call_operand.vmem [shape: bf16[288,32], index: 3, kind: input, shape index: {}]   ;;  %s10731_s4 = inlined_call_operand.vmem [shape: f32[1,32], index: 4, kind: input, shape index: {}]   ;;  %s10732_s5 = inlined_call_operand.vmem [shape: bf16[400,32], index: 5, kind: input, shape index: {}]   ;;  %s10733_s6 = inlined_call_operand.vmem [shape: f32[1,32], index: 6, kind: input, shape index: {}]   ;;  %s10734_s7 = inlined_call_operand.vmem [shape: bf16[4,32], index: 7, kind: input, shape index: {}]   ;;  %s10735_s8 = inlined_call_operand.vmem [shape: f32[1,32], index: 8, kind: input, shape index: {}]   ;;  %s10736_s9 = inlined_call_operand.hbm [shape: f32[2,16,16,128], index: 9, kind: output, shape index: {}]  }
   0x1   :  { %16 = vsyncpa [#allocation3 + $0x1], 0  ;;  %s6740_s30 = smov 0   ;;  %s6742_s10 = smov 0  }
   0x2   :  { %s6744_s11 = smov 0   ;;  %s6746_s12 = smov 0  }
   0x3 LB: > { %s6761_s13 = sadd.s32 4294967295, %s6679_s12   ;;  %s6067_s14 = sadd.s32 4294967294, %s6679_s12   ;;  %s6679_s12 = sphi %s6746_s12, %s11487_s12   ;;  %s6675_s11 = sphi %s6744_s11, %s11486_s11   ;;  %s6671_s10 = sphi %s6742_s10, %s11485_s10   ;;  %s6667_s30 = sphi %s6740_s30, %s11484_s30  }
   0x4   : > { %s6765_s15 = sadd.s32 1, %s6679_s12   ;;  %s223_s16 = sadd.s32 1, %s6675_s11 }
   0x5   : > { %s220_s17 = ssub.s32 %s6679_s12, %s6765_s15  ;;  %p233_p0 = scmp.ne.s32.totalorder %s6675_s11, %s6671_s10 }
   0x6   : > { %p221_p1 = scmp.eq.s32.totalorder %s220_s17, 0  ;;  %p234_p2 = scmp.eq.s32.totalorder %s6761_s13, 1 }
   0x7   : > { %p239_p3 = scmp.ne.s32.totalorder %s6671_s10, %s6667_s30  ;;  %p240_p4 = scmp.eq.s32.totalorder %s6067_s14, 1 }
   0x8   : > { %s6776_s18 = scalar_select %p221_p1, %s6675_s11, %s223_s16  }
   0x9   : > { %p6778_p5 = por %p234_p2, %p233_p0  ;;  %p6782_p6 = por %p240_p4, %p239_p3 }
   0xa   : > { %p6070_p7 = scmp.ge.s32.totalorder %s6679_s12, 1  ;;  %p290_p8 = scmp.lt.s32.totalorder %s6679_s12, 3 }
   0xc   : > { %p291_p9 = pnand %p6070_p7, %p290_p8 }
   0xe   : > { %294 = sbr.rel (%p291_p9) target bundleno = 1772 (0x6ec), region = 56 }
  0x13   : > { %v365_v0 = vld [vmem:[%s10728_s1] sm:$0x3]  ;;  %vm499_vm0 = vcmask 1041408   ;;  %p326_p10 = scmp.lt.s32.totalorder %s6761_s13, 1  ;;  %vm921_vm1 = vcmask 1040384   ;;  %v6681_v2 = vmov 65408  }
  0x14   : > { %v501_v1 = vsel %vm499_vm0, %v365_v0, 0  ;;  %vm922_vm2 = vsmask.f32 256  ;;  %v4279_v3 = vrot.slane %v6681_v2, 7  ;;  %vm450_vm4 = vcmask 31744   ;;  %s6682_s14 = smov 96  }
  0x15   : > { %510 = vmatpush.bf16.msra.mxu0 %v501_v1  ;;  %6536 = vmatpush.bf16.msra.mxu3 %v501_v1  ;;  %s327_s23 = scalar_select %p326_p10, %s6761_s13, 1  ;;  %vm6795_vm3 = vmand %vm921_vm1, %vm922_vm2  ;;  %vm1830_vm5 = vcmask 1046528   ;;  %vm1120_vm6 = vcmask 261120   ;;  %vm1217_vm7 = vcmask 523264   ;;  %vm1503_vm8 = vcmask 785408  }
  0x16   : > { %v4282_v5 = vor.u32 4286578688, %v4279_v3  ;;  %v4430_v6 = vsel %vm6795_vm3, %v4279_v3, 4286644096  ;;  %s6683_s16 = smov 64   ;;  %s6684_s17 = smov 32   ;;  %vm2552_vm10 = vcmask 130048  }
  0x17   : > { %s6475_s24 = sshll.u32 %s327_s23, 7  ;;  %v6816_v13 = vunpack.c.l.bf16 %v4430_v6  ;;  %vm1294_vm9 = vsmask.f32 7424  ;;  %s6687_s28 = smov 48   ;;  %vm2681_vm11 = vcmask 392192   ;;  %vm3018_vm13 = vcmask 654336  }
  0x18   : > { %s6802_s27 = scalar_lea.vmem %s10727_s0, %s6475_s24  ;;  %v6814_v12 = vsel %vm6795_vm3, 4286644096, %v4282_v5  ;;  %vm3596_vm12 = vsmask.f32 6400  ;;  %vm3950_vm14 = vcmask 1045504  }
  0x19   : > { %v6476_v7 = vld [vmem:[%s6802_s27] sm:$0xff]  ;;  %v6485_v8 = vld [vmem:[%s6802_s27 + $0x48] sm:$0xff]  ;;  %10886 = vst [vmem:[#allocation5_spill] sm:$0xff] %v6814_v12  ;;  %v6820_v14 = vld [vmem:[%s6802_s27 + $0x50] sm:$0xff]  ;;  %v10738_v24 = vunpack.c.l.bf16 %v6814_v12  ;;  %v10737_v25 = vunpack.c.h.bf16 %v6814_v12 }
  0x1a   : > { %v6809_v9 = vld [vmem:[%s6802_s27 + $0x8] sm:$0xff]  ;;  %6138 = vmatmul.msk.bf16.vlgmr.msra.gmra.mxu0 %vm450_vm4, %v6476_v7  ;;  %v4283_v10 = vshrl.u32 %v6476_v7, 16  ;;  %v4286_v11 = vshll.u32 %v6476_v7, 16  ;;  %10887 = vst [vmem:[#allocation6_spill] sm:$0xff] %v6816_v13  ;;  %6147 = vmatmul.msk.bf16.vlgmr.msra.gmra.mxu3 %vm450_vm4, %v6485_v8  ;;  %v6823_v15 = vld [vmem:[%s6802_s27 + $0x10] sm:$0xff]  ;;  %v4337_v16 = vshrl.u32 %v6485_v8, 16 }
  0x1b   : > { %v4340_v17 = vshll.u32 %v6485_v8, 16  ;;  %v4289_v18 = vshrl.u32 %v6809_v9, 16  ;;  %v4292_v19 = vshll.u32 %v6809_v9, 16  ;;  %v4343_v21 = vshrl.u32 %v6820_v14, 16  ;;  %v6833_v28 = vld [vmem:[%s6802_s27 + $0x58] sm:$0xff] }
  0x1c   : > { %v4285_v20 = vrot.slane %v4283_v10, 7  ;;  %v4346_v22 = vshll.u32 %v6820_v14, 16  ;;  %v4295_v23 = vshrl.u32 %v6823_v15, 16  ;;  %v4339_v26 = vrot.slane %v4337_v16, 7  ;;  %v6899_v8 = vld [vmem:[%s6802_s27 + $0x18] sm:$0xff] }
  0x1d   : > { %v4291_v27 = vrot.slane %v4289_v18, 7  ;;  %v4345_v31 = vrot.slane %v4343_v21, 7  ;;  %v4298_v32 = vshll.u32 %v6823_v15, 16  ;;  %v4349_v36 = vshrl.u32 %v6833_v28, 16 }
  0x1e   : > { %v4288_v29 = vor.u32 %v4286_v11, %v4285_v20  ;;  %v4431_v30 = vsel %vm6795_vm3, %v4285_v20, 4286644096  ;;  %v4342_v34 = vor.u32 %v4340_v17, %v4339_v26  ;;  %v4297_v40 = vrot.slane %v4295_v23, 7 }
  0x1f   : > { %v4452_v33 = vunpack.c.l.bf16 %v4431_v30  ;;  %v4294_v35 = vor.u32 %v4292_v19, %v4291_v27  ;;  %v4432_v38 = vsel %vm6795_vm3, %v4291_v27, 4286644096  ;;  %v4348_v39 = vor.u32 %v4346_v22, %v4345_v31 }
  0x20   : > { %v4414_v37 = vsel %vm6795_vm3, 4286644096, %v4288_v29  ;;  %v4423_v44 = vsel %vm6795_vm3, 4286644096, %v4342_v34  ;;  %v4440_v45 = vsel %vm6795_vm3, %v4339_v26, 4286644096  ;;  %v6852_v48 = vunpack.c.l.bf16 %v4432_v38 }
  0x21   : > { %v4450_v41 = vunpack.c.l.bf16 %v4414_v37  ;;  %v4451_v42 = vunpack.c.h.bf16 %v4414_v37  ;;  %v4500_v43 = vmax.f32 %v6816_v13, %v4452_v33  ;;  %v6848_v46 = vunpack.c.l.bf16 %v4423_v44  ;;  %v6483_v13 = vld [vmem:[%s6802_s27 + $0x38] sm:$0xff] }
  0x22   : > { %v4415_v47 = vsel %vm6795_vm3, 4286644096, %v4294_v35  ;;  %v4503_v53 = vmax.f32 %v4452_v33, %v6852_v48  ;;  %v4424_v55 = vsel %vm6795_vm3, 4286644096, %v4348_v39  ;;  %v4441_v56 = vsel %vm6795_vm3, %v4345_v31, 4286644096 }
  0x23   : > { %10888 = vst [vmem:[#allocation7_spill] sm:$0xff] %v6848_v46  ;;  %v4498_v49 = vmax.f32 %v10738_v24, %v4450_v41  ;;  %v4499_v50 = vmax.f32 %v10737_v25, %v4451_v42  ;;  %v6858_v51 = vunpack.c.l.bf16 %v4415_v47  ;;  %v6860_v52 = vunpack.c.h.bf16 %v4415_v47  ;;  %v6488_v35 = vld [vmem:[%s6802_s27 + $0x60] sm:$0xff]  ;;  %v6490_v25 = vld [vmem:[%s6802_s27 + $0x70] sm:$0xff] }
  0x24   : > { %v6864_v54 = vmax.f32 %v4500_v43, %v6852_v48  ;;  %v6882_v61 = vunpack.c.h.bf16 %v4423_v44  ;;  %v6885_v63 = vunpack.c.l.bf16 %v4424_v55  ;;  %v6887_v0 = vunpack.c.h.bf16 %v4424_v55 }
  0x25   : > { %10889 = vst [vmem:[#allocation8_spill] sm:$0xff] %v6858_v51  ;;  %v6871_v57 = vmax.f32 %v4450_v41, %v6858_v51  ;;  %v6874_v58 = vmax.f32 %v4451_v42, %v6860_v52  ;;  %v6877_v59 = vmax.f32 %v4498_v49, %v6858_v51  ;;  %v6880_v60 = vmax.f32 %v4499_v50, %v6860_v52 }
  0x26   : > { %10890 = vst [vmem:[#allocation9_spill] sm:$0xff] %v6860_v52  ;;  %v4838_v62 = vrot.slane %v6864_v54, 1  ;;  %v6889_v1 = vunpack.c.l.bf16 %v4440_v45  ;;  %v6892_v3 = vunpack.c.l.bf16 %v4441_v56  ;;  %v4300_v7 = vor.u32 %v4298_v32, %v4297_v40 }
  0x27   : > { %10891 = vst [vmem:[#allocation10_spill] sm:$0xff] %v6864_v54  ;;  %v10739_v2 = vrot.slane %v6880_v60, 1  ;;  %v4433_v11 = vsel %vm6795_vm3, %v4297_v40, 4286644096  ;;  %v4351_v16 = vrot.slane %v4349_v36, 7  ;;  %v4352_v17 = vshll.u32 %v6833_v28, 16 }
  0x28   : > { %10892 = vst [vmem:[#allocation11_spill] sm:$0xff] %v6871_v57  ;;  %v4530_v18 = vmax.f32 %v6889_v1, %v6892_v3  ;;  %v4416_v19 = vsel %vm6795_vm3, 4286644096, %v4300_v7  ;;  %v6917_v20 = vunpack.c.l.bf16 %v4433_v11  ;;  %v4301_v21 = vshrl.u32 %v6899_v8, 16 }
  0x29   : > { %10893 = vst [vmem:[#allocation12_spill] sm:$0xff] %v6874_v58  ;;  %v6904_v10 = vsel %vm1830_vm5, %v10739_v2, %v4838_v62  ;;  %v6920_v22 = vunpack.c.l.bf16 %v4416_v19  ;;  %v6922_v23 = vunpack.c.h.bf16 %v4416_v19  ;;  %v4354_v26 = vor.u32 %v4352_v17, %v4351_v16 }
  0x2a   : > { %10894 = vst [vmem:[#allocation13_spill] sm:$0xff] %v6877_v59  ;;  %6139 = vmatmul.msk.bf16.gmra.mxu0 %vm450_vm4, %v6809_v9  ;;  %6148 = vmatmul.msk.bf16.gmra.mxu3 %vm450_vm4, %v6820_v14  ;;  %v4442_v9 = vsel %vm6795_vm3, %v4351_v16, 4286644096  ;;  %v4506_v14 = vmax.f32 %v6852_v48, %v6917_v20  ;;  %v6929_v27 = vmax.f32 %v4503_v53, %v6917_v20  ;;  %v4303_v30 = vrot.slane %v4301_v21, 7 }
  0x2b   : > { %10895 = vst [vmem:[#allocation14_spill] sm:$0xff] %v6880_v60  ;;  %v6931_v29 = vunpack.c.l.bf16 %v4442_v9  ;;  %v4425_v33 = vsel %vm6795_vm3, 4286644096, %v4354_v26  ;;  %v4304_v34 = vshll.u32 %v6899_v8, 16  ;;  %v4355_v42 = vshrl.u32 %v6488_v35, 16 }
  0x2c   : > { %10896 = vst [vmem:[#allocation15_spill] sm:$0xff] %v6882_v61  ;;  %v6941_v36 = vunpack.c.l.bf16 %v4425_v33  ;;  %v6943_v37 = vunpack.c.h.bf16 %v4425_v33  ;;  %v4434_v41 = vsel %vm6795_vm3, %v4303_v30, 4286644096  ;;  %v4358_v47 = vshll.u32 %v6488_v35, 16 }
  0x2d   : > { %10897 = vst [vmem:[#allocation16_spill] sm:$0xff] %v6885_v63  ;;  %v4533_v38 = vmax.f32 %v6892_v3, %v6931_v29  ;;  %v6948_v39 = vmax.f32 %v4530_v18, %v6931_v29  ;;  %v4306_v40 = vor.u32 %v4304_v34, %v4303_v30  ;;  %v6956_v45 = vunpack.c.l.bf16 %v4434_v41  ;;  %v6480_v30 = vld [vmem:[%s6802_s27 + $0x20] sm:$0xff] }
  0x2e   : > { %10898 = vst [vmem:[#allocation17_spill] sm:$0xff] %v6887_v0  ;;  %v4357_v49 = vrot.slane %v4355_v42, 7  ;;  %v4307_v33 = vshrl.u32 %v6480_v30, 16  ;;  %v4310_v34 = vshll.u32 %v6480_v30, 16  ;;  %v4367_v24 = vshrl.u32 %v6490_v25, 16 }
  0x2f   : > { %10899 = vst [vmem:[#allocation18_spill] sm:$0xff] %v6904_v10  ;;  %v4417_v48 = vsel %vm6795_vm3, 4286644096, %v4306_v40  ;;  %v4509_v55 = vmax.f32 %v6917_v20, %v6956_v45  ;;  %v6967_v56 = vmax.f32 %v4506_v14, %v6956_v45  ;;  %v6489_v40 = vld [vmem:[%s6802_s27 + $0x68] sm:$0xff]  ;;  %v4370_v14 = vshll.u32 %v6490_v25, 16 }
  0x30   : > { %10900 = vst [vmem:[#allocation19_spill] sm:$0xff] %v6920_v22  ;;  %v6960_v50 = vunpack.c.l.bf16 %v4417_v48  ;;  %v6962_v53 = vunpack.c.h.bf16 %v4417_v48  ;;  %v4360_v62 = vor.u32 %v4358_v47, %v4357_v49  ;;  %v4443_v7 = vsel %vm6795_vm3, %v4357_v49, 4286644096 }
  0x31   : > { %10901 = vst [vmem:[#allocation20_spill] sm:$0xff] %v6922_v23  ;;  %v4488_v17 = vunpack.c.l.bf16 %v4443_v7  ;;  %v4309_v41 = vrot.slane %v4307_v33, 7  ;;  %v6685_v23 = vmov 0  }
  0x32   : > { %10902 = vst [vmem:[#allocation21_spill] sm:$0xff] %v6929_v27  ;;  %v4426_v18 = vsel %vm6795_vm3, 4286644096, %v4360_v62 }
  0x33   : > { %10903 = vst [vmem:[#allocation22_spill] sm:$0xff] %v6941_v36  ;;  %v6977_v19 = vunpack.c.l.bf16 %v4426_v18  ;;  %v6979_v20 = vunpack.c.h.bf16 %v4426_v18  ;;  %v4536_v21 = vmax.f32 %v6931_v29, %v4488_v17  ;;  %v6982_v26 = vmax.f32 %v4533_v38, %v4488_v17 }
  0x34   : > { %10904 = vst [vmem:[#allocation23_spill] sm:$0xff] %v6943_v37  ;;  %v4361_v29 = vshrl.u32 %v6489_v40, 16  ;;  %v4364_v38 = vshll.u32 %v6489_v40, 16  ;;  %v4312_v42 = vor.u32 %v4310_v34, %v4309_v41  ;;  %v4435_v47 = vsel %vm6795_vm3, %v4309_v41, 4286644096 }
  0x35   : > { %10905 = vst [vmem:[#allocation24_spill] sm:$0xff] %v6948_v39  ;;  %v6996_v49 = vunpack.c.l.bf16 %v4435_v47 }
  0x36   : > { %10906 = vst [vmem:[#allocation25_spill] sm:$0xff] %v6960_v50  ;;  %v4363_v48 = vrot.slane %v4361_v29, 7  ;;  %v4418_v62 = vsel %vm6795_vm3, 4286644096, %v4312_v42 }
  0x37   : > { %10907 = vst [vmem:[#allocation26_spill] sm:$0xff] %v6962_v53  ;;  %v7002_v7 = vunpack.c.l.bf16 %v4418_v62  ;;  %v7004_v18 = vunpack.c.h.bf16 %v4418_v62  ;;  %v4512_v33 = vmax.f32 %v6956_v45, %v6996_v49  ;;  %v7009_v34 = vmax.f32 %v4509_v55, %v6996_v49 }
  0x38   : > { %10908 = vst [vmem:[#allocation27_spill] sm:$0xff] %v6967_v56 }
  0x39   : > { %10909 = vst [vmem:[#allocation28_spill] sm:$0xff] %v6977_v19 }
  0x3a   : > { %10910 = vst [vmem:[#allocation29_spill] sm:$0xff] %v6979_v20  ;;  %6140 = vmatmul.msk.bf16.gmra.mxu0 %vm450_vm4, %v6823_v15  ;;  %6149 = vmatmul.msk.bf16.gmra.mxu3 %vm450_vm4, %v6833_v28  ;;  %v4366_v15 = vor.u32 %v4364_v38, %v4363_v48  ;;  %v4444_v28 = vsel %vm6795_vm3, %v4363_v48, 4286644096 }
  0x3b   : > { %10911 = vst [vmem:[#allocation30_spill] sm:$0xff] %v6982_v26  ;;  %v7013_v29 = vunpack.c.l.bf16 %v4444_v28  ;;  %v7032_v28 = vld [vmem:[%s6802_s27 + $0x28] sm:$0xff] }
  0x3c   : > { %10912 = vst [vmem:[#allocation31_spill] sm:$0xff] %v7002_v7  ;;  %v4427_v41 = vsel %vm6795_vm3, 4286644096, %v4366_v15  ;;  %v4369_v15 = vrot.slane %v4367_v24, 7 }
  0x3d   : > { %10913 = vst [vmem:[#allocation32_spill] sm:$0xff] %v7004_v18  ;;  %v7019_v47 = vunpack.c.l.bf16 %v4427_v41  ;;  %v7021_v48 = vunpack.c.h.bf16 %v4427_v41  ;;  %v4539_v45 = vmax.f32 %v4488_v17, %v7013_v29  ;;  %v7025_v55 = vmax.f32 %v4536_v21, %v7013_v29 }
  0x3e   : > { %10914 = vst [vmem:[#allocation33_spill] sm:$0xff] %v7009_v34  ;;  %v4313_v41 = vshrl.u32 %v7032_v28, 16  ;;  %v4316_v17 = vshll.u32 %v7032_v28, 16  ;;  %v4445_v43 = vsel %vm6795_vm3, %v4369_v15, 4286644096 }
  0x3f   : > { %10915 = vst [vmem:[#allocation34_spill] sm:$0xff] %v7019_v47 }
  0x40   : > { %10916 = vst [vmem:[#allocation35_spill] sm:$0xff] %v7021_v48  ;;  %v4315_v21 = vrot.slane %v4313_v41, 7 }
  0x41   : > { %10917 = vst [vmem:[#allocation36_spill] sm:$0xff] %v7025_v55 }
  0x42   : > { %v4318_v9 = vor.u32 %v4316_v17, %v4315_v21  ;;  %v4436_v62 = vsel %vm6795_vm3, %v4315_v21, 4286644096 }
  0x43   : > { %v7042_v44 = vunpack.c.l.bf16 %v4436_v62  ;;  %v7057_v62 = vunpack.c.l.bf16 %v4445_v43 }
  0x45   : > { %v4515_v17 = vmax.f32 %v6996_v49, %v7042_v44  ;;  %v7055_v24 = vmax.f32 %v4512_v33, %v7042_v44  ;;  %10921 = vst [vmem:[#allocation40_spill] sm:$0xff] %v7057_v62  ;;  %v6482_v33 = vld [vmem:[%s6802_s27 + $0x30] sm:$0xff] }
  0x46   : > { %v4319_v43 = vshrl.u32 %v6482_v33, 16  ;;  %v4322_v5 = vshll.u32 %v6482_v33, 16 }
  0x47   : > { %10920 = vst [vmem:[#allocation39_spill] sm:$0xff] %v7055_v24 }
  0x48   : > { %v4321_v42 = vrot.slane %v4319_v43, 7 }
  0x4a   : > { %6141 = vmatmul.msk.bf16.gmra.mxu0 %vm450_vm4, %v6899_v8  ;;  %6150 = vmatmul.msk.bf16.gmra.mxu3 %vm450_vm4, %v6488_v35  ;;  %v4419_v8 = vsel %vm6795_vm3, 4286644096, %v4318_v9  ;;  %v4372_v35 = vor.u32 %v4370_v14, %v4369_v15  ;;  %v7064_v15 = vmax.f32 %v4539_v45, %v7057_v62  ;;  %v6491_v9 = vld [vmem:[%s6802_s27 + $0x78] sm:$0xff]  ;;  %v4324_v16 = vor.u32 %v4322_v5, %v4321_v42 }
  0x4b   : > { %v7048_v6 = vunpack.c.l.bf16 %v4419_v8  ;;  %v7050_v41 = vunpack.c.h.bf16 %v4419_v8  ;;  %v4376_v38 = vshll.u32 %v6491_v9, 16 }
  0x4c   : > { %10922 = vst [vmem:[#allocation41_spill] sm:$0xff] %v7064_v15  ;;  %v4428_v21 = vsel %vm6795_vm3, 4286644096, %v4372_v35  ;;  %v4542_v35 = vmax.f32 %v7013_v29, %v7057_v62  ;;  %v4420_v32 = vsel %vm6795_vm3, 4286644096, %v4324_v16 }
  0x4d   : > { %10918 = vst [vmem:[#allocation37_spill] sm:$0xff] %v7048_v6  ;;  %v7068_v8 = vunpack.c.l.bf16 %v4428_v21  ;;  %v7070_v49 = vunpack.c.h.bf16 %v4428_v21  ;;  %v4373_v21 = vshrl.u32 %v6491_v9, 16  ;;  %v7088_v12 = vunpack.c.l.bf16 %v4420_v32 }
  0x4e   : > { %10919 = vst [vmem:[#allocation38_spill] sm:$0xff] %v7050_v41  ;;  %v7090_v29 = vunpack.c.h.bf16 %v4420_v32 }
  0x4f   : > { %10923 = vst [vmem:[#allocation42_spill] sm:$0xff] %v7068_v8  ;;  %v4540_v14 = vmax.f32 %v7019_v47, %v7068_v8  ;;  %v4541_v45 = vmax.f32 %v7021_v48, %v7070_v49 }
  0x50   : > { %10924 = vst [vmem:[#allocation43_spill] sm:$0xff] %v7070_v49 }
  0x51   : > { %10925 = vst [vmem:[#allocation44_spill] sm:$0xff] %v7088_v12 }
  0x52   : > { %10926 = vst [vmem:[#allocation45_spill] sm:$0xff] %v7090_v29 }
  0x5a   : > { %6142 = vmatmul.msk.bf16.gmra.mxu0 %vm450_vm4, %v6480_v30  ;;  %6151 = vmatmul.msk.bf16.gmra.mxu3 %vm450_vm4, %v6489_v40  ;;  %v4437_v30 = vsel %vm6795_vm3, %v4321_v42, 4286644096  ;;  %v4375_v40 = vrot.slane %v4373_v21, 7 }
  0x5b   : > { %v4470_v11 = vunpack.c.l.bf16 %v4437_v30 }
  0x5c   : > { %v4378_v31 = vor.u32 %v4376_v38, %v4375_v40  ;;  %v4446_v2 = vsel %vm6795_vm3, %v4375_v40, 4286644096 }
  0x5d   : > { %v4518_v43 = vmax.f32 %v7042_v44, %v4470_v11  ;;  %v7093_v5 = vmax.f32 %v4515_v17, %v4470_v11  ;;  %v7097_v21 = vunpack.c.l.bf16 %v4446_v2 }
  0x5e   : > { %v4429_v42 = vsel %vm6795_vm3, 4286644096, %v4378_v31 }
  0x5f   : > { %10927 = vst [vmem:[#allocation46_spill] sm:$0xff] %v7093_v5  ;;  %v4495_v30 = vunpack.c.l.bf16 %v4429_v42  ;;  %v4496_v40 = vunpack.c.h.bf16 %v4429_v42  ;;  %v7106_v44 = vmax.f32 %v4542_v35, %v7097_v21  ;;  %v4325_v42 = vshrl.u32 %v6483_v13, 16 }
  0x60   : > { %10928 = vst [vmem:[#allocation47_spill] sm:$0xff] %v7097_v21  ;;  %v4328_v35 = vshll.u32 %v6483_v13, 16 }
  0x61   : > { %10929 = vst [vmem:[#allocation48_spill] sm:$0xff] %v7106_v44  ;;  %v7109_v17 = vmax.f32 %v7068_v8, %v4495_v30  ;;  %v7111_v31 = vmax.f32 %v4540_v14, %v4495_v30  ;;  %v7114_v2 = vmax.f32 %v7070_v49, %v4496_v40  ;;  %v7116_v16 = vmax.f32 %v4541_v45, %v4496_v40 }
  0x62   : > { %v4327_v32 = vrot.slane %v4325_v42, 7 }
  0x63   : > { %10930 = vst [vmem:[#allocation49_spill] sm:$0xff] %v7109_v17 }
  0x64   : > { %10931 = vst [vmem:[#allocation50_spill] sm:$0xff] %v7111_v31  ;;  %v4330_v38 = vor.u32 %v4328_v35, %v4327_v32  ;;  %v4438_v14 = vsel %vm6795_vm3, %v4327_v32, 4286644096  ;;  %v6484_v32 = vld [vmem:[%s6802_s27 + $0x40] sm:$0xff]  ;;  %s6686_s27 = smov 16  }
  0x65   : > { %10932 = vst [vmem:[#allocation51_spill] sm:$0xff] %v7114_v2  ;;  %v4473_v30 = vunpack.c.l.bf16 %v4438_v14  ;;  %v4331_v35 = vshrl.u32 %v6484_v32, 16 }
  0x66   : > { %10933 = vst [vmem:[#allocation52_spill] sm:$0xff] %v7116_v16  ;;  %v4421_v2 = vsel %vm6795_vm3, 4286644096, %v4330_v38  ;;  %v4334_v38 = vshll.u32 %v6484_v32, 16 }
  0x67   : > { %v7126_v45 = vunpack.c.l.bf16 %v4421_v2  ;;  %v7128_v40 = vunpack.c.h.bf16 %v4421_v2  ;;  %v4521_v17 = vmax.f32 %v4470_v11, %v4473_v30  ;;  %v4333_v14 = vrot.slane %v4331_v35, 7 }
  0x69   : > { %10934 = vst [vmem:[#allocation53_spill] sm:$0xff] %v7126_v45  ;;  %v4336_v21 = vor.u32 %v4334_v38, %v4333_v14  ;;  %v4439_v11 = vsel %vm6795_vm3, %v4333_v14, 4286644096 }
  0x6a   : > { %6143 = vmatmul.msk.bf16.gmra.mxu0 %vm450_vm4, %v7032_v28  ;;  %6152 = vmatmul.msk.bf16.gmra.mxu3 %vm450_vm4, %v6490_v25  ;;  %10935 = vst [vmem:[#allocation54_spill] sm:$0xff] %v7128_v40  ;;  %v7130_v28 = vmax.f32 %v4518_v43, %v4473_v30  ;;  %v4476_v43 = vunpack.c.l.bf16 %v4439_v11 }
  0x6b   : > { %v4422_v2 = vsel %vm6795_vm3, 4286644096, %v4336_v21 }
  0x6c   : > { %10936 = vst [vmem:[#allocation55_spill] sm:$0xff] %v7130_v28  ;;  %v7144_v25 = vunpack.c.l.bf16 %v4422_v2  ;;  %v7146_v42 = vunpack.c.h.bf16 %v4422_v2  ;;  %v7149_v62 = vmax.f32 %v4521_v17, %v4476_v43  ;;  %v7168_v17 = vld [vmem:[%s10729_s2] ss:$0 sm:$0xff] }
  0x6e   : > { %10937 = vst [vmem:[#allocation56_spill] sm:$0xff] %v7144_v25 }
  0x6f   : > { %10938 = vst [vmem:[#allocation57_spill] sm:$0xff] %v7146_v42 }
  0x70   : > { %10939 = vst [vmem:[#allocation58_spill] sm:$0xff] %v7149_v62 }
  0x7a   : > { %6144 = vmatmul.msk.bf16.gmra.mxu0 %vm450_vm4, %v6482_v33  ;;  %6153 = vmatmul.msk.bf16.gmra.mxu3 %vm450_vm4, %v6491_v9  ;;  %v4524_v33 = vmax.f32 %v4473_v30, %v4476_v43  ;;  %v4527_v9 = vmax.f32 %v4476_v43, %v6889_v1 }
  0x7c   : > { %v7160_v14 = vmax.f32 %v4524_v33, %v6889_v1  ;;  %v7163_v30 = vmax.f32 %v4527_v9, %v6892_v3 }
  0x7e   : > { %10940 = vst [vmem:[#allocation59_spill] sm:$0xff] %v7160_v14 }
  0x7f   : > { %10941 = vst [vmem:[#allocation60_spill] sm:$0xff] %v7163_v30 }
  0x8a   : > { %6145 = vmatmul.msk.bf16.gmra.mxu0 %vm450_vm4, %v6483_v13 }
  0x97   : > { %v512_v11 = vpop.f32.mrf.mxu0 }
  0x98   : > { %v513_v43 = vadd.f32 %v7168_v17, %v512_v11 }
  0x9a   : > { %6146 = vmatmul.msk.bf16.gmra.mxu0 %vm450_vm4, %v6484_v32  ;;  %v7172_v13 = vmax.f32 %v513_v43, 0.0 }
  0x9c   : > { %10942 = vst [vmem:[#allocation61_spill] sm:$0xff] %v7172_v13  ;;  %v624_v3 = vpack.c.bf16 %v7172_v13, %v7172_v13 }
  0x9d   : > { %v557_v2 = vpop.f32.mrf.mxu3 }
  0x9e   : > { %v688_v35 = vunpack.c.l.b16 %v624_v3  ;;  %v558_v32 = vadd.f32 %v7168_v17, %v557_v2 }
  0x9f   : > { %v514_v21 = vpop.f32.mrf.mxu0 }
  0xa0   : > { %v515_v1 = vadd.f32 %v7168_v17, %v514_v21  ;;  %v7184_v21 = vmax.f32 %v558_v32, 0.0 }
  0xa2   : > { %v7177_v33 = vmax.f32 %v515_v1, 0.0  ;;  %10944 = vst [vmem:[#allocation63_spill] sm:$0xff] %v7184_v21 }
  0xa4   : > { %10943 = vst [vmem:[#allocation62_spill] sm:$0xff] %v7177_v33  ;;  %v625_v9 = vpack.c.bf16 %v7177_v33, %v7177_v33 }
  0xa5   : > { %v559_v38 = vpop.f32.mrf.mxu3 }
  0xa6   : > { %v689_v16 = vunpack.c.l.b16 %v625_v9  ;;  %v560_v43 = vadd.f32 %v7168_v17, %v559_v38  ;;  %v642_v9 = vpack.c.bf16 %v7184_v21, %v7184_v21 }
  0xa7   : > { %v517_v11 = vpop.f32.mrf.mxu0 }
  0xa8   : > { %v720_v31 = vpack.c.b16 %v689_v16, %v688_v35  ;;  %v7186_v13 = vmax.f32 %v560_v43, 0.0  ;;  %v518_v44 = vadd.f32 %v7168_v17, %v517_v11  ;;  %v706_v11 = vunpack.c.l.b16 %v642_v9 }
  0xaa   : > { %736 = vrot.lane.b32.xlu0 %v720_v31, %s6682_s14  ;;  %10945 = vst [vmem:[#allocation64_spill] sm:$0xff] %v7186_v13  ;;  %v643_v38 = vpack.c.bf16 %v7186_v13, %v7186_v13  ;;  %v7195_v35 = vmax.f32 %v518_v44, 0.0 }
  0xac   : > { %10946 = vst [vmem:[#allocation65_spill] sm:$0xff] %v7195_v35  ;;  %v707_v43 = vunpack.c.l.b16 %v643_v38  ;;  %v626_v21 = vpack.c.bf16 %v7195_v35, %v7195_v35 }
  0xad   : > { %v562_v1 = vpop.f32.mrf.mxu3 }
  0xae   : > { %v563_v33 = vadd.f32 %v7168_v17, %v562_v1  ;;  %v690_v9 = vunpack.c.l.b16 %v626_v21 }
  0xaf   : > { %v519_v3 = vpop.f32.mrf.mxu0 }
  0xb0   : > { %v520_v16 = vadd.f32 %v7168_v17, %v519_v3  ;;  %v7200_v32 = vmax.f32 %v563_v33, 0.0 }
  0xb2   : > { %v7197_v2 = vmax.f32 %v520_v16, 0.0  ;;  %2164 = vrot.lane.b32.xlu0 %v720_v31, %s6683_s16  ;;  %10948 = vst [vmem:[#allocation67_spill] sm:$0xff] %v7200_v32  ;;  %v644_v44 = vpack.c.bf16 %v7200_v32, %v7200_v32  ;;  %v7210_v31 = vpack.c.b16 %v707_v43, %v706_v11 }
  0xb4   : > { %10947 = vst [vmem:[#allocation66_spill] sm:$0xff] %v7197_v2  ;;  %v627_v13 = vpack.c.bf16 %v7197_v2, %v7197_v2  ;;  %v708_v35 = vunpack.c.l.b16 %v644_v44 }
  0xb5   : > { %v564_v1 = vpop.f32.mrf.mxu3  ;;  %10949 = vst [vmem:[#allocation68_spill] sm:$0xff] %v7210_v31 }
  0xb6   : > { %v565_v3 = vadd.f32 %v7168_v17, %v564_v1  ;;  %v691_v38 = vunpack.c.l.b16 %v627_v13 }
  0xb7   : > { %v522_v16 = vpop.f32.mrf.mxu0 }
  0xb8   : > { %v523_v49 = vadd.f32 %v7168_v17, %v522_v16  ;;  %v7212_v33 = vmax.f32 %v565_v3, 0.0  ;;  %v721_v15 = vpack.c.b16 %v691_v38, %v690_v9 }
  0xba   : > { %10950 = vst [vmem:[#allocation69_spill] sm:$0xff] %v7212_v33  ;;  %754 = vrot.lane.b32.xlu0 %v7210_v31, %s6682_s14  ;;  %v645_v2 = vpack.c.bf16 %v7212_v33, %v7212_v33  ;;  %v7218_v8 = vmax.f32 %v523_v49, 0.0 }
  0xbc   : > { %10951 = vst [vmem:[#allocation70_spill] sm:$0xff] %v7218_v8  ;;  %v709_v32 = vunpack.c.l.b16 %v645_v2  ;;  %v628_v13 = vpack.c.bf16 %v7218_v8, %v7218_v8 }
  0xbd   : > { %v567_v1 = vpop.f32.mrf.mxu3 }
  0xbe   : > { %v7220_v48 = vpack.c.b16 %v709_v32, %v708_v35  ;;  %v568_v43 = vadd.f32 %v7168_v17, %v567_v1  ;;  %v692_v2 = vunpack.c.l.b16 %v628_v13 }
  0xbf   : > { %v524_v11 = vpop.f32.mrf.mxu0 }
  0xc0   : > { %10952 = vst [vmem:[#allocation71_spill] sm:$0xff] %v7220_v48  ;;  %v525_v21 = vadd.f32 %v7168_v17, %v524_v11  ;;  %756 = vrot.lane.b32.xlu1 %v7220_v48, %s6682_s14  ;;  %v7231_v49 = vmax.f32 %v568_v43, 0.0 }
  0xc2   : > { %v7228_v3 = vmax.f32 %v525_v21, 0.0  ;;  %738 = vrot.lane.b32.xlu0 %v721_v15, %s6682_s14  ;;  %10954 = vst [vmem:[#allocation73_spill] sm:$0xff] %v7231_v49  ;;  %v646_v38 = vpack.c.bf16 %v7231_v49, %v7231_v49 }
  0xc4   : > { %10953 = vst [vmem:[#allocation72_spill] sm:$0xff] %v7228_v3  ;;  %v629_v35 = vpack.c.bf16 %v7228_v3, %v7228_v3  ;;  %v710_v13 = vunpack.c.l.b16 %v646_v38 }
  0xc5   : > { %v569_v32 = vpop.f32.mrf.mxu3 }
  0xc6   : > { %v693_v44 = vunpack.c.l.b16 %v629_v35  ;;  %v570_v16 = vadd.f32 %v7168_v17, %v569_v32 }
  0xc7   : > { %v527_v9 = vpop.f32.mrf.mxu0 }
  0xc8   : > { %v528_v1 = vadd.f32 %v7168_v17, %v527_v9  ;;  %v722_v11 = vpack.c.b16 %v693_v44, %v692_v2  ;;  %v7239_v21 = vmax.f32 %v570_v16, 0.0 }
  0xca   : > { %10955 = vst [vmem:[#allocation74_spill] sm:$0xff] %v7239_v21  ;;  %2166 = vrot.lane.b32.xlu0 %v721_v15, %s6683_s16  ;;  %740 = vrot.lane.b32.xlu1 %v722_v11, %s6682_s14  ;;  %v647_v43 = vpack.c.bf16 %v7239_v21, %v7239_v21  ;;  %v7246_v35 = vmax.f32 %v528_v1, 0.0 }
  0xcb   : > { %2168 = vrot.lane.b32.xlu2 %v722_v11, %s6683_s16 }
  0xcc   : > { %10956 = vst [vmem:[#allocation75_spill] sm:$0xff] %v7246_v35  ;;  %v711_v32 = vunpack.c.l.b16 %v647_v43  ;;  %v630_v15 = vpack.c.bf16 %v7246_v35, %v7246_v35 }
  0xcd   : > { %v572_v33 = vpop.f32.mrf.mxu3 }
  0xce   : > { %v573_v49 = vadd.f32 %v7168_v17, %v572_v33  ;;  %v7249_v2 = vpack.c.b16 %v711_v32, %v710_v13  ;;  %v694_v38 = vunpack.c.l.b16 %v630_v15 }
  0xcf   : > { %v529_v9 = vpop.f32.mrf.mxu0 }
  0xd0   : > { %10957 = vst [vmem:[#allocation76_spill] sm:$0xff] %v7249_v2  ;;  %v530_v44 = vadd.f32 %v7168_v17, %v529_v9  ;;  %v7256_v21 = vmax.f32 %v573_v49, 0.0 }
  0xd2   : > { %v7254_v16 = vmax.f32 %v530_v44, 0.0  ;;  %10959 = vst [vmem:[#allocation78_spill] sm:$0xff] %v7256_v21  ;;  %v648_v43 = vpack.c.bf16 %v7256_v21, %v7256_v21 }
  0xd3   : > { %758 = vrot.lane.b32.xlu2 %v7249_v2, %s6682_s14 }
  0xd4   : > { %10958 = vst [vmem:[#allocation77_spill] sm:$0xff] %v7254_v16  ;;  %v631_v1 = vpack.c.bf16 %v7254_v16, %v7254_v16  ;;  %v712_v35 = vunpack.c.l.b16 %v648_v43 }
  0xd5   : > { %v574_v33 = vpop.f32.mrf.mxu3 }
  0xd6   : > { %v695_v11 = vunpack.c.l.b16 %v631_v1  ;;  %v575_v13 = vadd.f32 %v7168_v17, %v574_v33 }
  0xd7   : > { %v532_v32 = vpop.f32.mrf.mxu0 }
  0xd8   : > { %v533_v9 = vadd.f32 %v7168_v17, %v532_v32  ;;  %v7266_v44 = vmax.f32 %v575_v13, 0.0  ;;  %v7268_v49 = vpack.c.b16 %v695_v11, %v694_v38 }
  0xda   : > { %10960 = vst [vmem:[#allocation79_spill] sm:$0xff] %v7266_v44  ;;  %v649_v15 = vpack.c.bf16 %v7266_v44, %v7266_v44  ;;  %742 = vrot.lane.b32.xlu1 %v7268_v49, %s6682_s14  ;;  %v7274_v1 = vmax.f32 %v533_v9, 0.0 }
  0xdc   : > { %10961 = vst [vmem:[#allocation80_spill] sm:$0xff] %v7274_v1  ;;  %v713_v3 = vunpack.c.l.b16 %v649_v15  ;;  %v632_v38 = vpack.c.bf16 %v7274_v1, %v7274_v1 }
  0xdd   : > { %v577_v21 = vpop.f32.mrf.mxu3 }
  0xde   : > { %v578_v33 = vadd.f32 %v7168_v17, %v577_v21  ;;  %v7277_v16 = vpack.c.b16 %v713_v3, %v712_v35  ;;  %v696_v9 = vunpack.c.l.b16 %v632_v38 }
  0xdf   : > { %v534_v32 = vpop.f32.mrf.mxu0 }
  0xe0   : > { %10962 = vst [vmem:[#allocation81_spill] sm:$0xff] %v7277_v16  ;;  %v535_v11 = vadd.f32 %v7168_v17, %v534_v32  ;;  %760 = vrot.lane.b32.xlu0 %v7277_v16, %s6682_s14  ;;  %v7286_v13 = vmax.f32 %v578_v33, 0.0 }
  0xe2   : > { %v7284_v43 = vmax.f32 %v535_v11, 0.0  ;;  %10964 = vst [vmem:[#allocation83_spill] sm:$0xff] %v7286_v13  ;;  %v650_v35 = vpack.c.bf16 %v7286_v13, %v7286_v13 }
  0xe4   : > { %10963 = vst [vmem:[#allocation82_spill] sm:$0xff] %v7284_v43  ;;  %v633_v15 = vpack.c.bf16 %v7284_v43, %v7284_v43  ;;  %v714_v33 = vunpack.c.l.b16 %v650_v35 }
  0xe5   : > { %v579_v21 = vpop.f32.mrf.mxu3 }
  0xe6   : > { %v697_v3 = vunpack.c.l.b16 %v633_v15  ;;  %v580_v44 = vadd.f32 %v7168_v17, %v579_v21 }
  0xe7   : > { %v537_v1 = vpop.f32.mrf.mxu0 }
  0xe8   : > { %v538_v32 = vadd.f32 %v7168_v17, %v537_v1  ;;  %v7294_v8 = vmax.f32 %v580_v44, 0.0  ;;  %v7296_v11 = vpack.c.b16 %v697_v3, %v696_v9 }
  0xea   : > { %10965 = vst [vmem:[#allocation84_spill] sm:$0xff] %v7294_v8  ;;  %v651_v38 = vpack.c.bf16 %v7294_v8, %v7294_v8  ;;  %744 = vrot.lane.b32.xlu2 %v7296_v11, %s6682_s14  ;;  %v7302_v15 = vmax.f32 %v538_v32, 0.0 }
  0xec   : > { %10966 = vst [vmem:[#allocation85_spill] sm:$0xff] %v7302_v15  ;;  %v715_v43 = vunpack.c.l.b16 %v651_v38  ;;  %v634_v44 = vpack.c.bf16 %v7302_v15, %v7302_v15 }
  0xed   : > { %v582_v13 = vpop.f32.mrf.mxu3 }
  0xee   : > { %v583_v21 = vadd.f32 %v7168_v17, %v582_v13  ;;  %v7305_v47 = vpack.c.b16 %v715_v43, %v714_v33  ;;  %v698_v32 = vunpack.c.l.b16 %v634_v44 }
  0xef   : > { %v539_v1 = vpop.f32.mrf.mxu0 }
  0xf0   : > { %10967 = vst [vmem:[#allocation86_spill] sm:$0xff] %v7305_v47  ;;  %v540_v9 = vadd.f32 %v7168_v17, %v539_v1  ;;  %762 = vrot.lane.b32.xlu1 %v7305_v47, %s6682_s14  ;;  %v7314_v35 = vmax.f32 %v583_v21, 0.0 }
  0xf2   : > { %v7312_v3 = vmax.f32 %v540_v9, 0.0  ;;  %10969 = vst [vmem:[#allocation88_spill] sm:$0xff] %v7314_v35  ;;  %v652_v33 = vpack.c.bf16 %v7314_v35, %v7314_v35 }
  0xf4   : > { %10968 = vst [vmem:[#allocation87_spill] sm:$0xff] %v7312_v3  ;;  %v635_v38 = vpack.c.bf16 %v7312_v3, %v7312_v3  ;;  %v716_v21 = vunpack.c.l.b16 %v652_v33 }
  0xf5   : > { %v584_v13 = vpop.f32.mrf.mxu3 }
  0xf6   : > { %v699_v43 = vunpack.c.l.b16 %v635_v38  ;;  %v585_v8 = vadd.f32 %v7168_v17, %v584_v13 }
  0xf7   : > { %v542_v15 = vpop.f32.mrf.mxu0 }
  0xf8   : > { %v543_v1 = vadd.f32 %v7168_v17, %v542_v15  ;;  %v7322_v55 = vmax.f32 %v585_v8, 0.0  ;;  %v7324_v9 = vpack.c.b16 %v699_v43, %v698_v32 }
  0xfa   : > { %10970 = vst [vmem:[#allocation89_spill] sm:$0xff] %v7322_v55  ;;  %v653_v44 = vpack.c.bf16 %v7322_v55, %v7322_v55  ;;  %746 = vrot.lane.b32.xlu2 %v7324_v9, %s6682_s14  ;;  %v7330_v38 = vmax.f32 %v543_v1, 0.0 }
  0xfc   : > { %10971 = vst [vmem:[#allocation90_spill] sm:$0xff] %v7330_v38  ;;  %v717_v3 = vunpack.c.l.b16 %v653_v44  ;;  %v636_v8 = vpack.c.bf16 %v7330_v38, %v7330_v38 }
  0xfd   : > { %v587_v35 = vpop.f32.mrf.mxu3 }
  0xfe   : > { %v588_v13 = vadd.f32 %v7168_v17, %v587_v35  ;;  %v7333_v20 = vpack.c.b16 %v717_v3, %v716_v21  ;;  %v700_v1 = vunpack.c.l.b16 %v636_v8 }
  0xff   : > { %v544_v15 = vpop.f32.mrf.mxu0 }
 0x100   : > { %10972 = vst [vmem:[#allocation91_spill] sm:$0xff] %v7333_v20  ;;  %v545_v32 = vadd.f32 %v7168_v17, %v544_v15  ;;  %v7340_v33 = vmax.f32 %v588_v13, 0.0 }
 0x102   : > { %v7338_v43 = vmax.f32 %v545_v32, 0.0  ;;  %10974 = vst [vmem:[#allocation93_spill] sm:$0xff] %v7340_v33  ;;  %764 = vrot.lane.b32.xlu2 %v7333_v20, %s6682_s14  ;;  %v654_v21 = vpack.c.bf16 %v7340_v33, %v7340_v33 }
 0x104   : > { %10973 = vst [vmem:[#allocation92_spill] sm:$0xff] %v7338_v43  ;;  %v637_v44 = vpack.c.bf16 %v7338_v43, %v7338_v43  ;;  %v718_v19 = vunpack.c.l.b16 %v654_v21 }
 0x105   : > { %v589_v35 = vpop.f32.mrf.mxu3 }
 0x106   : > { %v701_v3 = vunpack.c.l.b16 %v637_v44  ;;  %v590_v55 = vadd.f32 %v7168_v17, %v589_v35 }
 0x107   : > { %v547_v38 = vpop.f32.mrf.mxu0 }
 0x108   : > { %v548_v15 = vadd.f32 %v7168_v17, %v547_v38  ;;  %v7350_v32 = vmax.f32 %v590_v55, 0.0  ;;  %v7352_v13 = vpack.c.b16 %v701_v3, %v700_v1 }
 0x10a   : > { %10975 = vst [vmem:[#allocation94_spill] sm:$0xff] %v7350_v32  ;;  %v655_v8 = vpack.c.bf16 %v7350_v32, %v7350_v32  ;;  %748 = vrot.lane.b32.xlu0 %v7352_v13, %s6682_s14  ;;  %v7358_v44 = vmax.f32 %v548_v15, 0.0 }
 0x10c   : > { %10976 = vst [vmem:[#allocation95_spill] sm:$0xff] %v7358_v44  ;;  %v719_v43 = vunpack.c.l.b16 %v655_v8  ;;  %v638_v38 = vpack.c.bf16 %v7358_v44, %v7358_v44 }
 0x10e   : > { %v7360_v33 = vpack.c.b16 %v719_v43, %v718_v19  ;;  %v702_v3 = vunpack.c.l.b16 %v638_v38 }
 0x10f   : > { %v549_v35 = vpop.f32.mrf.mxu0 }
 0x110   : > { %10977 = vst [vmem:[#allocation96_spill] sm:$0xff] %v7360_v33  ;;  %v550_v55 = vadd.f32 %v7168_v17, %v549_v35 }
 0x112   : > { %v7365_v1 = vmax.f32 %v550_v55, 0.0  ;;  %766 = vrot.lane.b32.xlu0 %v7360_v33, %s6682_s14 }
 0x114   : > { %10978 = vst [vmem:[#allocation97_spill] sm:$0xff] %v7365_v1  ;;  %v639_v21 = vpack.c.bf16 %v7365_v1, %v7365_v1 }
 0x116   : > { %v703_v15 = vunpack.c.l.b16 %v639_v21 }
 0x117   : > { %v552_v32 = vpop.f32.mrf.mxu0 }
 0x118   : > { %v7371_v8 = vpack.c.b16 %v703_v15, %v702_v3  ;;  %v553_v19 = vadd.f32 %v7168_v17, %v552_v32 }
 0x11a   : > { %750 = vrot.lane.b32.xlu1 %v7371_v8, %s6682_s14  ;;  %v7376_v35 = vmax.f32 %v553_v19, 0.0 }
 0x11c   : > { %v737_v43 = vpop.permute.xlu0 %736  ;;  %10979 = vst [vmem:[#allocation98_spill] sm:$0xff] %v7376_v35  ;;  %v640_v38 = vpack.c.bf16 %v7376_v35, %v7376_v35 }
 0x11d   : > { %v776_v55 = vshrl.u32 %v737_v43, 16  ;;  %v779_v44 = vshll.u32 %v737_v43, 16 }
 0x11e   : > { %v704_v43 = vunpack.c.l.b16 %v640_v38 }
 0x11f   : > { %v778_v26 = vrot.slane %v776_v55, 7  ;;  %v554_v37 = vpop.f32.mrf.mxu0 }
 0x120   : > { %v555_v21 = vadd.f32 %v7168_v17, %v554_v37 }
 0x121   : > { %v7383_v3 = vsel %vm6795_vm3, %v778_v26, 0  ;;  %v781_v32 = vor.u32 %v779_v44, %v778_v26 }
 0x122   : > { %992 = vrot.lane.b32.xlu2 %v7383_v3, %s6684_s17  ;;  %v7387_v15 = vmax.f32 %v555_v21, 0.0 }
 0x123   : > { %v7391_v19 = vsel %vm6795_vm3, 0, %v781_v32 }
 0x124   : > { %10980 = vst [vmem:[#allocation99_spill] sm:$0xff] %v7387_v15  ;;  %990 = vrot.lane.b32.xlu1 %v7391_v19, %s6684_s17  ;;  %v7395_v37 = vpop.permute.xlu0 %2164  ;;  %v641_v17 = vpack.c.bf16 %v7387_v15, %v7387_v15 }
 0x126   : > { %v705_v26 = vunpack.c.l.b16 %v641_v17 }
 0x128   : > { %v7399_v44 = vpack.c.b16 %v705_v26, %v704_v43 }
 0x12a   : > { %752 = vrot.lane.b32.xlu2 %v7399_v44, %s6682_s14 }
 0x12c   : > { %v755_v55 = vpop.permute.xlu0 %754 }
 0x12d   : > { %v839_v21 = vshrl.u32 %v755_v55, 16  ;;  %v842_v1 = vshll.u32 %v755_v55, 16 }
 0x12f   : > { %v841_v32 = vrot.slane %v839_v21, 7 }
 0x131   : > { %v7405_v38 = vsel %vm6795_vm3, %v841_v32, 0  ;;  %v844_v35 = vor.u32 %v842_v1, %v841_v32 }
 0x132   : > { %1090 = vrot.lane.b32.xlu0 %v7405_v38, %s6683_s16  ;;  %v757_v36 = vpop.permute.xlu1 %756 }
 0x133   : > { %v7411_v43 = vsel %vm6795_vm3, 0, %v844_v35  ;;  %v846_v21 = vshrl.u32 %v757_v36, 16  ;;  %v849_v30 = vshll.u32 %v757_v36, 16 }
 0x134   : > { %1088 = vrot.lane.b32.xlu1 %v7411_v43, %s6683_s16  ;;  %v739_v17 = vpop.permute.xlu0 %738 }
 0x135   : > { %v783_v26 = vshrl.u32 %v739_v17, 16  ;;  %v786_v55 = vshll.u32 %v739_v17, 16  ;;  %v848_v39 = vrot.slane %v846_v21, 7 }
 0x137   : > { %v785_v15 = vrot.slane %v783_v26, 7  ;;  %v851_v26 = vor.u32 %v849_v30, %v848_v39 }
 0x139   : > { %v7417_v1 = vsel %vm6795_vm3, %v785_v15, 0  ;;  %v788_v32 = vor.u32 %v786_v55, %v785_v15  ;;  %v7431_v15 = vsel %vm6795_vm3, 0, %v851_v26  ;;  %v7433_v55 = vpop.permute.xlu2 %2168 }
 0x13a   : > { %1028 = vrot.lane.b32.xlu0 %v7405_v38, %s6684_s17 }
 0x13b   : > { %v7423_v35 = vsel %vm6795_vm3, 0, %v788_v32 }
 0x13c   : > { %996 = vrot.lane.b32.xlu1 %v7417_v1, %s6684_s17  ;;  %1056 = vrot.lane.b32.xlu2 %v7423_v35, %s6683_s16  ;;  %v741_v17 = vpop.permute.xlu1 %740 }
 0x13d   : > { %v790_v36 = vshrl.u32 %v741_v17, 16  ;;  %v793_v0 = vshll.u32 %v741_v17, 16  ;;  %v7449_v17 = vsel %vm6795_vm3, %v848_v39, 0 }
 0x13f   : > { %v792_v21 = vrot.slane %v790_v36, 7 }
 0x141   : > { %v795_v32 = vor.u32 %v793_v0, %v792_v21  ;;  %v759_v36 = vpop.permute.xlu2 %758 }
 0x142   : > { %1026 = vrot.lane.b32.xlu0 %v7411_v43, %s6684_s17  ;;  %v853_v26 = vshrl.u32 %v759_v36, 16  ;;  %v856_v0 = vshll.u32 %v759_v36, 16  ;;  %v7475_v36 = vpop.permute.xlu0 %2166 }
 0x143   : > { %v7443_v30 = vsel %vm6795_vm3, 0, %v795_v32  ;;  %v7459_v32 = vsel %vm6795_vm3, %v792_v21, 0 }
 0x144   : > { %1058 = vrot.lane.b32.xlu1 %v7417_v1, %s6683_s16  ;;  %1092 = vrot.lane.b32.xlu2 %v7431_v15, %s6683_s16  ;;  %v855_v63 = vrot.slane %v853_v26, 7 }
 0x146   : > { %v858_v39 = vor.u32 %v856_v0, %v855_v63  ;;  %v7469_v61 = vsel %vm6795_vm3, %v855_v63, 0 }
 0x148   : > { %v7473_v21 = vsel %vm6795_vm3, 0, %v858_v39 }
 0x149   : > { %v745_v62 = vpop.permute.xlu2 %744 }
 0x14a   : > { %994 = vrot.lane.b32.xlu0 %v7423_v35, %s6684_s17  ;;  %v804_v45 = vshrl.u32 %v745_v62, 16 }
 0x14c   : > { %1094 = vrot.lane.b32.xlu1 %v7449_v17, %s6683_s16  ;;  %998 = vrot.lane.b32.xlu2 %v7443_v30, %s6684_s17  ;;  %v743_v14 = vpop.permute.xlu1 %742 }
 0x14d   : > { %v797_v26 = vshrl.u32 %v743_v14, 16  ;;  %v800_v46 = vshll.u32 %v743_v14, 16 }
 0x14f   : > { %v799_v0 = vrot.slane %v797_v26, 7 }
 0x151   : > { %v7485_v63 = vsel %vm6795_vm3, %v799_v0, 0  ;;  %v802_v25 = vor.u32 %v800_v46, %v799_v0  ;;  %v807_v46 = vshll.u32 %v745_v62, 16 }
 0x152   : > { %1032 = vrot.lane.b32.xlu0 %v7449_v17, %s6684_s17  ;;  %v761_v39 = vpop.permute.xlu0 %760 }
 0x153   : > { %v860_v42 = vshrl.u32 %v761_v39, 16  ;;  %v863_v26 = vshll.u32 %v761_v39, 16  ;;  %v7495_v14 = vsel %vm6795_vm3, 0, %v802_v25 }
 0x154   : > { %1062 = vrot.lane.b32.xlu1 %v7459_v32, %s6683_s16  ;;  %1060 = vrot.lane.b32.xlu2 %v7443_v30, %s6683_s16  ;;  %v747_v29 = vpop.permute.xlu2 %746 }
 0x155   : > { %v862_v40 = vrot.slane %v860_v42, 7  ;;  %v806_v42 = vrot.slane %v804_v45, 7 }
 0x157   : > { %v865_v28 = vor.u32 %v863_v26, %v862_v40  ;;  %v7505_v0 = vsel %vm6795_vm3, %v862_v40, 0  ;;  %v809_v12 = vor.u32 %v807_v46, %v806_v42  ;;  %v7519_v5 = vsel %vm6795_vm3, %v806_v42, 0  ;;  %v6509_v42 = vld [vmem:[%s10730_s3 + $0x88] sm:$0xff] }
 0x158   : > { %v811_v46 = vshrl.u32 %v747_v29, 16  ;;  %1977 = vmatpush.bf16.msrb.mxu3 %v6509_v42  ;;  %v6507_v42 = vld [vmem:[%s10730_s3 + $0x78] sm:$0xff] }
 0x159   : > { %v7509_v25 = vsel %vm6795_vm3, 0, %v865_v28  ;;  %v7523_v45 = vsel %vm6795_vm3, 0, %v809_v12 }
 0x15a   : > { %1030 = vrot.lane.b32.xlu0 %v7431_v15, %s6684_s17 }
 0x15c   : > { %1098 = vrot.lane.b32.xlu1 %v7469_v61, %s6683_s16  ;;  %1096 = vrot.lane.b32.xlu2 %v7473_v21, %s6683_s16  ;;  %v765_v28 = vpop.permute.xlu2 %764 }
 0x15d   : > { %v877_v7 = vshll.u32 %v765_v28, 16 }
 0x162   : > { %1000 = vrot.lane.b32.xlu0 %v7459_v32, %s6684_s17  ;;  %v763_v39 = vpop.permute.xlu1 %762 }
 0x163   : > { %v867_v26 = vshrl.u32 %v763_v39, 16  ;;  %v870_v40 = vshll.u32 %v763_v39, 16  ;;  %v813_v39 = vrot.slane %v811_v46, 7  ;;  %v6502_v46 = vld [vmem:[%s10730_s3 + $0x50] sm:$0xff] }
 0x164   : > { %1066 = vrot.lane.b32.xlu1 %v7485_v63, %s6683_s16  ;;  %1004 = vrot.lane.b32.xlu2 %v7485_v63, %s6684_s17 }
 0x165   : > { %v869_v62 = vrot.slane %v867_v26, 7  ;;  %v814_v26 = vshll.u32 %v747_v29, 16  ;;  %v6508_v29 = vld [vmem:[%s10730_s3 + $0x80] sm:$0xff]  ;;  %v7588_v34 = vsel %vm6795_vm3, %v813_v39, 0 }
 0x166   : > { %1978 = vmatpush.bf16.msrb.mxu3 %v6508_v29  ;;  %v6501_v29 = vld [vmem:[%s10730_s3 + $0x48] sm:$0xff] }
 0x167   : > { %v872_v41 = vor.u32 %v870_v40, %v869_v62  ;;  %v6503_v40 = vld [vmem:[%s10730_s3 + $0x58] sm:$0xff]  ;;  %v7560_v24 = vsel %vm6795_vm3, %v869_v62, 0  ;;  %v6506_v62 = vld [vmem:[%s10730_s3 + $0x70] sm:$0xff] }
 0x168   : > { %1554 = vmatpush.bf16.msra.mxu1 %v6503_v40  ;;  %6537 = vmatpush.bf16.msra.mxu2 %v6503_v40  ;;  %10982 = vst [vmem:[#allocation101_spill] sm:$0xff] %v7560_v24 }
 0x169   : > { %v7536_v12 = vsel %vm6795_vm3, 0, %v872_v41  ;;  %v816_v41 = vor.u32 %v814_v26, %v813_v39  ;;  %v6504_v39 = vld [vmem:[%s10730_s3 + $0x60] sm:$0xff] }
 0x16a   : > { %1036 = vrot.lane.b32.xlu0 %v7469_v61, %s6684_s17  ;;  %10981 = vst [vmem:[#allocation100_spill] sm:$0xff] %v7536_v12  ;;  %1979 = vmatpush.bf16.msrb.mxu3 %v6507_v42  ;;  %v6505_v42 = vld [vmem:[%s10730_s3 + $0x68] sm:$0xff] }
 0x16b   : > { %v7564_v26 = vsel %vm6795_vm3, 0, %v816_v41  ;;  %v874_v41 = vshrl.u32 %v765_v28, 16 }
 0x16c   : > { %1002 = vrot.lane.b32.xlu1 %v7495_v14, %s6684_s17  ;;  %1064 = vrot.lane.b32.xlu2 %v7495_v14, %s6683_s16 }
 0x16d   : > { %1555 = vmatpush.bf16.msra.mxu1 %v6502_v46  ;;  %6538 = vmatpush.bf16.msra.mxu2 %v6502_v46  ;;  %v6500_v46 = vld [vmem:[%s10730_s3 + $0x40] sm:$0xff]  ;;  %v876_v56 = vrot.slane %v874_v41, 7  ;;  %v6498_v41 = vld [vmem:[%s10730_s3 + $0x30] sm:$0xff] }
 0x16e   : > { %1980 = vmatpush.bf16.msrb.mxu3 %v6506_v62 }
 0x16f   : > { %v879_v62 = vor.u32 %v877_v7, %v876_v56 }
 0x171   : > { %1556 = vmatpush.bf16.msra.mxu1 %v6501_v29  ;;  %6539 = vmatpush.bf16.msra.mxu2 %v6501_v29  ;;  %v6499_v29 = vld [vmem:[%s10730_s3 + $0x38] sm:$0xff] }
 0x172   : > { %1034 = vrot.lane.b32.xlu0 %v7473_v21, %s6684_s17  ;;  %1981 = vmatpush.bf16.msrb.mxu3 %v6505_v42  ;;  %v7613_v42 = vsel %vm6795_vm3, 0, %v879_v62 }
 0x173   : > { %10984 = vst [vmem:[#allocation103_spill] sm:$0xff] %v7613_v42 }
 0x174   : > { %1102 = vrot.lane.b32.xlu1 %v7505_v0, %s6683_s16  ;;  %1100 = vrot.lane.b32.xlu2 %v7509_v25, %s6683_s16 }
 0x175   : > { %1557 = vmatpush.bf16.msra.mxu1 %v6500_v46  ;;  %6540 = vmatpush.bf16.msra.mxu2 %v6500_v46  ;;  %v7609_v46 = vsel %vm6795_vm3, %v876_v56, 0 }
 0x176   : > { %1982 = vmatpush.bf16.msrb.mxu3 %v6504_v39  ;;  %10983 = vst [vmem:[#allocation102_spill] sm:$0xff] %v7609_v46 }
 0x179   : > { %1558 = vmatpush.bf16.msra.mxu1 %v6499_v29  ;;  %6541 = vmatpush.bf16.msra.mxu2 %v6499_v29 }
 0x17a   : > { %1040 = vrot.lane.b32.xlu0 %v7505_v0, %s6684_s17 }
 0x17c   : > { %1008 = vrot.lane.b32.xlu1 %v7519_v5, %s6684_s17  ;;  %1068 = vrot.lane.b32.xlu2 %v7523_v45, %s6683_s16  ;;  %v7538_v6 = vpop.permute.xlu2 %992  ;;  %v749_v18 = vpop.permute.xlu0 %748 }
 0x17d   : > { %1559 = vmatpush.bf16.msra.mxu1 %v6498_v41  ;;  %6542 = vmatpush.bf16.msra.mxu2 %v6498_v41  ;;  %v818_v29 = vshrl.u32 %v749_v18, 16  ;;  %v821_v56 = vshll.u32 %v749_v18, 16  ;;  %v7638_v18 = vrot.slane %v6685_v23, 7 }
 0x17f   : > { %v820_v51 = vrot.slane %v818_v29, 7  ;;  %v7644_v10 = vsel %vm6795_vm3, 0, %v7638_v18 }
 0x181   : > { %v7625_v62 = vsel %vm6795_vm3, %v820_v51, 0  ;;  %v823_v57 = vor.u32 %v821_v56, %v820_v51 }
 0x182   : > { %1038 = vrot.lane.b32.xlu0 %v7509_v25, %s6684_s17  ;;  %10985 = vst [vmem:[#allocation104_spill] sm:$0xff] %v7625_v62 }
 0x183   : > { %v7650_v54 = vsel %vm6795_vm3, 0, %v823_v57 }
 0x184   : > { %1070 = vrot.lane.b32.xlu1 %v7519_v5, %s6683_s16  ;;  %1104 = vrot.lane.b32.xlu2 %v7536_v12, %s6683_s16  ;;  %v7570_v40 = vpop.permute.xlu2 %752  ;;  %v767_v7 = vpop.permute.xlu0 %766  ;;  %10986 = vst [vmem:[#allocation105_spill] sm:$0xff] %v7650_v54 }
 0x185   : > { %v832_v50 = vshrl.u32 %v7570_v40, 16  ;;  %v835_v27 = vshll.u32 %v7570_v40, 16  ;;  %v884_v33 = vshll.u32 %v767_v7, 16 }
 0x187   : > { %v834_v22 = vrot.slane %v832_v50, 7  ;;  %v881_v50 = vshrl.u32 %v767_v7, 16 }
 0x189   : > { %v837_v40 = vor.u32 %v835_v27, %v834_v22  ;;  %v883_v20 = vrot.slane %v881_v50, 7  ;;  %v941_v27 = vsel %vm6795_vm3, %v7638_v18, 0 }
 0x18a   : > { %1006 = vrot.lane.b32.xlu0 %v7523_v45, %s6684_s17  ;;  %v1126_v50 = vsel %vm1120_vm6, %v941_v27, %v7538_v6 }
 0x18c   : > { %1106 = vrot.lane.b32.xlu1 %v7560_v24, %s6683_s16  ;;  %1010 = vrot.lane.b32.xlu2 %v7564_v26, %s6684_s17  ;;  %v7590_v52 = vpop.permute.xlu1 %750 }
 0x18d   : > { %v825_v59 = vshrl.u32 %v7590_v52, 16  ;;  %v828_v2 = vshll.u32 %v7590_v52, 16 }
 0x18f   : > { %v827_v16 = vrot.slane %v825_v59, 7 }
 0x191   : > { %v830_v31 = vor.u32 %v828_v2, %v827_v16 }
 0x192   : > { %1044 = vrot.lane.b32.xlu0 %v7560_v24, %s6684_s17 }
 0x193   : > { %v7699_v2 = vsel %vm6795_vm3, 0, %v830_v31 }
 0x194   : > { %1074 = vrot.lane.b32.xlu1 %v7588_v34, %s6683_s16  ;;  %1072 = vrot.lane.b32.xlu2 %v7564_v26, %s6683_s16 }
 0x196   : > { %v1057_v28 = vpop.permute.xlu2 %1056  ;;  %v991_v39 = vpop.permute.xlu1 %990 }
 0x197   : > { %v1123_v23 = vsel %vm1120_vm6, %v7644_v10, %v991_v39  ;;  %v7666_v39 = vsel %vm6795_vm3, 0, %v837_v40 }
 0x198   : > { %v7662_v57 = vsel %vm1217_vm7, %v1123_v23, %v1057_v28  ;;  %v7677_v28 = vsel %vm6795_vm3, %v883_v20, 0  ;;  %v886_v23 = vor.u32 %v884_v33, %v883_v20 }
 0x199   : > { %10987 = vst [vmem:[#allocation106_spill] sm:$0xff] %v7662_v57  ;;  %v1297_v47 = vshll.u32 %v7662_v57, 16  ;;  %v1295_v52 = vshrl.u32 %v7662_v57, 16 }
 0x19a   : > { %1042 = vrot.lane.b32.xlu0 %v7536_v12, %s6684_s17  ;;  %v940_v20 = vsel %vm6795_vm3, 0, %v886_v23 }
 0x19b   : > { %v1299_v40 = vrot.slane %v1297_v47, 1 }
 0x19c   : > { %1110 = vrot.lane.b32.xlu1 %v7609_v46, %s6683_s16  ;;  %1108 = vrot.lane.b32.xlu2 %v7613_v42, %s6683_s16 }
 0x19d   : > { %v1300_v47 = vor.u32 %v1299_v40, %v1295_v52  ;;  %v7720_v40 = vsel %vm6795_vm3, %v834_v22, 0 }
 0x19e   : > { %v7619_v53 = vpop.permute.xlu2 %1092 }
 0x1a2   : > { %1012 = vrot.lane.b32.xlu0 %v7588_v34, %s6684_s17 }
 0x1a4   : > { %1046 = vrot.lane.b32.xlu1 %v7613_v42, %s6684_s17  ;;  %1016 = vrot.lane.b32.xlu2 %v7625_v62, %s6684_s17  ;;  %v7631_v41 = vpop.permute.xlu0 %1090 }
 0x1a6   : > { %v7634_v58 = vpop.permute.xlu1 %1088  ;;  %v7636_v29 = vpop.permute.xlu2 %998 }
 0x1aa   : > { %1048 = vrot.lane.b32.xlu0 %v7609_v46, %s6684_s17 }
 0x1ac   : > { %1078 = vrot.lane.b32.xlu2 %v7625_v62, %s6683_s16  ;;  %1014 = vrot.lane.b32.xlu1 %v7650_v54, %s6684_s17  ;;  %v7658_v51 = vpop.permute.xlu0 %1028 }
 0x1ae   : > { %v997_v56 = vpop.permute.xlu1 %996  ;;  %v1061_v60 = vpop.permute.xlu2 %1060 }
 0x1b2   : > { %1022 = vrot.lane.b32.xlu0 %v7666_v39, %s6684_s17 }
 0x1b4   : > { %1076 = vrot.lane.b32.xlu2 %v7650_v54, %s6683_s16  ;;  %1114 = vrot.lane.b32.xlu1 %v7677_v28, %s6683_s16  ;;  %v7683_v7 = vpop.permute.xlu0 %1026  ;;  %v1831_v54 = vrot.slane %v7662_v57, 1 }
 0x1b6   : > { %v1059_v59 = vpop.permute.xlu1 %1058  ;;  %v7687_v48 = vpop.permute.xlu2 %1096 }
 0x1b7   : > { %v1221_v62 = vsel %vm1217_vm7, %v1126_v50, %v1059_v59 }
 0x1b8   : > { %v1301_v46 = vshll.u32 %v1221_v62, 16  ;;  %v1832_v42 = vrot.slane %v1221_v62, 1 }
 0x1ba   : > { %v1303_v33 = vrot.slane %v1301_v46, 1  ;;  %1050 = vrot.lane.b32.xlu0 %v940_v20, %s6684_s17  ;;  %v1833_v6 = vsel %vm1830_vm5, %v1831_v54, %v1832_v42 }
 0x1bb   : > { %6258 = vmatmul.msk.bf16.vlgmr.msrb.gmra.mxu3 %vm1503_vm8, %v1833_v6 }
 0x1bc   : > { %1080 = vrot.lane.b32.xlu2 %v7699_v2, %s6683_s16  ;;  %1112 = vrot.lane.b32.xlu1 %v940_v20, %s6683_s16  ;;  %v995_v62 = vpop.permute.xlu0 %994  ;;  %v1304_v23 = vsel %vm1294_vm9, %v1300_v47, %v1303_v33  ;;  %v6591_v33 = vpack.i.bf16 %v941_v27, %v7644_v10  ;;  %v7744_v10 = vsel %vm921_vm1, 0, %v7638_v18  ;;  %v7748_v27 = vsel %vm921_vm1, %v7638_v18, 0 }
 0x1bd   : > { %v1129_v46 = vsel %vm1120_vm6, %v7391_v19, %v995_v62  ;;  %6178 = vmatmul.msk.bf16.vlgmr.msra.gmra.mxu1 %vm1503_vm8, %v1304_v23  ;;  %v7736_v23 = vsel %vm6795_vm3, %v827_v16, 0  ;;  %v7766_v18 = vpack.i.bf16 %v7748_v27, %v7744_v10 }
 0x1be   : > { %v7708_v54 = vpop.permute.xlu1 %1094  ;;  %v7710_v42 = vpop.permute.xlu2 %1004  ;;  %v7713_v31 = vsel %vm1217_vm7, %v1129_v46, %v1061_v60  ;;  %v1132_v60 = vsel %vm1120_vm6, %v7383_v3, %v997_v56 }
 0x1bf   : > { %10988 = vst [vmem:[#allocation107_spill] sm:$0xff] %v7713_v31  ;;  %v1307_v50 = vshll.u32 %v7713_v31, 16  ;;  %v1305_v22 = vshrl.u32 %v7713_v31, 16  ;;  %v1834_v62 = vrot.slane %v7713_v31, 1 }
 0x1c0   : > { %10989 = vst [vmem:[#allocation108_spill] sm:$0xff] %v7766_v18 }
 0x1c1   : > { %v1309_v20 = vrot.slane %v1307_v50, 1  ;;  %v1135_v50 = vsel %vm1120_vm6, %v7423_v35, %v7636_v29  ;;  %v2198_v29 = vrot.slane %v7395_v37, 7 }
 0x1c2   : > { %2170 = vrot.lane.b32.xlu0 %v7268_v49, %s6683_s16 }
 0x1c3   : > { %v1310_v56 = vor.u32 %v1309_v20, %v1305_v22 }
 0x1c4   : > { %1024 = vrot.lane.b32.xlu2 %v7720_v40, %s6684_s17  ;;  %1018 = vrot.lane.b32.xlu1 %v7699_v2, %s6684_s17  ;;  %v7726_v19 = vpop.permute.xlu0 %1032 }
 0x1c6   : > { %v1063_v59 = vpop.permute.xlu1 %1062  ;;  %v1065_v52 = vpop.permute.xlu2 %1064 }
 0x1c7   : > { %v1225_v49 = vsel %vm1217_vm7, %v1132_v60, %v1063_v59  ;;  %v7769_v20 = vsel %vm1217_vm7, %v1135_v50, %v1065_v52 }
 0x1c8   : > { %v1311_v6 = vshll.u32 %v1225_v49, 16  ;;  %v1835_v47 = vrot.slane %v1225_v49, 1  ;;  %10990 = vst [vmem:[#allocation109_spill] sm:$0xff] %v7769_v20  ;;  %v1317_v49 = vshll.u32 %v7769_v20, 16 }
 0x1ca   : > { %v1313_v46 = vrot.slane %v1311_v6, 1  ;;  %1020 = vrot.lane.b32.xlu0 %v7736_v23, %s6684_s17  ;;  %v1836_v3 = vsel %vm1830_vm5, %v1834_v62, %v1835_v47  ;;  %v1319_v52 = vrot.slane %v1317_v49, 1  ;;  %v2199_v47 = vrot.slane %v7475_v36, 7 }
 0x1cb   : > { %6259 = vmatmul.msk.bf16.gmra.mxu3 %vm1503_vm8, %v1836_v3 }
 0x1cc   : > { %6592 = vrot.lane.b32.xlu2 %v6591_v33, %s6683_s16  ;;  %1082 = vrot.lane.b32.xlu1 %v7736_v23, %s6683_s16  ;;  %v7753_v4 = vpop.permute.xlu0 %1030  ;;  %v1314_v16 = vsel %vm1294_vm9, %v1310_v56, %v1313_v46  ;;  %v1315_v46 = vshrl.u32 %v7769_v20, 16  ;;  %v7793_v36 = vsel %vm921_vm1, 0, %v2199_v47 }
 0x1cd   : > { %6179 = vmatmul.msk.bf16.gmra.mxu1 %vm1503_vm8, %v1314_v16  ;;  %10991 = vst [vmem:[#allocation110_spill] sm:$0xff] %v7793_v36 }
 0x1ce   : > { %v7760_v60 = vpop.permute.xlu1 %1098  ;;  %v7762_v59 = vpop.permute.xlu2 %1100  ;;  %v1320_v16 = vor.u32 %v1319_v52, %v1315_v46  ;;  %v7815_v46 = vsel %vm921_vm1, 0, %v2198_v29 }
 0x1cf   : > { %10992 = vst [vmem:[#allocation111_spill] sm:$0xff] %v7815_v46 }
 0x1d2   : > { %6597 = vrot.lane.b32.xlu0 %v7766_v18, %s6686_s27 }
 0x1d4   : > { %2172 = vrot.lane.b32.xlu2 %v7296_v11, %s6683_s16  ;;  %1052 = vrot.lane.b32.xlu1 %v7677_v28, %s6684_s17  ;;  %v1001_v35 = vpop.permute.xlu0 %1000  ;;  %v1837_v11 = vrot.slane %v7769_v20, 1  ;;  %v7786_v28 = vsel %vm921_vm1, %v2198_v29, 0 }
 0x1d5   : > { %v1138_v33 = vsel %vm1120_vm6, %v7417_v1, %v1001_v35  ;;  %v2200_v35 = vrot.slane %v7433_v55, 7 }
 0x1d6   : > { %v1067_v22 = vpop.permute.xlu1 %1066  ;;  %v1069_v6 = vpop.permute.xlu2 %1068 }
 0x1d7   : > { %v1229_v62 = vsel %vm1217_vm7, %v1138_v33, %v1067_v22  ;;  %v7807_v22 = vsel %vm921_vm1, %v2200_v35, 0 }
 0x1d8   : > { %v1321_v3 = vshll.u32 %v1229_v62, 16  ;;  %v1838_v56 = vrot.slane %v1229_v62, 1  ;;  %v7812_v62 = vsel %vm921_vm1, %v2199_v47, 0  ;;  %v7828_v47 = vsel %vm921_vm1, 0, %v2200_v35 }
 0x1d9   : > { %v1144_v35 = vsel %vm1120_vm6, %v7459_v32, %v7710_v42 }
 0x1da   : > { %v1323_v37 = vrot.slane %v1321_v3, 1  ;;  %2366 = vrot.lane.b32.xlu0 %v7786_v28, %s6684_s17  ;;  %v1839_v1 = vsel %vm1830_vm5, %v1837_v11, %v1838_v56 }
 0x1db   : > { %6260 = vmatmul.msk.bf16.gmra.mxu3 %vm1503_vm8, %v1839_v1 }
 0x1dc   : > { %2428 = vrot.lane.b32.xlu2 %v7793_v36, %s6687_s28  ;;  %1086 = vrot.lane.b32.xlu1 %v7720_v40, %s6683_s16  ;;  %v7799_v50 = vpop.permute.xlu0 %1036  ;;  %v1324_v49 = vsel %vm1294_vm9, %v1320_v16, %v1323_v37 }
 0x1dd   : > { %6180 = vmatmul.msk.bf16.gmra.mxu1 %vm1503_vm8, %v1324_v49 }
 0x1de   : > { %v1003_v33 = vpop.permute.xlu1 %1002  ;;  %v7804_v52 = vpop.permute.xlu2 %1104 }
 0x1df   : > { %v1141_v29 = vsel %vm1120_vm6, %v7443_v30, %v1003_v33 }
 0x1e0   : > { %v7839_v16 = vsel %vm1217_vm7, %v1141_v29, %v1069_v6 }
 0x1e1   : > { %10993 = vst [vmem:[#allocation112_spill] sm:$0xff] %v7839_v16  ;;  %v1327_v49 = vshll.u32 %v7839_v16, 16  ;;  %v1325_v20 = vshrl.u32 %v7839_v16, 16  ;;  %v1840_v57 = vrot.slane %v7839_v16, 1 }
 0x1e2   : > { %2494 = vrot.lane.b32.xlu0 %v7807_v22, %s6683_s16 }
 0x1e3   : > { %v1329_v29 = vrot.slane %v1327_v49, 1 }
 0x1e4   : > { %2430 = vrot.lane.b32.xlu2 %v7812_v62, %s6687_s28  ;;  %2364 = vrot.lane.b32.xlu1 %v7815_v46, %s6684_s17  ;;  %v7821_v55 = vpop.permute.xlu0 %1034 }
 0x1e5   : > { %v1330_v12 = vor.u32 %v1329_v29, %v1325_v20 }
 0x1e6   : > { %v7823_v11 = vpop.permute.xlu1 %1102  ;;  %v1011_v3 = vpop.permute.xlu2 %1010 }
 0x1ea   : > { %2368 = vrot.lane.b32.xlu0 %v7793_v36, %s6684_s17 }
 0x1ec   : > { %2302 = vrot.lane.b32.xlu2 %v7815_v46, %s6686_s27  ;;  %2492 = vrot.lane.b32.xlu1 %v7828_v47, %s6683_s16  ;;  %v7836_v56 = vpop.permute.xlu0 %1040 }
 0x1ee   : > { %v1009_v37 = vpop.permute.xlu1 %1008  ;;  %v1073_v1 = vpop.permute.xlu2 %1072 }
 0x1f2   : > { %2370 = vrot.lane.b32.xlu0 %v7812_v62, %s6684_s17 }
 0x1f4   : > { %2432 = vrot.lane.b32.xlu2 %v7828_v47, %s6687_s28  ;;  %2174 = vrot.lane.b32.xlu1 %v7324_v9, %s6683_s16  ;;  %v7848_v30 = vpop.permute.xlu0 %1038 }
 0x1f6   : > { %v1071_v33 = vpop.permute.xlu1 %1070  ;;  %v7853_v6 = vpop.permute.xlu2 %1108 }
 0x1f7   : > { %v1233_v18 = vsel %vm1217_vm7, %v1144_v35, %v1071_v33 }
 0x1f8   : > { %v1331_v46 = vshll.u32 %v1233_v18, 16  ;;  %v1841_v31 = vrot.slane %v1233_v18, 1 }
 0x1fa   : > { %v1333_v24 = vrot.slane %v1331_v46, 1  ;;  %v1842_v9 = vsel %vm1830_vm5, %v1840_v57, %v1841_v31 }
 0x1fb   : > { %6261 = vmatmul.msk.bf16.gmra.mxu3 %vm1503_vm8, %v1842_v9 }
 0x1fc   : > { %2434 = vrot.lane.b32.xlu2 %v7807_v22, %s6687_s28  ;;  %2304 = vrot.lane.b32.xlu1 %v7786_v28, %s6686_s27  ;;  %v1007_v32 = vpop.permute.xlu0 %1006  ;;  %v1334_v42 = vsel %vm1294_vm9, %v1330_v12, %v1333_v24  ;;  %v1150_v24 = vsel %vm1120_vm6, %v7485_v63, %v1009_v37  ;;  %v1153_v37 = vsel %vm1120_vm6, %v7523_v45, %v1011_v3 }
 0x1fd   : > { %v1147_v18 = vsel %vm1120_vm6, %v7495_v14, %v1007_v32  ;;  %6181 = vmatmul.msk.bf16.gmra.mxu1 %vm1503_vm8, %v1334_v42 }
 0x1fe   : > { %v7868_v46 = vpop.permute.xlu1 %1106  ;;  %v7870_v57 = vpop.permute.xlu2 %1016  ;;  %v7873_v31 = vsel %vm1217_vm7, %v1147_v18, %v1073_v1 }
 0x1ff   : > { %v1337_v20 = vshll.u32 %v7873_v31, 16  ;;  %v1335_v29 = vshrl.u32 %v7873_v31, 16  ;;  %v1843_v32 = vrot.slane %v7873_v31, 1 }
 0x201   : > { %v1339_v35 = vrot.slane %v1337_v20, 1 }
 0x203   : > { %v1340_v16 = vor.u32 %v1339_v35, %v1335_v29 }
 0x204   : > { %2306 = vrot.lane.b32.xlu2 %v7793_v36, %s6686_s27  ;;  %v7878_v49 = vpop.permute.xlu0 %1044 }
 0x206   : > { %v1075_v14 = vpop.permute.xlu1 %1074  ;;  %v1079_v12 = vpop.permute.xlu2 %1078 }
 0x207   : > { %v1237_v33 = vsel %vm1217_vm7, %v1150_v24, %v1075_v14 }
 0x208   : > { %v1341_v9 = vshll.u32 %v1237_v33, 16  ;;  %v1844_v1 = vrot.slane %v1237_v33, 1 }
 0x20a   : > { %v1343_v42 = vrot.slane %v1341_v9, 1  ;;  %v1845_v18 = vsel %vm1830_vm5, %v1843_v32, %v1844_v1 }
 0x20b   : > { %6262 = vmatmul.msk.bf16.gmra.mxu3 %vm1503_vm8, %v1845_v18 }
 0x20c   : > { %v7887_v36 = vpop.permute.xlu0 %1042  ;;  %v1344_v63 = vsel %vm1294_vm9, %v1340_v16, %v1343_v42 }
 0x20d   : > { %6182 = vmatmul.msk.bf16.gmra.mxu1 %vm1503_vm8, %v1344_v63 }
 0x20e   : > { %v7893_v20 = vpop.permute.xlu1 %1110  ;;  %v1077_v24 = vpop.permute.xlu2 %1076 }
 0x20f   : > { %v7896_v14 = vsel %vm1217_vm7, %v1153_v37, %v1077_v24 }
 0x210   : > { %v1347_v33 = vshll.u32 %v7896_v14, 16  ;;  %v1345_v45 = vshrl.u32 %v7896_v14, 16  ;;  %v1846_v3 = vrot.slane %v7896_v14, 1 }
 0x212   : > { %v1349_v29 = vrot.slane %v1347_v33, 1 }
 0x214   : > { %v1013_v35 = vpop.permute.xlu0 %1012  ;;  %v1350_v24 = vor.u32 %v1349_v29, %v1345_v45 }
 0x215   : > { %v1156_v9 = vsel %vm1120_vm6, %v7519_v5, %v1013_v35 }
 0x216   : > { %v1241_v16 = vsel %vm1217_vm7, %v1156_v9, %v1079_v12  ;;  %v7902_v1 = vpop.permute.xlu1 %1046  ;;  %v1081_v32 = vpop.permute.xlu2 %1080 }
 0x217   : > { %v1351_v42 = vshll.u32 %v1241_v16, 16  ;;  %v1847_v18 = vrot.slane %v1241_v16, 1 }
 0x219   : > { %v1353_v63 = vrot.slane %v1351_v42, 1  ;;  %v1848_v37 = vsel %vm1830_vm5, %v1846_v3, %v1847_v18 }
 0x21b   : > { %6263 = vmatmul.msk.bf16.gmra.mxu3 %vm1503_vm8, %v1848_v37  ;;  %v1354_v33 = vsel %vm1294_vm9, %v1350_v24, %v1353_v63 }
 0x21c   : > { %v7909_v5 = vpop.permute.xlu0 %1048 }
 0x21d   : > { %6183 = vmatmul.msk.bf16.gmra.mxu1 %vm1503_vm8, %v1354_v33 }
 0x21e   : > { %v1025_v12 = vpop.permute.xlu2 %1024  ;;  %v1015_v35 = vpop.permute.xlu1 %1014 }
 0x21f   : > { %v1174_v9 = vsel %vm1120_vm6, %v7736_v23, %v1025_v12 }
 0x220   : > { %v7916_v16 = vsel %vm1217_vm7, %v1174_v9, %v7631_v41 }
 0x221   : > { %v1381_v18 = vshll.u32 %v7916_v16, 16 }
 0x223   : > { %v1383_v24 = vrot.slane %v1381_v18, 1  ;;  %v6519_v18 = vld [vmem:[%s10732_s5 + $0x48] sm:$0xff] }
 0x224   : > { %v1023_v42 = vpop.permute.xlu0 %1022  ;;  %3070 = vmatpush.bf16.msrb.mxu0 %v6519_v18 }
 0x225   : > { %v1171_v29 = vsel %vm1120_vm6, %v7699_v2, %v1023_v42  ;;  %v1177_v2 = vsel %vm1120_vm6, %v7666_v39, %v7683_v7  ;;  %v1180_v42 = vsel %vm1120_vm6, %v7720_v40, %v7658_v51 }
 0x226   : > { %v7922_v45 = vsel %vm1217_vm7, %v1171_v29, %v7634_v58  ;;  %v7924_v3 = vpop.permute.xlu1 %1114  ;;  %v7940_v9 = vsel %vm1217_vm7, %v1177_v2, %v7619_v53  ;;  %v7947_v29 = vsel %vm1217_vm7, %v1180_v42, %v7708_v54  ;;  %v1159_v53 = vsel %vm1120_vm6, %v7564_v26, %v1015_v35  ;;  %v6518_v2 = vld [vmem:[%s10732_s5 + $0x40] sm:$0xff] }
 0x227   : > { %v1377_v63 = vshll.u32 %v7922_v45, 16  ;;  %v1375_v23 = vshrl.u32 %v7922_v45, 16  ;;  %v1387_v7 = vshll.u32 %v7940_v9, 16  ;;  %v1385_v26 = vshrl.u32 %v7940_v9, 16 }
 0x228   : > { %3071 = vmatpush.bf16.msrb.mxu0 %v6518_v2  ;;  %v1183_v42 = vsel %vm1120_vm6, %v7411_v43, %v7753_v4  ;;  %v1162_v43 = vsel %vm1120_vm6, %v7588_v34, %v7870_v57 }
 0x229   : > { %v1379_v37 = vrot.slane %v1377_v63, 1 }
 0x22b   : > { %v1380_v41 = vor.u32 %v1379_v37, %v1375_v23  ;;  %v1391_v23 = vshll.u32 %v7947_v29, 16  ;;  %v7956_v37 = vpop.permute.xlu2 %6592 }
 0x22c   : > { %v7929_v33 = vpop.permute.xlu0 %1050 }
 0x22d   : > { %v1384_v58 = vsel %vm1294_vm9, %v1380_v41, %v1383_v24  ;;  %v1389_v41 = vrot.slane %v1387_v7, 1  ;;  %v1393_v35 = vrot.slane %v1391_v23, 1  ;;  %v7990_v23 = vsel %vm1217_vm7, %v1183_v42, %v7687_v48 }
 0x22e   : > { %v7935_v12 = vpop.permute.xlu1 %1112  ;;  %6186 = vmatmul.msk.bf16.vlgmr.msra.gmra.mxu2 %vm1503_vm8, %v1384_v58  ;;  %v7970_v58 = vsel %vm1217_vm7, %v1159_v53, %v1081_v32  ;;  %v6517_v32 = vld [vmem:[%s10732_s5 + $0x38] sm:$0xff]  ;;  %v1186_v48 = vsel %vm1120_vm6, %v7405_v38, %v7726_v19 }
 0x22f   : > { %v1357_v7 = vshll.u32 %v7970_v58, 16  ;;  %v1390_v18 = vor.u32 %v1389_v41, %v1385_v26  ;;  %3072 = vmatpush.bf16.msrb.mxu0 %v6517_v32  ;;  %v6516_v41 = vld [vmem:[%s10732_s5 + $0x30] sm:$0xff]  ;;  %v1397_v26 = vshll.u32 %v7990_v23, 16  ;;  %v1355_v34 = vshrl.u32 %v7970_v58, 16 }
 0x230   : > { %v1849_v32 = vrot.slane %v7970_v58, 1  ;;  %v8015_v38 = vsel %vm1217_vm7, %v1186_v48, %v7760_v60  ;;  %v1395_v60 = vshrl.u32 %v7990_v23, 16 }
 0x231   : > { %v1394_v53 = vsel %vm1294_vm9, %v1390_v18, %v1393_v35  ;;  %v1359_v2 = vrot.slane %v1357_v7, 1 }
 0x233   : > { %v2173_v4 = vpop.permute.xlu2 %2172  ;;  %3073 = vmatpush.bf16.msrb.mxu0 %v6516_v41  ;;  %v1360_v18 = vor.u32 %v1359_v2, %v1355_v34  ;;  %v1399_v41 = vrot.slane %v1397_v26, 1 }
 0x234   : > { %v2171_v63 = vpop.permute.xlu0 %2170 }
 0x235   : > { %v2201_v24 = vrot.slane %v2171_v63, 7  ;;  %v1400_v34 = vor.u32 %v1399_v41, %v1395_v60 }
 0x236   : > { %v7958_v51 = vpop.permute.xlu1 %1018 }
 0x237   : > { %v7961_v54 = vsel %vm921_vm1, 0, %v2201_v24  ;;  %v7964_v40 = vsel %vm921_vm1, %v2201_v24, 0 }
 0x238   : > { %2498 = vrot.lane.b32.xlu0 %v7964_v40, %s6683_s16  ;;  %2436 = vrot.lane.b32.xlu2 %v7961_v54, %s6687_s28 }
 0x239   : > { %2496 = vrot.lane.b32.xlu1 %v7961_v54, %s6683_s16 }
 0x23c   : > { %v7986_v63 = vpop.permute.xlu0 %1020 }
 0x23e   : > { %6187 = vmatmul.msk.bf16.gmra.mxu2 %vm1503_vm8, %v1394_v53  ;;  %v1083_v24 = vpop.permute.xlu1 %1082  ;;  %v6515_v53 = vld [vmem:[%s10732_s5 + $0x28] sm:$0xff] }
 0x23f   : > { %v1245_v35 = vsel %vm1217_vm7, %v1162_v43, %v1083_v24  ;;  %3074 = vmatpush.bf16.msrb.mxu0 %v6515_v53 }
 0x240   : > { %2372 = vrot.lane.b32.xlu0 %v7828_v47, %s6684_s17  ;;  %2438 = vrot.lane.b32.xlu2 %v7964_v40, %s6687_s28  ;;  %v1361_v57 = vshll.u32 %v1245_v35, 16  ;;  %v1850_v42 = vrot.slane %v1245_v35, 1  ;;  %v2429_v35 = vpop.permute.xlu2 %2428 }
 0x241   : > { %2176 = vrot.lane.b32.xlu1 %v7352_v13, %s6683_s16  ;;  %v1401_v13 = vshll.u32 %v8015_v38, 16 }
 0x242   : > { %v1363_v19 = vrot.slane %v1361_v57, 1  ;;  %v1851_v7 = vsel %vm1830_vm5, %v1849_v32, %v1850_v42  ;;  %v1189_v57 = vsel %vm1120_vm6, %v7431_v15, %v7821_v55  ;;  %v2202_v42 = vrot.slane %v2173_v4, 7 }
 0x243   : > { %6264 = vmatmul.msk.bf16.gmra.mxu3 %vm1503_vm8, %v1851_v7  ;;  %v1403_v2 = vrot.slane %v1401_v13, 1  ;;  %v8040_v7 = vsel %vm1217_vm7, %v1189_v57, %v7762_v59  ;;  %v1192_v59 = vsel %vm1120_vm6, %v7449_v17, %v7799_v50 }
 0x244   : > { %v6598_v43 = vpop.permute.xlu0 %6597  ;;  %v1364_v24 = vsel %vm1294_vm9, %v1360_v18, %v1363_v19  ;;  %v8046_v53 = vsel %vm921_vm1, 0, %v2202_v42  ;;  %v8049_v13 = vsel %vm921_vm1, %v2202_v42, 0  ;;  %v1407_v55 = vshll.u32 %v8040_v7, 16 }
 0x245   : > { %6184 = vmatmul.msk.bf16.gmra.mxu1 %vm1503_vm8, %v1364_v24  ;;  %v6600_v26 = vunpack.i.h.bf16 %v6598_v43  ;;  %v1404_v19 = vsel %vm1294_vm9, %v1400_v34, %v1403_v2  ;;  %v8066_v24 = vsel %vm1217_vm7, %v1192_v59, %v7823_v11 }
 0x246   : > { %v8026_v48 = vpop.permute.xlu1 %1052  ;;  %v1411_v34 = vshll.u32 %v8066_v24, 16  ;;  %v1409_v50 = vrot.slane %v1407_v55, 1 }
 0x247   : > { %v2556_v18 = vsel %vm2552_vm10, %v7748_v27, %v6600_v26  ;;  %v6599_v26 = vunpack.i.l.bf16 %v6598_v43 }
 0x248   : > { %2374 = vrot.lane.b32.xlu0 %v7807_v22, %s6684_s17  ;;  %2310 = vrot.lane.b32.xlu2 %v7828_v47, %s6686_s27  ;;  %v2431_v41 = vpop.permute.xlu2 %2430  ;;  %v1413_v43 = vrot.slane %v1411_v34, 1 }
 0x249   : > { %2308 = vrot.lane.b32.xlu1 %v7812_v62, %s6686_s27  ;;  %v2554_v59 = vsel %vm2552_vm10, %v7744_v10, %v6599_v26  ;;  %v1198_v26 = vsel %vm1120_vm6, %v7469_v61, %v7836_v56 }
 0x24c   : > { %v2367_v32 = vpop.permute.xlu0 %2366 }
 0x24d   : > { %v2620_v4 = vsel %vm1120_vm6, %v2556_v18, %v2367_v32  ;;  %v1405_v32 = vshrl.u32 %v8040_v7, 16 }
 0x24e   : > { %6188 = vmatmul.msk.bf16.gmra.mxu2 %vm1503_vm8, %v1404_v19  ;;  %v8051_v15 = vpop.permute.xlu1 %1086  ;;  %v2685_v2 = vsel %vm2681_vm11, %v2620_v4, %v2431_v41 }
 0x24f   : > { %v1410_v55 = vor.u32 %v1409_v50, %v1405_v32 }
 0x250   : > { %2502 = vrot.lane.b32.xlu0 %v8049_v13, %s6683_s16  ;;  %2440 = vrot.lane.b32.xlu2 %v8046_v53, %s6687_s28 }
 0x251   : > { %2500 = vrot.lane.b32.xlu1 %v8046_v53, %s6683_s16 }
 0x254   : > { %v2495_v60 = vpop.permute.xlu0 %2494 }
 0x255   : > { %v8071_v17 = vsel %vm1217_vm7, %v2685_v2, %v2495_v60  ;;  %v1195_v60 = vsel %vm1120_vm6, %v7473_v21, %v7848_v30  ;;  %v1414_v2 = vsel %vm1294_vm9, %v1410_v55, %v1413_v43  ;;  %v8107_v21 = vsel %vm1217_vm7, %v1198_v26, %v7868_v46 }
 0x256   : > { %10994 = vst [vmem:[#allocation113_spill] sm:$0xff] %v8071_v17  ;;  %v2824_v57 = vshll.u32 %v8071_v17, 16  ;;  %v3600_v42 = vshrl.u32 %v8071_v17, 16  ;;  %v2365_v19 = vpop.permute.xlu1 %2364  ;;  %v1201_v26 = vsel %vm1120_vm6, %v7509_v25, %v7887_v36  ;;  %v1204_v25 = vsel %vm1120_vm6, %v7505_v0, %v7878_v49  ;;  %v6497_v0 = vld [vmem:[%s10730_s3 + $0x28] sm:$0xff] }
 0x257   : > { %v2618_v41 = vsel %vm1120_vm6, %v2554_v59, %v2365_v19  ;;  %v1421_v19 = vshll.u32 %v8107_v21, 16  ;;  %1711 = vmatpush.bf16.msrb.mxu2 %v6497_v0 }
 0x258   : > { %v3602_v11 = vrot.slane %v3600_v42, 1  ;;  %v3603_v18 = vrot.slane %v2824_v57, 2  ;;  %2376 = vrot.lane.b32.xlu0 %v7961_v54, %s6684_s17  ;;  %2442 = vrot.lane.b32.xlu2 %v8049_v13, %s6687_s28  ;;  %v2683_v34 = vsel %vm2681_vm11, %v2618_v41, %v2429_v35 }
 0x259   : > { %2178 = vrot.lane.b32.xlu1 %v7371_v8, %s6683_s16  ;;  %v8096_v8 = vsel %vm1217_vm7, %v1195_v60, %v7804_v52 }
 0x25a   : > { %v3604_v4 = vor.u32 %v3603_v18, %v3602_v11  ;;  %v1417_v52 = vshll.u32 %v8096_v8, 16  ;;  %v2826_v11 = vrot.slane %v2824_v57, 1 }
 0x25c   : > { %v1419_v55 = vrot.slane %v1417_v52, 1  ;;  %v8141_v52 = vsel %vm1217_vm7, %v1201_v26, %v7853_v6  ;;  %v6493_v26 = vld [vmem:[%s10730_s3 + $0x8] sm:$0xff] }
 0x25d   : > { %v1427_v36 = vshll.u32 %v8141_v52, 16  ;;  %v1425_v49 = vshrl.u32 %v8141_v52, 16 }
 0x25e   : > { %6189 = vmatmul.msk.bf16.gmra.mxu2 %vm1503_vm8, %v1414_v2  ;;  %v2493_v42 = vpop.permute.xlu1 %2492  ;;  %v1415_v2 = vshrl.u32 %v8096_v8, 16 }
 0x25f   : > { %v8099_v50 = vsel %vm1217_vm7, %v2683_v34, %v2493_v42  ;;  %v1423_v42 = vrot.slane %v1421_v19, 1 }
 0x260   : > { %10995 = vst [vmem:[#allocation114_spill] sm:$0xff] %v8099_v50  ;;  %2378 = vrot.lane.b32.xlu0 %v7964_v40, %s6684_s17  ;;  %2314 = vrot.lane.b32.xlu2 %v7961_v54, %s6686_s27  ;;  %v2818_v30 = vshrl.u32 %v8099_v50, 16  ;;  %v2820_v61 = vshll.u32 %v8099_v50, 16 }
 0x261   : > { %2312 = vrot.lane.b32.xlu1 %v7807_v22, %s6686_s27 }
 0x262   : > { %v3597_v56 = vrot.slane %v2818_v30, 1  ;;  %v3598_v35 = vrot.slane %v2820_v61, 2  ;;  %v2822_v32 = vrot.slane %v2820_v61, 1 }
 0x264   : > { %v3599_v18 = vor.u32 %v3598_v35, %v3597_v56  ;;  %v2823_v43 = vor.u32 %v2822_v32, %v2818_v30  ;;  %v8134_v30 = vpop.permute.xlu2 %2302  ;;  %v8150_v56 = vsel %vm1217_vm7, %v1204_v25, %v7893_v20  ;;  %v1429_v35 = vrot.slane %v1427_v36, 1 }
 0x265   : > { %v1431_v6 = vshll.u32 %v8150_v56, 16 }
 0x266   : > { %v2175_v46 = vpop.permute.xlu1 %2174  ;;  %v2827_v59 = vsel %vm1294_vm9, %v2823_v43, %v2826_v11  ;;  %v8117_v41 = vsel %vm3596_vm12, %v3599_v18, %v3604_v4  ;;  %v1420_v4 = vor.u32 %v1419_v55, %v1415_v2  ;;  %v1430_v19 = vor.u32 %v1429_v35, %v1425_v49  ;;  %v10998_v35 = vld [vmem:[#allocation103_spill] sm:$0xff] }
 0x267   : > { %v2203_v60 = vrot.slane %v2175_v46, 7  ;;  %6294 = vmatmul.msk.bf16.vlgmr.msrb.gmra.mxu0 %vm3018_vm13, %v2827_v59  ;;  %v1433_v20 = vrot.slane %v1431_v6, 1  ;;  %v6495_v46 = vld [vmem:[%s10730_s3 + $0x18] sm:$0xff]  ;;  %v6594_v6 = vunpack.i.l.bf16 %v7956_v37  ;;  %v1213_v0 = vsel %vm1120_vm6, %v10998_v35, %v7929_v33 }
 0x268   : > { %v1424_v61 = vsel %vm1294_vm9, %v1420_v4, %v1423_v42 }
 0x269   : > { %v8122_v34 = vsel %vm921_vm1, 0, %v2203_v60  ;;  %v8125_v57 = vsel %vm921_vm1, %v2203_v60, 0  ;;  %v1434_v18 = vsel %vm1294_vm9, %v1430_v19, %v1433_v20  ;;  %v10997_v60 = vld [vmem:[#allocation101_spill] sm:$0xff]  ;;  %v6595_v20 = vunpack.i.h.bf16 %v7956_v37  ;;  %v10999_v19 = vld [vmem:[#allocation102_spill] sm:$0xff]  ;;  %v2369_v37 = vpop.permute.xlu0 %2368 }
 0x26a   : > { %2506 = vrot.lane.b32.xlu0 %v8125_v57, %s6683_s16  ;;  %2444 = vrot.lane.b32.xlu2 %v8122_v34, %s6687_s28 }
 0x26b   : > { %2504 = vrot.lane.b32.xlu1 %v8122_v34, %s6683_s16 }
 0x26c   : > { %v8159_v32 = vpop.permute.xlu2 %2432 }
 0x26e   : > { %6190 = vmatmul.msk.bf16.gmra.mxu2 %vm1503_vm8, %v1424_v61 }
 0x272   : > { %2380 = vrot.lane.b32.xlu0 %v8046_v53, %s6684_s17  ;;  %1084 = vrot.lane.b32.xlu2 %v7666_v39, %s6683_s16  ;;  %v6496_v39 = vld [vmem:[%s10730_s3 + $0x20] sm:$0xff] }
 0x273   : > { %2180 = vrot.lane.b32.xlu1 %v7399_v44, %s6683_s16  ;;  %1712 = vmatpush.bf16.msrb.mxu2 %v6496_v39  ;;  %v10996_v44 = vld [vmem:[#allocation100_spill] sm:$0xff]  ;;  %v1216_v39 = vsel %vm1120_vm6, %v10999_v19, %v8026_v48 }
 0x274   : > { %v1207_v11 = vsel %vm1120_vm6, %v10996_v44, %v7902_v1  ;;  %v2435_v59 = vpop.permute.xlu2 %2434  ;;  %v1210_v1 = vsel %vm1120_vm6, %v10997_v60, %v7909_v5  ;;  %v8220_v44 = vsel %vm1217_vm7, %v1213_v0, %v6594_v6 }
 0x275   : > { %v8180_v43 = vsel %vm1217_vm7, %v1207_v11, %v7935_v12  ;;  %v6494_v12 = vld [vmem:[%s10730_s3 + $0x10] sm:$0xff]  ;;  %v8197_v2 = vsel %vm1217_vm7, %v1210_v1, %v7924_v3  ;;  %v6492_v3 = vld [vmem:[%s10730_s3] sm:$0xff]  ;;  %v8223_v11 = vsel %vm1217_vm7, %v1216_v39, %v6595_v20  ;;  %v1447_v33 = vshll.u32 %v8220_v44, 16 }
 0x276   : > { %v1437_v55 = vshll.u32 %v8180_v43, 16  ;;  %v1441_v4 = vshll.u32 %v8197_v2, 16  ;;  %v1435_v5 = vshrl.u32 %v8180_v43, 16  ;;  %v1445_v60 = vshrl.u32 %v8220_v44, 16 }
 0x277   : > { %1713 = vmatpush.bf16.msrb.mxu2 %v6495_v46  ;;  %v1451_v46 = vshll.u32 %v8223_v11, 16 }
 0x278   : > { %v1439_v42 = vrot.slane %v1437_v55, 1  ;;  %v1443_v36 = vrot.slane %v1441_v4, 1  ;;  %v1449_v55 = vrot.slane %v1447_v33, 1  ;;  %v2371_v4 = vpop.permute.xlu0 %2370 }
 0x279   : > { %v1453_v1 = vrot.slane %v1451_v46, 1 }
 0x27a   : > { %2382 = vrot.lane.b32.xlu0 %v8049_v13, %s6684_s17  ;;  %2446 = vrot.lane.b32.xlu2 %v8125_v57, %s6687_s28  ;;  %v1440_v61 = vor.u32 %v1439_v42, %v1435_v5  ;;  %v1450_v48 = vor.u32 %v1449_v55, %v1445_v60 }
 0x27b   : > { %2316 = vrot.lane.b32.xlu1 %v7964_v40, %s6686_s27  ;;  %1714 = vmatpush.bf16.msrb.mxu2 %v6494_v12 }
 0x27c   : > { %v8204_v25 = vpop.permute.xlu2 %2306  ;;  %v1444_v49 = vsel %vm1294_vm9, %v1440_v61, %v1443_v36  ;;  %v1454_v42 = vsel %vm1294_vm9, %v1450_v48, %v1453_v1  ;;  %v2558_v36 = vsel %vm2552_vm10, %v7744_v10, %v8134_v30 }
 0x27d   : > { %v2622_v6 = vsel %vm1120_vm6, %v2558_v36, %v2369_v37  ;;  %v11002_v37 = vld [vmem:[#allocation106_spill] sm:$0xff] }
 0x27e   : > { %6191 = vmatmul.msk.bf16.gmra.mxu2 %vm1503_vm8, %v1434_v18  ;;  %v2687_v19 = vsel %vm2681_vm11, %v2622_v6, %v8159_v32 }
 0x27f   : > { %1715 = vmatpush.bf16.msrb.mxu2 %v6493_v26  ;;  %v2305_v26 = vpop.permute.xlu1 %2304 }
 0x280   : > { %v2560_v61 = vsel %vm2552_vm10, %v7748_v27, %v2305_v26 }
 0x282   : > { %2318 = vrot.lane.b32.xlu2 %v8046_v53, %s6686_s27 }
 0x283   : > { %1716 = vmatpush.bf16.msrb.mxu2 %v6492_v3  ;;  %v2624_v3 = vsel %vm1120_vm6, %v2560_v61, %v2371_v4 }
 0x284   : > { %v2689_v0 = vsel %vm2681_vm11, %v2624_v3, %v2435_v59  ;;  %v6514_v3 = vld [vmem:[%s10732_s5 + $0x20] sm:$0xff] }
 0x285   : > { %3221 = vmatpush.bf16.msrb.mxu1 %v6514_v3 }
 0x28e   : > { %6192 = vmatmul.msk.bf16.gmra.mxu2 %vm1503_vm8, %v1444_v49 }
 0x292   : > { %v8225_v18 = vpop.permute.xlu2 %2436 }
 0x29a   : > { %v8230_v12 = vpop.permute.xlu2 %2438 }
 0x29e   : > { %6193 = vmatmul.msk.bf16.gmra.mxu2 %vm1503_vm8, %v1454_v42 }
 0x2a2   : > { %v8234_v5 = vpop.permute.xlu2 %2310 }
 0x2aa   : > { %v8243_v35 = vpop.permute.xlu2 %2440  ;;  %v2499_v49 = vpop.permute.xlu0 %2498 }
 0x2ab   : > { %v2497_v20 = vpop.permute.xlu1 %2496  ;;  %v8249_v39 = vsel %vm1217_vm7, %v2689_v0, %v2499_v49 }
 0x2ac   : > { %11000 = vst [vmem:[#allocation100_spill] sm:$0xff] %v8249_v39  ;;  %v8252_v27 = vsel %vm1217_vm7, %v2687_v19, %v2497_v20  ;;  %v2834_v10 = vshll.u32 %v8249_v39, 16  ;;  %v3609_v30 = vshrl.u32 %v8249_v39, 16 }
 0x2ad   : > { %11001 = vst [vmem:[#allocation101_spill] sm:$0xff] %v8252_v27  ;;  %v2828_v33 = vshrl.u32 %v8252_v27, 16  ;;  %v2830_v46 = vshll.u32 %v8252_v27, 16 }
 0x2ae   : > { %v3611_v59 = vrot.slane %v3609_v30, 1  ;;  %v3612_v55 = vrot.slane %v2834_v10, 2  ;;  %6218 = vmatmul.msk.bf16.vlgmr.msrb.gmra.mxu2 %vm1503_vm8, %v11002_v37  ;;  %v2836_v4 = vrot.slane %v2834_v10, 1 }
 0x2af   : > { %v2832_v32 = vrot.slane %v2830_v46, 1  ;;  %v3606_v60 = vrot.slane %v2828_v33, 1  ;;  %v3607_v1 = vrot.slane %v2830_v46, 2 }
 0x2b0   : > { %v3613_v48 = vor.u32 %v3612_v55, %v3611_v59  ;;  %v6512_v59 = vld [vmem:[%s10732_s5 + $0x10] sm:$0xff] }
 0x2b1   : > { %v8260_v42 = vpop.f32.mrf.mxu2  ;;  %v2833_v26 = vor.u32 %v2832_v32, %v2828_v33  ;;  %v3608_v61 = vor.u32 %v3607_v1, %v3606_v60  ;;  %v6513_v33 = vld [vmem:[%s10732_s5 + $0x18] sm:$0xff]  ;;  %v11005_v1 = vld [vmem:[#allocation107_spill] sm:$0xff] }
 0x2b2   : > { %11003 = vst [vmem:[#allocation103_spill] sm:$0xff] %v8260_v42  ;;  %v2373_v36 = vpop.permute.xlu0 %2372  ;;  %v8265_v6 = vpop.permute.xlu2 %2442  ;;  %3222 = vmatpush.bf16.msrb.mxu1 %v6513_v33 }
 0x2b3   : > { %v2177_v0 = vpop.permute.xlu1 %2176  ;;  %v2837_v49 = vsel %vm1294_vm9, %v2833_v26, %v2836_v4  ;;  %v8269_v20 = vsel %vm3596_vm12, %v3608_v61, %v3613_v48  ;;  %v6511_v48 = vld [vmem:[%s10732_s5 + $0x8] sm:$0xff]  ;;  %v5220_v26 = vld [vmem:[%s10734_s7] sm:$0x3]  ;;  %v11006_v4 = vld [vmem:[#allocation111_spill] sm:$0xff] }
 0x2b4   : > { %v2204_v19 = vrot.slane %v2177_v0, 7  ;;  %6295 = vmatmul.msk.bf16.gmra.mxu0 %vm3018_vm13, %v2837_v49  ;;  %v2562_v61 = vsel %vm2552_vm10, %v11006_v4, %v8204_v25  ;;  %v11007_v0 = vld [vmem:[#allocation68_spill] sm:$0xff] }
 0x2b5   : > { %v2626_v3 = vsel %vm1120_vm6, %v2562_v61, %v2373_v36 }
 0x2b6   : > { %v8273_v10 = vsel %vm921_vm1, 0, %v2204_v19  ;;  %v8276_v30 = vsel %vm921_vm1, %v2204_v19, 0  ;;  %3223 = vmatpush.bf16.msrb.mxu1 %v6512_v59  ;;  %v5354_v19 = vsel %vm499_vm0, %v5220_v26, 0  ;;  %v6510_v59 = vld [vmem:[%s10732_s5] sm:$0xff]  ;;  %v2691_v36 = vsel %vm2681_vm11, %v2626_v3, %v8225_v18 }
 0x2b7   : > { %2510 = vrot.lane.b32.xlu0 %v8276_v30, %s6683_s16  ;;  %2448 = vrot.lane.b32.xlu2 %v8273_v10, %s6687_s28 }
 0x2b8   : > { %2508 = vrot.lane.b32.xlu1 %v8273_v10, %s6683_s16 }
 0x2b9   : > { %v8287_v46 = vpop.f32.mrf.mxu2 }
 0x2ba   : > { %11004 = vst [vmem:[#allocation102_spill] sm:$0xff] %v8287_v46  ;;  %v2375_v55 = vpop.permute.xlu0 %2374  ;;  %v8294_v60 = vpop.permute.xlu2 %2314  ;;  %3224 = vmatpush.bf16.msrb.mxu1 %v6511_v48 }
 0x2bb   : > { %v2309_v37 = vpop.permute.xlu1 %2308 }
 0x2bc   : > { %v2564_v32 = vsel %vm2552_vm10, %v7786_v28, %v2309_v37 }
 0x2bd   : > { %v2628_v28 = vsel %vm1120_vm6, %v2564_v32, %v2375_v55 }
 0x2be   : > { %6219 = vmatmul.msk.bf16.gmra.mxu2 %vm1503_vm8, %v11005_v1  ;;  %v2693_v25 = vsel %vm2681_vm11, %v2628_v28, %v8230_v12  ;;  %3225 = vmatpush.bf16.msrb.mxu1 %v6510_v59 }
 0x2bf   : > { %2384 = vrot.lane.b32.xlu0 %v8122_v34, %s6684_s17  ;;  %2450 = vrot.lane.b32.xlu2 %v8276_v30, %s6687_s28 }
 0x2c0   : > { %2182 = vrot.lane.b32.xlu1 %v11007_v0, %s6683_s16 }
 0x2c1   : > { %v8315_v49 = vpop.f32.mrf.mxu2 }
 0x2c2   : > { %11008 = vst [vmem:[#allocation106_spill] sm:$0xff] %v8315_v49  ;;  %v2503_v33 = vpop.permute.xlu0 %2502  ;;  %5363 = vmatpush.bf16.msra.mxu1 %v5354_v19 }
 0x2c3   : > { %v2501_v55 = vpop.permute.xlu1 %2500  ;;  %v8326_v37 = vsel %vm1217_vm7, %v2693_v25, %v2503_v33 }
 0x2c4   : > { %11009 = vst [vmem:[#allocation107_spill] sm:$0xff] %v8326_v37  ;;  %v8329_v32 = vsel %vm1217_vm7, %v2691_v36, %v2501_v55  ;;  %v2844_v1 = vshll.u32 %v8326_v37, 16  ;;  %v3618_v48 = vshrl.u32 %v8326_v37, 16  ;;  %v8335_v4 = vpop.permute.xlu2 %2444  ;;  %v11011_v36 = vld [vmem:[#allocation104_spill] sm:$0xff] }
 0x2c5   : > { %v2838_v12 = vshrl.u32 %v8329_v32, 16  ;;  %v2840_v26 = vshll.u32 %v8329_v32, 16 }
 0x2c6   : > { %v3620_v61 = vrot.slane %v3618_v48, 1  ;;  %v3621_v18 = vrot.slane %v2844_v1, 2  ;;  %v2846_v55 = vrot.slane %v2844_v1, 1  ;;  %v1168_v48 = vsel %vm1120_vm6, %v11011_v36, %v7986_v63  ;;  %v11012_v1 = vld [vmem:[#allocation105_spill] sm:$0xff] }
 0x2c7   : > { %2386 = vrot.lane.b32.xlu0 %v8125_v57, %s6684_s17  ;;  %2322 = vrot.lane.b32.xlu2 %v8122_v34, %s6686_s27  ;;  %v2842_v28 = vrot.slane %v2840_v26, 1  ;;  %v3615_v3 = vrot.slane %v2838_v12, 1  ;;  %v3616_v0 = vrot.slane %v2840_v26, 2  ;;  %v1249_v26 = vsel %vm1217_vm7, %v1168_v48, %v8051_v15  ;;  %v11014_v15 = vld [vmem:[#allocation109_spill] sm:$0xff] }
 0x2c8   : > { %2320 = vrot.lane.b32.xlu1 %v8049_v13, %s6686_s27  ;;  %v3622_v25 = vor.u32 %v3621_v18, %v3620_v61  ;;  %v8358_v18 = vpop.f32.mrf.mxu1 }
 0x2c9   : > { %v8343_v33 = vpop.f32.mrf.mxu2  ;;  %v2843_v59 = vor.u32 %v2842_v28, %v2838_v12  ;;  %v3617_v19 = vor.u32 %v3616_v0, %v3615_v3  ;;  %v1165_v12 = vsel %vm1120_vm6, %v11012_v1, %v7958_v51  ;;  %11013 = vst [vmem:[#allocation68_spill] sm:$0xff] %v8358_v18 }
 0x2ca   : > { %11010 = vst [vmem:[#allocation111_spill] sm:$0xff] %v8343_v33  ;;  %v2377_v46 = vpop.permute.xlu0 %2376 }
 0x2cb   : > { %v2179_v49 = vpop.permute.xlu1 %2178  ;;  %v2847_v42 = vsel %vm1294_vm9, %v2843_v59, %v2846_v55  ;;  %v8350_v37 = vsel %vm3596_vm12, %v3617_v19, %v3622_v25  ;;  %v8377_v59 = vpop.f32.mrf.mxu3 }
 0x2cc   : > { %v2205_v61 = vrot.slane %v2179_v49, 7  ;;  %6296 = vmatmul.msk.bf16.gmra.mxu0 %vm3018_vm13, %v2847_v42  ;;  %v1085_v63 = vpop.permute.xlu2 %1084  ;;  %v1371_v42 = vshll.u32 %v1249_v26, 16  ;;  %v1853_v49 = vrot.slane %v1249_v26, 1  ;;  %11015 = vst [vmem:[#allocation104_spill] sm:$0xff] %v8377_v59 }
 0x2cd   : > { %v8367_v0 = vsel %vm1217_vm7, %v1165_v12, %v1085_v63 }
 0x2ce   : > { %v8361_v28 = vsel %vm921_vm1, 0, %v2205_v61  ;;  %v8364_v3 = vsel %vm921_vm1, %v2205_v61, 0  ;;  %6220 = vmatmul.msk.bf16.gmra.mxu2 %vm1503_vm8, %v11014_v15  ;;  %v1367_v25 = vshll.u32 %v8367_v0, 16  ;;  %v1852_v51 = vrot.slane %v8367_v0, 1 }
 0x2cf   : > { %2514 = vrot.lane.b32.xlu0 %v8364_v3, %s6683_s16  ;;  %2452 = vrot.lane.b32.xlu2 %v8361_v28, %s6687_s28  ;;  %v1365_v55 = vshrl.u32 %v8367_v0, 16  ;;  %v1373_v26 = vrot.slane %v1371_v42, 1  ;;  %v11018_v42 = vld [vmem:[#allocation71_spill] sm:$0xff] }
 0x2d0   : > { %2512 = vrot.lane.b32.xlu1 %v8361_v28, %s6683_s16  ;;  %v1369_v19 = vrot.slane %v1367_v25, 1  ;;  %v1854_v48 = vsel %vm1830_vm5, %v1852_v51, %v1853_v49  ;;  %v8388_v15 = vpop.f32.mrf.mxu1  ;;  %v11021_v51 = vld [vmem:[#allocation110_spill] sm:$0xff] }
 0x2d1   : > { %v8382_v36 = vpop.f32.mrf.mxu2  ;;  %6265 = vmatmul.msk.bf16.gmra.mxu3 %vm1503_vm8, %v1854_v48  ;;  %11017 = vst [vmem:[#allocation109_spill] sm:$0xff] %v8388_v15 }
 0x2d2   : > { %11016 = vst [vmem:[#allocation105_spill] sm:$0xff] %v8382_v36  ;;  %v1370_v61 = vor.u32 %v1369_v19, %v1365_v55  ;;  %v2379_v12 = vpop.permute.xlu0 %2378  ;;  %v2566_v55 = vsel %vm2552_vm10, %v11021_v51, %v8234_v5  ;;  %v11022_v36 = vld [vmem:[#allocation112_spill] sm:$0xff] }
 0x2d3   : > { %v2313_v1 = vpop.permute.xlu1 %2312  ;;  %v8400_v25 = vpop.f32.mrf.mxu3  ;;  %v2630_v48 = vsel %vm1120_vm6, %v2566_v55, %v2377_v46 }
 0x2d4   : > { %v1374_v63 = vsel %vm1294_vm9, %v1370_v61, %v1373_v26  ;;  %v2568_v33 = vsel %vm2552_vm10, %v7812_v62, %v2313_v1  ;;  %11020 = vst [vmem:[#allocation115_spill] sm:$0xff] %v8400_v25  ;;  %v1855_v62 = vrot.slane %v7922_v45, 1  ;;  %v1856_v26 = vrot.slane %v7916_v16, 1 }
 0x2d5   : > { %6185 = vmatmul.msk.bf16.gmra.mxu1 %vm1503_vm8, %v1374_v63  ;;  %v2632_v19 = vsel %vm1120_vm6, %v2568_v33, %v2379_v12 }
 0x2d6   : > { %v2697_v61 = vsel %vm2681_vm11, %v2632_v19, %v8265_v6  ;;  %v1857_v5 = vsel %vm1830_vm5, %v1855_v62, %v1856_v26 }
 0x2d7   : > { %2388 = vrot.lane.b32.xlu0 %v8273_v10, %s6684_s17  ;;  %2454 = vrot.lane.b32.xlu2 %v8364_v3, %s6687_s28 }
 0x2d8   : > { %2184 = vrot.lane.b32.xlu1 %v11018_v42, %s6683_s16  ;;  %v2695_v42 = vsel %vm2681_vm11, %v2630_v48, %v8243_v35  ;;  %v8429_v55 = vpop.f32.mrf.mxu1 }
 0x2d9   : > { %v8398_v49 = vpop.f32.mrf.mxu2  ;;  %11023 = vst [vmem:[#allocation110_spill] sm:$0xff] %v8429_v55 }
 0x2da   : > { %11019 = vst [vmem:[#allocation71_spill] sm:$0xff] %v8398_v49 }
 0x2db   : > { %v8441_v55 = vpop.f32.mrf.mxu3 }
 0x2dc   : > { %v2507_v1 = vpop.permute.xlu0 %2506  ;;  %11026 = vst [vmem:[#allocation117_spill] sm:$0xff] %v8441_v55 }
 0x2dd   : > { %v2505_v63 = vpop.permute.xlu1 %2504  ;;  %v2761_v49 = vsel %vm1217_vm7, %v2697_v61, %v2507_v1 }
 0x2de   : > { %6221 = vmatmul.msk.bf16.gmra.mxu2 %vm1503_vm8, %v11022_v36  ;;  %v8418_v33 = vsel %vm1217_vm7, %v2695_v42, %v2505_v63  ;;  %v2854_v46 = vshll.u32 %v2761_v49, 16  ;;  %v3349_v16 = vrot.slane %v2761_v49, 1  ;;  %v3627_v12 = vshrl.u32 %v2761_v49, 16 }
 0x2df   : > { %2390 = vrot.lane.b32.xlu0 %v8276_v30, %s6684_s17  ;;  %2326 = vrot.lane.b32.xlu2 %v8273_v10, %s6686_s27  ;;  %v2848_v35 = vshrl.u32 %v8418_v33, 16  ;;  %v2850_v6 = vshll.u32 %v8418_v33, 16  ;;  %v3961_v51 = vrot.slane %v2761_v49, 2  ;;  %v3348_v36 = vrot.slane %v8418_v33, 1 }
 0x2e0   : > { %2324 = vrot.lane.b32.xlu1 %v8125_v57, %s6686_s27  ;;  %v3629_v19 = vrot.slane %v3627_v12, 1  ;;  %v3630_v62 = vrot.slane %v2854_v46, 2  ;;  %v3960_v26 = vrot.slane %v8418_v33, 2  ;;  %v2856_v12 = vrot.slane %v2854_v46, 1 }
 0x2e1   : > { %v8431_v48 = vpop.f32.mrf.mxu2  ;;  %6266 = vmatmul.msk.bf16.gmra.mxu3 %vm1503_vm8, %v1857_v5  ;;  %v2852_v61 = vrot.slane %v2850_v6, 1  ;;  %v3624_v1 = vrot.slane %v2848_v35, 1  ;;  %v3625_v63 = vrot.slane %v2850_v6, 2  ;;  %v8436_v49 = vsel %vm1830_vm5, %v3348_v36, %v3349_v16 }
 0x2e2   : > { %11024 = vst [vmem:[#allocation112_spill] sm:$0xff] %v8431_v48  ;;  %v3631_v42 = vor.u32 %v3630_v62, %v3629_v19  ;;  %v8439_v59 = vsel %vm3950_vm14, %v3960_v26, %v3961_v51  ;;  %v11031_v62 = vld [vmem:[#allocation76_spill] sm:$0xff]  ;;  %v1862_v26 = vrot.slane %v8015_v38, 1 }
 0x2e3   : > { %11025 = vst [vmem:[#allocation116_spill] sm:$0xff] %v8439_v59  ;;  %v2853_v18 = vor.u32 %v2852_v61, %v2848_v35  ;;  %v3626_v48 = vor.u32 %v3625_v63, %v3624_v1  ;;  %v1858_v35 = vrot.slane %v7940_v9, 1  ;;  %v1861_v61 = vrot.slane %v7990_v23, 1 }
 0x2e5   : > { %v2181_v25 = vpop.permute.xlu1 %2180  ;;  %v2857_v15 = vsel %vm1294_vm9, %v2853_v18, %v2856_v12  ;;  %6330 = vmatmul.msk.bf16.vlgmr.msrb.gmra.mxu1 %vm3018_vm13, %v8099_v50  ;;  %v8447_v5 = vsel %vm3596_vm12, %v3626_v48, %v3631_v42  ;;  %v8462_v18 = vpop.f32.mrf.mxu1  ;;  %v1863_v12 = vsel %vm1830_vm5, %v1861_v61, %v1862_v26 }
 0x2e6   : > { %v2206_v16 = vrot.slane %v2181_v25, 7  ;;  %6297 = vmatmul.msk.bf16.gmra.mxu0 %vm3018_vm13, %v2857_v15  ;;  %11028 = vst [vmem:[#allocation119_spill] sm:$0xff] %v8462_v18  ;;  %v1859_v15 = vrot.slane %v7947_v29, 1  ;;  %v8467_v25 = vpop.f32.mrf.mxu3 }
 0x2e7   : > { %11029 = vst [vmem:[#allocation120_spill] sm:$0xff] %v8467_v25 }
 0x2e8   : > { %v8451_v6 = vsel %vm921_vm1, 0, %v2206_v16  ;;  %v8454_v51 = vsel %vm921_vm1, %v2206_v16, 0  ;;  %v1860_v19 = vsel %vm1830_vm5, %v1858_v35, %v1859_v15  ;;  %v1865_v15 = vrot.slane %v8066_v24, 1 }
 0x2e9   : > { %v8456_v46 = vpop.f32.mrf.mxu2  ;;  %2518 = vrot.lane.b32.xlu0 %v8454_v51, %s6683_s16  ;;  %2456 = vrot.lane.b32.xlu2 %v8451_v6, %s6687_s28  ;;  %v1864_v35 = vrot.slane %v8040_v7, 1 }
 0x2ea   : > { %11027 = vst [vmem:[#allocation118_spill] sm:$0xff] %v8456_v46  ;;  %2516 = vrot.lane.b32.xlu1 %v8451_v6, %s6683_s16 }
 0x2eb   : > { %v1866_v26 = vsel %vm1830_vm5, %v1864_v35, %v1865_v15  ;;  %v2447_v15 = vpop.permute.xlu2 %2446 }
 0x2ed   : > { %v8482_v29 = vpop.f32.mrf.mxu1  ;;  %v2317_v35 = vpop.permute.xlu1 %2316 }
 0x2ee   : > { %6222 = vmatmul.msk.bf16.gmra.mxu2 %vm1503_vm8, %v7873_v31  ;;  %v8486_v31 = vpop.f32.mrf.mxu3 }
 0x2f1   : > { %v8472_v36 = vpop.f32.mrf.mxu2  ;;  %2392 = vrot.lane.b32.xlu0 %v8361_v28, %s6684_s17  ;;  %2458 = vrot.lane.b32.xlu2 %v8454_v51, %s6687_s28 }
 0x2f2   : > { %11030 = vst [vmem:[#allocation121_spill] sm:$0xff] %v8472_v36  ;;  %2186 = vrot.lane.b32.xlu1 %v11031_v62, %s6683_s16  ;;  %6267 = vmatmul.msk.bf16.gmra.mxu3 %vm1503_vm8, %v1860_v19 }
 0x2f5   : > { %6331 = vmatmul.msk.bf16.gmra.mxu1 %vm3018_vm13, %v8252_v27  ;;  %v8500_v1 = vpop.f32.mrf.mxu1 }
 0x2f6   : > { %11033 = vst [vmem:[#allocation122_spill] sm:$0xff] %v8500_v1  ;;  %v8504_v42 = vpop.f32.mrf.mxu3 }
 0x2f7   : > { %11035 = vst [vmem:[#allocation124_spill] sm:$0xff] %v8504_v42 }
 0x2f9   : > { %v8488_v48 = vpop.f32.mrf.mxu2  ;;  %2394 = vrot.lane.b32.xlu0 %v8364_v3, %s6684_s17  ;;  %2330 = vrot.lane.b32.xlu2 %v8361_v28, %s6686_s27 }
 0x2fa   : > { %11032 = vst [vmem:[#allocation76_spill] sm:$0xff] %v8488_v48  ;;  %2328 = vrot.lane.b32.xlu1 %v8276_v30, %s6686_s27 }
 0x2fd   : > { %v8510_v16 = vpop.f32.mrf.mxu1 }
 0x2fe   : > { %6223 = vmatmul.msk.bf16.gmra.mxu2 %vm1503_vm8, %v7896_v14  ;;  %11036 = vst [vmem:[#allocation125_spill] sm:$0xff] %v8510_v16  ;;  %v8514_v14 = vpop.f32.mrf.mxu3 }
 0x2ff   : > { %11038 = vst [vmem:[#allocation127_spill] sm:$0xff] %v8514_v14  ;;  %v1870_v14 = vrot.slane %v8141_v52, 1 }
 0x301   : > { %v8502_v63 = vpop.f32.mrf.mxu2 }
 0x302   : > { %11034 = vst [vmem:[#allocation123_spill] sm:$0xff] %v8502_v63  ;;  %6268 = vmatmul.msk.bf16.gmra.mxu3 %vm1503_vm8, %v1863_v12  ;;  %v2381_v12 = vpop.permute.xlu0 %2380 }
 0x305   : > { %6332 = vmatmul.msk.bf16.gmra.mxu1 %vm3018_vm13, %v8329_v32  ;;  %v8520_v19 = vpop.f32.mrf.mxu1 }
 0x306   : > { %v8526_v61 = vpop.f32.mrf.mxu3 }
 0x309   : > { %v8512_v38 = vpop.f32.mrf.mxu2 }
 0x30a   : > { %11037 = vst [vmem:[#allocation126_spill] sm:$0xff] %v8512_v38 }
 0x30d   : > { %v8532_v38 = vpop.f32.mrf.mxu1 }
 0x30e   : > { %6224 = vmatmul.msk.bf16.gmra.mxu2 %vm1503_vm8, %v7970_v58  ;;  %11041 = vst [vmem:[#allocation130_spill] sm:$0xff] %v8532_v38  ;;  %v1868_v58 = vrot.slane %v8107_v21, 1  ;;  %v8535_v63 = vpop.f32.mrf.mxu3 }
 0x30f   : > { %11042 = vst [vmem:[#allocation131_spill] sm:$0xff] %v8535_v63 }
 0x311   : > { %v8522_v62 = vpop.f32.mrf.mxu2 }
 0x312   : > { %11039 = vst [vmem:[#allocation128_spill] sm:$0xff] %v8522_v62  ;;  %6269 = vmatmul.msk.bf16.gmra.mxu3 %vm1503_vm8, %v1866_v26  ;;  %v1867_v26 = vrot.slane %v8096_v8, 1  ;;  %v2383_v62 = vpop.permute.xlu0 %2382 }
 0x315   : > { %6333 = vmatmul.msk.bf16.gmra.mxu1 %vm3018_vm13, %v8418_v33  ;;  %v1869_v33 = vsel %vm1830_vm5, %v1867_v26, %v1868_v58  ;;  %v8546_v21 = vpop.f32.mrf.mxu1 }
 0x316   : > { %11044 = vst [vmem:[#allocation133_spill] sm:$0xff] %v8546_v21  ;;  %v8553_v59 = vpop.f32.mrf.mxu3 }
 0x317   : > { %11045 = vst [vmem:[#allocation134_spill] sm:$0xff] %v8553_v59 }
 0x319   : > { %v8530_v24 = vpop.f32.mrf.mxu2 }
 0x31a   : > { %11040 = vst [vmem:[#allocation129_spill] sm:$0xff] %v8530_v24  ;;  %v2572_v24 = vsel %vm2552_vm10, %v7807_v22, %v2317_v35  ;;  %v1871_v22 = vrot.slane %v8150_v56, 1 }
 0x31b   : > { %v2636_v36 = vsel %vm1120_vm6, %v2572_v24, %v2383_v62 }
 0x31c   : > { %v2701_v58 = vsel %vm2681_vm11, %v2636_v36, %v2447_v15 }
 0x31e   : > { %6225 = vmatmul.msk.bf16.gmra.mxu2 %vm1503_vm8, %v8367_v0  ;;  %v2570_v0 = vsel %vm2552_vm10, %v7828_v47, %v8294_v60 }
 0x31f   : > { %v2634_v46 = vsel %vm1120_vm6, %v2570_v0, %v2381_v12 }
 0x321   : > { %v8540_v48 = vpop.f32.mrf.mxu2 }
 0x322   : > { %11043 = vst [vmem:[#allocation132_spill] sm:$0xff] %v8540_v48  ;;  %6270 = vmatmul.msk.bf16.gmra.mxu3 %vm1503_vm8, %v1869_v33  ;;  %v8555_v48 = vpop.permute.xlu2 %2318  ;;  %v2699_v33 = vsel %vm2681_vm11, %v2634_v46, %v8335_v4 }
 0x329   : > { %v2511_v26 = vpop.permute.xlu0 %2510  ;;  %v8562_v47 = vpop.f32.mrf.mxu2 }
 0x32a   : > { %v2509_v35 = vpop.permute.xlu1 %2508  ;;  %v2765_v21 = vsel %vm1217_vm7, %v2701_v58, %v2511_v26  ;;  %11046 = vst [vmem:[#allocation135_spill] sm:$0xff] %v8562_v47  ;;  %v2449_v42 = vpop.permute.xlu2 %2448 }
 0x32b   : > { %v2763_v60 = vsel %vm1217_vm7, %v2699_v33, %v2509_v35  ;;  %v2864_v62 = vshll.u32 %v2765_v21, 16  ;;  %v3352_v12 = vrot.slane %v2765_v21, 1  ;;  %v3636_v24 = vshrl.u32 %v2765_v21, 16  ;;  %v8572_v33 = vpop.f32.mrf.mxu1 }
 0x32c   : > { %v2858_v0 = vshrl.u32 %v2763_v60, 16  ;;  %v2860_v59 = vshll.u32 %v2763_v60, 16  ;;  %v3964_v63 = vrot.slane %v2765_v21, 2  ;;  %6334 = vmatmul.msk.bf16.gmra.mxu1 %vm3018_vm13, %v2763_v60  ;;  %v3351_v36 = vrot.slane %v2763_v60, 1  ;;  %v6529_v21 = vld [vmem:[%s10732_s5 + $0x98] sm:$0xff] }
 0x32d   : > { %v3638_v56 = vrot.slane %v3636_v24, 1  ;;  %v3639_v15 = vrot.slane %v2864_v62, 2  ;;  %v3963_v4 = vrot.slane %v2763_v60, 2  ;;  %v2866_v60 = vrot.slane %v2864_v62, 1  ;;  %3832 = vmatpush.bf16.msra.mxu3 %v6529_v21  ;;  %v8592_v62 = vpop.f32.mrf.mxu3 }
 0x32e   : > { %6226 = vmatmul.msk.bf16.gmra.mxu2 %vm1503_vm8, %v7922_v45  ;;  %v2862_v46 = vrot.slane %v2860_v59, 1  ;;  %v3633_v58 = vrot.slane %v2858_v0, 1  ;;  %v3634_v26 = vrot.slane %v2860_v59, 2  ;;  %v8570_v35 = vsel %vm1830_vm5, %v3351_v36, %v3352_v12 }
 0x32f   : > { %v3640_v24 = vor.u32 %v3639_v15, %v3638_v56  ;;  %v8578_v47 = vsel %vm3950_vm14, %v3963_v4, %v3964_v63  ;;  %v1872_v12 = vsel %vm1830_vm5, %v1870_v14, %v1871_v22  ;;  %v6528_v63 = vld [vmem:[%s10732_s5 + $0x90] sm:$0xff]  ;;  %v6526_v4 = vld [vmem:[%s10732_s5 + $0x80] sm:$0xff]  ;;  %v2574_v21 = vsel %vm2552_vm10, %v7961_v54, %v8555_v48  ;;  %v6525_v54 = vld [vmem:[%s10732_s5 + $0x78] sm:$0xff] }
 0x330   : > { %11047 = vst [vmem:[#allocation136_spill] sm:$0xff] %v8578_v47  ;;  %v2863_v38 = vor.u32 %v2862_v46, %v2858_v0  ;;  %v3635_v16 = vor.u32 %v3634_v26, %v3633_v58  ;;  %v1873_v58 = vrot.slane %v8180_v43, 1  ;;  %v1874_v48 = vrot.slane %v8197_v2, 1 }
 0x331   : > { %v2385_v45 = vpop.permute.xlu0 %2384  ;;  %v8585_v18 = vpop.f32.mrf.mxu2  ;;  %3833 = vmatpush.bf16.msra.mxu3 %v6528_v63 }
 0x332   : > { %v2183_v59 = vpop.permute.xlu1 %2182  ;;  %v2867_v36 = vsel %vm1294_vm9, %v2863_v38, %v2866_v60  ;;  %v8583_v25 = vsel %vm3596_vm12, %v3635_v16, %v3640_v24  ;;  %6271 = vmatmul.msk.bf16.gmra.mxu3 %vm1503_vm8, %v1872_v12  ;;  %v6527_v16 = vld [vmem:[%s10732_s5 + $0x88] sm:$0xff]  ;;  %v2451_v46 = vpop.permute.xlu2 %2450  ;;  %v11050_v60 = vld [vmem:[#allocation81_spill] sm:$0xff] }
 0x333   : > { %v2207_v1 = vrot.slane %v2183_v59, 7  ;;  %6298 = vmatmul.msk.bf16.gmra.mxu0 %vm3018_vm13, %v2867_v36  ;;  %v8609_v22 = vpop.f32.mrf.mxu1 }
 0x334   : > { %11048 = vst [vmem:[#allocation137_spill] sm:$0xff] %v8609_v22 }
 0x335   : > { %v8595_v14 = vsel %vm921_vm1, 0, %v2207_v1  ;;  %v8598_v38 = vsel %vm921_vm1, %v2207_v1, 0  ;;  %3834 = vmatpush.bf16.msra.mxu3 %v6527_v16  ;;  %v8619_v26 = vpop.f32.mrf.mxu3 }
 0x336   : > { %2522 = vrot.lane.b32.xlu0 %v8598_v38, %s6683_s16  ;;  %2460 = vrot.lane.b32.xlu2 %v8595_v14, %s6687_s28  ;;  %11049 = vst [vmem:[#allocation138_spill] sm:$0xff] %v8619_v26 }
 0x337   : > { %2520 = vrot.lane.b32.xlu1 %v8595_v14, %s6683_s16 }
 0x339   : > { %v2387_v0 = vpop.permute.xlu0 %2386  ;;  %v8613_v15 = vpop.f32.mrf.mxu2  ;;  %3835 = vmatpush.bf16.msra.mxu3 %v6526_v4 }
 0x33a   : > { %v2321_v1 = vpop.permute.xlu1 %2320 }
 0x33b   : > { %v2576_v56 = vsel %vm2552_vm10, %v7964_v40, %v2321_v1  ;;  %v2638_v40 = vsel %vm1120_vm6, %v2574_v21, %v2385_v45  ;;  %v8638_v59 = vpop.f32.mrf.mxu1 }
 0x33c   : > { %v2640_v24 = vsel %vm1120_vm6, %v2576_v56, %v2387_v0  ;;  %11051 = vst [vmem:[#allocation81_spill] sm:$0xff] %v8638_v59  ;;  %v2703_v45 = vsel %vm2681_vm11, %v2638_v40, %v2449_v42  ;;  %v1875_v0 = vsel %vm1830_vm5, %v1873_v58, %v1874_v48  ;;  %v2323_v58 = vpop.permute.xlu2 %2322 }
 0x33d   : > { %v2705_v12 = vsel %vm2681_vm11, %v2640_v24, %v2451_v46  ;;  %3836 = vmatpush.bf16.msra.mxu3 %v6525_v54  ;;  %v8649_v54 = vpop.f32.mrf.mxu3 }
 0x33e   : > { %2396 = vrot.lane.b32.xlu0 %v8451_v6, %s6684_s17  ;;  %2462 = vrot.lane.b32.xlu2 %v8598_v38, %s6687_s28  ;;  %11053 = vst [vmem:[#allocation140_spill] sm:$0xff] %v8649_v54 }
 0x33f   : > { %2188 = vrot.lane.b32.xlu1 %v11050_v60, %s6683_s16  ;;  %6227 = vmatmul.msk.bf16.gmra.mxu2 %vm1503_vm8, %v7940_v9 }
 0x341   : > { %v2515_v36 = vpop.permute.xlu0 %2514  ;;  %v8645_v21 = vpop.f32.mrf.mxu2 }
 0x342   : > { %v2513_v63 = vpop.permute.xlu1 %2512  ;;  %v2769_v16 = vsel %vm1217_vm7, %v2705_v12, %v2515_v36  ;;  %11052 = vst [vmem:[#allocation139_spill] sm:$0xff] %v8645_v21  ;;  %6272 = vmatmul.msk.bf16.gmra.mxu3 %vm1503_vm8, %v1875_v0 }
 0x343   : > { %v2767_v9 = vsel %vm1217_vm7, %v2703_v45, %v2513_v63  ;;  %v2874_v1 = vshll.u32 %v2769_v16, 16  ;;  %v3355_v56 = vrot.slane %v2769_v16, 1  ;;  %v3645_v4 = vshrl.u32 %v2769_v16, 16  ;;  %v8667_v55 = vpop.f32.mrf.mxu1 }
 0x344   : > { %v2868_v2 = vshrl.u32 %v2767_v9, 16  ;;  %v2870_v46 = vshll.u32 %v2767_v9, 16  ;;  %6335 = vmatmul.msk.bf16.gmra.mxu1 %vm3018_vm13, %v2767_v9  ;;  %v3967_v42 = vrot.slane %v2769_v16, 2  ;;  %v3354_v40 = vrot.slane %v2767_v9, 1 }
 0x345   : > { %v3647_v24 = vrot.slane %v3645_v4, 1  ;;  %v3648_v60 = vrot.slane %v2874_v1, 2  ;;  %v3966_v16 = vrot.slane %v2767_v9, 2  ;;  %v2876_v0 = vrot.slane %v2874_v1, 1 }
 0x346   : > { %2398 = vrot.lane.b32.xlu0 %v8454_v51, %s6684_s17  ;;  %2334 = vrot.lane.b32.xlu2 %v8451_v6, %s6686_s27  ;;  %v2872_v48 = vrot.slane %v2870_v46, 1  ;;  %v3642_v12 = vrot.slane %v2868_v2, 1  ;;  %v3643_v36 = vrot.slane %v2870_v46, 2  ;;  %v8658_v45 = vsel %vm1830_vm5, %v3354_v40, %v3355_v56 }
 0x347   : > { %2332 = vrot.lane.b32.xlu1 %v8364_v3, %s6686_s27  ;;  %v3649_v63 = vor.u32 %v3648_v60, %v3647_v24  ;;  %v8661_v54 = vsel %vm3950_vm14, %v3966_v16, %v3967_v42  ;;  %v1877_v56 = vrot.slane %v8223_v11, 1 }
 0x348   : > { %v2873_v4 = vor.u32 %v2872_v48, %v2868_v2  ;;  %v3644_v47 = vor.u32 %v3643_v36, %v3642_v12  ;;  %11054 = vst [vmem:[#allocation141_spill] sm:$0xff] %v8661_v54 }
 0x349   : > { %v2389_v26 = vpop.permute.xlu0 %2388  ;;  %v8669_v60 = vpop.f32.mrf.mxu2 }
 0x34a   : > { %v2185_v59 = vpop.permute.xlu1 %2184  ;;  %v2877_v22 = vsel %vm1294_vm9, %v2873_v4, %v2876_v0  ;;  %v8665_v46 = vsel %vm3596_vm12, %v3644_v47, %v3649_v63  ;;  %11055 = vst [vmem:[#allocation142_spill] sm:$0xff] %v8669_v60  ;;  %v8687_v47 = vpop.f32.mrf.mxu3  ;;  %v2578_v63 = vsel %vm2552_vm10, %v8046_v53, %v2323_v58 }
 0x34b   : > { %v2208_v24 = vrot.slane %v2185_v59, 7  ;;  %6299 = vmatmul.msk.bf16.gmra.mxu0 %vm3018_vm13, %v2877_v22  ;;  %v2453_v22 = vpop.permute.xlu2 %2452  ;;  %v1876_v59 = vrot.slane %v8220_v44, 1  ;;  %v2642_v4 = vsel %vm1120_vm6, %v2578_v63, %v2389_v26 }
 0x34d   : > { %v8673_v9 = vsel %vm921_vm1, 0, %v2208_v24  ;;  %v8676_v1 = vsel %vm921_vm1, %v2208_v24, 0  ;;  %v1878_v11 = vsel %vm1830_vm5, %v1876_v59, %v1877_v56  ;;  %v8714_v56 = vpop.f32.mrf.mxu0 }
 0x34e   : > { %11056 = vst [vmem:[#allocation143_spill] sm:$0xff] %v8673_v9  ;;  %2526 = vrot.lane.b32.xlu0 %v8676_v1, %s6683_s16  ;;  %2464 = vrot.lane.b32.xlu2 %v8673_v9, %s6687_s28 }
 0x34f   : > { %2524 = vrot.lane.b32.xlu1 %v8673_v9, %s6683_s16  ;;  %6228 = vmatmul.msk.bf16.gmra.mxu2 %vm1503_vm8, %v7990_v23  ;;  %v11058_v23 = vld [vmem:[#allocation86_spill] sm:$0xff] }
 0x351   : > { %v8691_v42 = vpop.f32.mrf.mxu2  ;;  %v2391_v48 = vpop.permute.xlu0 %2390 }
 0x352   : > { %v2325_v2 = vpop.permute.xlu1 %2324  ;;  %6273 = vmatmul.msk.bf16.gmra.mxu3 %vm1503_vm8, %v1878_v11  ;;  %v8694_v40 = vpop.f32.mrf.mxu1 }
 0x353   : > { %11057 = vst [vmem:[#allocation144_spill] sm:$0xff] %v8694_v40  ;;  %v2580_v12 = vsel %vm2552_vm10, %v8049_v13, %v2325_v2  ;;  %v2455_v0 = vpop.permute.xlu2 %2454 }
 0x354   : > { %v8704_v36 = vpop.f32.mrf.mxu3  ;;  %v2644_v16 = vsel %vm1120_vm6, %v2580_v12, %v2391_v48 }
 0x355   : > { %11059 = vst [vmem:[#allocation86_spill] sm:$0xff] %v8704_v36  ;;  %v2709_v59 = vsel %vm2681_vm11, %v2644_v16, %v2455_v0 }
 0x356   : > { %2400 = vrot.lane.b32.xlu0 %v8595_v14, %s6684_s17  ;;  %2466 = vrot.lane.b32.xlu2 %v8676_v1, %s6687_s28 }
 0x357   : > { %2190 = vrot.lane.b32.xlu1 %v11058_v23, %s6683_s16  ;;  %v2707_v23 = vsel %vm2681_vm11, %v2642_v4, %v2453_v22 }
 0x359   : > { %v8710_v13 = vpop.f32.mrf.mxu2 }
 0x35a   : > { %11060 = vst [vmem:[#allocation145_spill] sm:$0xff] %v8710_v13  ;;  %v8712_v24 = vpop.f32.mrf.mxu1 }
 0x35b   : > { %11061 = vst [vmem:[#allocation146_spill] sm:$0xff] %v8712_v24  ;;  %v2519_v2 = vpop.permute.xlu0 %2518 }
 0x35c   : > { %v2517_v11 = vpop.permute.xlu1 %2516  ;;  %v2773_v54 = vsel %vm1217_vm7, %v2709_v59, %v2519_v2 }
 0x35d   : > { %v2771_v53 = vsel %vm1217_vm7, %v2707_v23, %v2517_v11  ;;  %v2884_v58 = vshll.u32 %v2773_v54, 16  ;;  %v3358_v48 = vrot.slane %v2773_v54, 1  ;;  %v3654_v63 = vshrl.u32 %v2773_v54, 16  ;;  %v8729_v23 = vpop.f32.mrf.mxu3 }
 0x35e   : > { %2402 = vrot.lane.b32.xlu0 %v8598_v38, %s6684_s17  ;;  %2338 = vrot.lane.b32.xlu2 %v8595_v14, %s6686_s27  ;;  %v2878_v26 = vshrl.u32 %v2771_v53, 16  ;;  %v2880_v12 = vshll.u32 %v2771_v53, 16  ;;  %v3970_v16 = vrot.slane %v2773_v54, 2  ;;  %v3357_v0 = vrot.slane %v2771_v53, 1  ;;  %11062 = vst [vmem:[#allocation147_spill] sm:$0xff] %v8729_v23 }
 0x35f   : > { %2336 = vrot.lane.b32.xlu1 %v8454_v51, %s6686_s27  ;;  %6336 = vmatmul.msk.bf16.gmra.mxu1 %vm3018_vm13, %v2771_v53  ;;  %v3657_v22 = vrot.slane %v2884_v58, 2  ;;  %v3656_v4 = vrot.slane %v3654_v63, 1  ;;  %v3969_v36 = vrot.slane %v2771_v53, 2  ;;  %v2886_v40 = vrot.slane %v2884_v58, 1  ;;  %v8747_v53 = vpop.f32.mrf.mxu0 }
 0x360   : > { %6229 = vmatmul.msk.bf16.gmra.mxu2 %vm1503_vm8, %v8040_v7  ;;  %v2882_v59 = vrot.slane %v2880_v12, 1  ;;  %v3651_v2 = vrot.slane %v2878_v26, 1  ;;  %v3652_v11 = vrot.slane %v2880_v12, 2  ;;  %v8732_v24 = vsel %vm1830_vm5, %v3357_v0, %v3358_v48  ;;  %11065 = vst [vmem:[#allocation150_spill] sm:$0xff] %v8747_v53 }
 0x361   : > { %v8734_v13 = vpop.f32.mrf.mxu2  ;;  %v3658_v63 = vor.u32 %v3657_v22, %v3656_v4  ;;  %v8741_v21 = vsel %vm3950_vm14, %v3969_v36, %v3970_v16  ;;  %v11067_v16 = vld [vmem:[#allocation91_spill] sm:$0xff] }
 0x362   : > { %11063 = vst [vmem:[#allocation148_spill] sm:$0xff] %v8734_v13  ;;  %6402 = vmatmul.msk.bf16.vlgmr.msra.gmra.mxu3 %vm3018_vm13, %v8117_v41  ;;  %v8738_v54 = vpop.f32.mrf.mxu1  ;;  %v2883_v7 = vor.u32 %v2882_v59, %v2878_v26  ;;  %v3653_v60 = vor.u32 %v3652_v11, %v3651_v2 }
 0x363   : > { %11064 = vst [vmem:[#allocation149_spill] sm:$0xff] %v8741_v21 }
 0x364   : > { %v2187_v12 = vpop.permute.xlu1 %2186  ;;  %v2887_v23 = vsel %vm1294_vm9, %v2883_v7, %v2886_v40  ;;  %v8745_v48 = vsel %vm3596_vm12, %v3653_v60, %v3658_v63 }
 0x365   : > { %v2209_v58 = vrot.slane %v2187_v12, 7  ;;  %6300 = vmatmul.msk.bf16.gmra.mxu0 %vm3018_vm13, %v2887_v23  ;;  %v8766_v36 = vpop.f32.mrf.mxu3  ;;  %v6523_v12 = vld [vmem:[%s10732_s5 + $0x68] sm:$0xff] }
 0x367   : > { %v8751_v41 = vsel %vm921_vm1, 0, %v2209_v58  ;;  %v8754_v26 = vsel %vm921_vm1, %v2209_v58, 0  ;;  %v3081_v22 = vpop.f32.mrf.mxu0 }
 0x368   : > { %2530 = vrot.lane.b32.xlu0 %v8754_v26, %s6683_s16  ;;  %2468 = vrot.lane.b32.xlu2 %v8751_v41, %s6687_s28 }
 0x369   : > { %2528 = vrot.lane.b32.xlu1 %v8751_v41, %s6683_s16  ;;  %v8762_v60 = vpop.f32.mrf.mxu2 }
 0x36a   : > { %v8764_v40 = vpop.f32.mrf.mxu1 }
 0x36b   : > { %11066 = vst [vmem:[#allocation151_spill] sm:$0xff] %v8764_v40 }
 0x36d   : > { %v8782_v2 = vpop.f32.mrf.mxu3 }
 0x36e   : > { %11069 = vst [vmem:[#allocation152_spill] sm:$0xff] %v8782_v2 }
 0x370   : > { %6230 = vmatmul.msk.bf16.gmra.mxu2 %vm1503_vm8, %v8096_v8  ;;  %2404 = vrot.lane.b32.xlu0 %v8673_v9, %s6684_s17  ;;  %v8784_v8 = vpop.f32.mrf.mxu0 }
 0x371   : > { %2470 = vrot.lane.b32.xlu2 %v8754_v26, %s6687_s28  ;;  %2192 = vrot.lane.b32.xlu1 %v11067_v16, %s6683_s16  ;;  %v8776_v0 = vpop.f32.mrf.mxu2  ;;  %11070 = vst [vmem:[#allocation153_spill] sm:$0xff] %v8784_v8 }
 0x372   : > { %11068 = vst [vmem:[#allocation91_spill] sm:$0xff] %v8776_v0  ;;  %6403 = vmatmul.msk.bf16.gmra.mxu3 %vm3018_vm13, %v8269_v20  ;;  %v3232_v4 = vpop.f32.mrf.mxu1  ;;  %v6524_v20 = vld [vmem:[%s10732_s5 + $0x70] sm:$0xff] }
 0x373   : > { %v8780_v59 = vadd.f32 %v3232_v4, %v3081_v22  ;;  %3478 = vmatpush.bf16.msra.mxu2 %v6524_v20  ;;  %v6522_v4 = vld [vmem:[%s10732_s5 + $0x60] sm:$0xff]  ;;  %v2327_v20 = vpop.permute.xlu2 %2326 }
 0x375   : > { %v8799_v63 = vpop.f32.mrf.mxu3 }
 0x376   : > { %11073 = vst [vmem:[#allocation156_spill] sm:$0xff] %v8799_v63 }
 0x377   : > { %3479 = vmatpush.bf16.msra.mxu2 %v6523_v12 }
 0x378   : > { %2406 = vrot.lane.b32.xlu0 %v8676_v1, %s6684_s17  ;;  %v3086_v7 = vpop.f32.mrf.mxu0 }
 0x379   : > { %2342 = vrot.lane.b32.xlu2 %v8673_v9, %s6686_s27  ;;  %2340 = vrot.lane.b32.xlu1 %v8598_v38, %s6686_s27  ;;  %v8792_v11 = vpop.f32.mrf.mxu2 }
 0x37a   : > { %11071 = vst [vmem:[#allocation154_spill] sm:$0xff] %v8792_v11  ;;  %v8794_v23 = vpop.f32.mrf.mxu1 }
 0x37b   : > { %11072 = vst [vmem:[#allocation155_spill] sm:$0xff] %v8794_v23  ;;  %3480 = vmatpush.bf16.msra.mxu2 %v6522_v4  ;;  %v2457_v12 = vpop.permute.xlu2 %2456 }
 0x37d   : > { %v8820_v8 = vpop.f32.mrf.mxu3 }
 0x37e   : > { %11075 = vst [vmem:[#allocation158_spill] sm:$0xff] %v8820_v8 }
 0x380   : > { %6231 = vmatmul.msk.bf16.gmra.mxu2 %vm1503_vm8, %v8141_v52  ;;  %v6521_v52 = vld [vmem:[%s10732_s5 + $0x58] sm:$0xff]  ;;  %v8818_v23 = vpop.f32.mrf.mxu0 }
 0x381   : > { %v8806_v58 = vpop.f32.mrf.mxu2  ;;  %11074 = vst [vmem:[#allocation157_spill] sm:$0xff] %v8818_v23  ;;  %3481 = vmatpush.bf16.msra.mxu2 %v6521_v52  ;;  %v2393_v52 = vpop.permute.xlu0 %2392 }
 0x382   : > { %6404 = vmatmul.msk.bf16.gmra.mxu3 %vm3018_vm13, %v8350_v37  ;;  %v3237_v22 = vpop.f32.mrf.mxu1 }
 0x383   : > { %v8810_v16 = vadd.f32 %v3237_v22, %v3086_v7  ;;  %v6520_v7 = vld [vmem:[%s10732_s5 + $0x50] sm:$0xff]  ;;  %v2459_v21 = vpop.permute.xlu2 %2458 }
 0x385   : > { %3482 = vmatpush.bf16.msra.mxu2 %v6520_v7  ;;  %v2329_v7 = vpop.permute.xlu1 %2328 }
 0x386   : > { %v2584_v2 = vsel %vm2552_vm10, %v8125_v57, %v2329_v7 }
 0x388   : > { %v3091_v22 = vpop.f32.mrf.mxu0 }
 0x389   : > { %v8822_v40 = vpop.f32.mrf.mxu2 }
 0x38a   : > { %11076 = vst [vmem:[#allocation159_spill] sm:$0xff] %v8822_v40  ;;  %v8824_v37 = vpop.f32.mrf.mxu1 }
 0x38b   : > { %11077 = vst [vmem:[#allocation160_spill] sm:$0xff] %v8824_v37  ;;  %v8837_v37 = vpop.f32.mrf.mxu3 }
 0x38c   : > { %11080 = vst [vmem:[#allocation163_spill] sm:$0xff] %v8837_v37 }
 0x390   : > { %6232 = vmatmul.msk.bf16.gmra.mxu2 %vm1503_vm8, %v8180_v43  ;;  %v2395_v43 = vpop.permute.xlu0 %2394 }
 0x391   : > { %v8831_v4 = vpop.f32.mrf.mxu2 }
 0x392   : > { %11078 = vst [vmem:[#allocation161_spill] sm:$0xff] %v8831_v4  ;;  %6405 = vmatmul.msk.bf16.gmra.mxu3 %vm3018_vm13, %v8447_v5  ;;  %v3242_v23 = vpop.f32.mrf.mxu1  ;;  %v8855_v4 = vpop.f32.mrf.mxu0 }
 0x393   : > { %v8835_v53 = vadd.f32 %v3242_v23, %v3091_v22  ;;  %v8841_v63 = vpop.f32.mrf.mxu3  ;;  %v2582_v23 = vsel %vm2552_vm10, %v8122_v34, %v2327_v20  ;;  %v2648_v22 = vsel %vm1120_vm6, %v2584_v2, %v2395_v43  ;;  %11083 = vst [vmem:[#allocation166_spill] sm:$0xff] %v8855_v4  ;;  %v3339_v20 = vrot.slane %v8099_v50, 1 }
 0x394   : > { %11081 = vst [vmem:[#allocation164_spill] sm:$0xff] %v8841_v63  ;;  %v2646_v37 = vsel %vm1120_vm6, %v2582_v23, %v2393_v52  ;;  %v2331_v63 = vpop.permute.xlu2 %2330 }
 0x395   : > { %11079 = vst [vmem:[#allocation162_spill] sm:$0xff] %v8835_v53 }
 0x399   : > { %v8839_v8 = vpop.f32.mrf.mxu2 }
 0x39a   : > { %v8857_v40 = vpop.f32.mrf.mxu1 }
 0x39b   : > { %11084 = vst [vmem:[#allocation167_spill] sm:$0xff] %v8857_v40  ;;  %v8860_v7 = vpop.f32.mrf.mxu3 }
 0x39c   : > { %11085 = vst [vmem:[#allocation168_spill] sm:$0xff] %v8860_v7 }
 0x3a0   : > { %6233 = vmatmul.msk.bf16.gmra.mxu2 %vm1503_vm8, %v8220_v44  ;;  %v2713_v44 = vsel %vm2681_vm11, %v2648_v22, %v2459_v21 }
 0x3a1   : > { %v8847_v5 = vpop.f32.mrf.mxu2 }
 0x3a2   : > { %11082 = vst [vmem:[#allocation165_spill] sm:$0xff] %v8847_v5  ;;  %6406 = vmatmul.msk.bf16.gmra.mxu3 %vm3018_vm13, %v8583_v25  ;;  %v2711_v25 = vsel %vm2681_vm11, %v2646_v37, %v2457_v12 }
 0x3a8   : > { %v2523_v57 = vpop.permute.xlu0 %2522 }
 0x3a9   : > { %v2521_v5 = vpop.permute.xlu1 %2520  ;;  %v8864_v11 = vsel %vm1217_vm7, %v2713_v44, %v2523_v57  ;;  %v8875_v43 = vpop.f32.mrf.mxu2 }
 0x3aa   : > { %v8867_v34 = vsel %vm1217_vm7, %v2711_v25, %v2521_v5  ;;  %v3361_v2 = vrot.slane %v8864_v11, 1  ;;  %v10876_v21 = vshll.u32 %v8864_v11, 16  ;;  %11086 = vst [vmem:[#allocation169_spill] sm:$0xff] %v8875_v43  ;;  %v3973_v37 = vrot.slane %v8864_v11, 2  ;;  %v2461_v25 = vpop.permute.xlu2 %2460 }
 0x3ab   : > { %v10874_v52 = vshll.u32 %v8867_v34, 16  ;;  %6337 = vmatmul.msk.bf16.gmra.mxu1 %vm3018_vm13, %v8867_v34  ;;  %v3360_v12 = vrot.slane %v8867_v34, 1  ;;  %v3340_v5 = vrot.slane %v8071_v17, 1  ;;  %v10875_v23 = vshrl.u32 %v8867_v34, 16  ;;  %v3247_v17 = vpop.f32.mrf.mxu1 }
 0x3ac   : > { %v3972_v57 = vrot.slane %v8867_v34, 2  ;;  %v2896_v40 = vrot.slane %v10876_v21, 1  ;;  %v11100_v9 = vshll.u32 %v8867_v34, 16 }
 0x3ad   : > { %v2892_v22 = vrot.slane %v10874_v52, 1  ;;  %v8884_v44 = vsel %vm1830_vm5, %v3360_v12, %v3361_v2  ;;  %v3341_v4 = vsel %vm1830_vm5, %v3339_v20, %v3340_v5  ;;  %v8900_v20 = vpop.f32.mrf.mxu3 }
 0x3ae   : > { %v8894_v52 = vsel %vm3950_vm14, %v3972_v57, %v3973_v37  ;;  %11089 = vst [vmem:[#allocation172_spill] sm:$0xff] %v8900_v20  ;;  %v2586_v57 = vsel %vm2552_vm10, %v8273_v10, %v2331_v63 }
 0x3af   : > { %v2893_v7 = vor.u32 %v2892_v22, %v10875_v23  ;;  %11087 = vst [vmem:[#allocation170_spill] sm:$0xff] %v8894_v52 }
 0x3b0   : > { %v2397_v50 = vpop.permute.xlu0 %2396  ;;  %6366 = vmatmul.msk.bf16.vlgmr.msra.gmra.mxu2 %vm3018_vm13, %v3341_v4  ;;  %v3096_v12 = vpop.f32.mrf.mxu0 }
 0x3b1   : > { %v2189_v2 = vpop.permute.xlu1 %2188  ;;  %v2897_v43 = vsel %vm1294_vm9, %v2893_v7, %v2896_v40  ;;  %v8897_v0 = vadd.f32 %v3247_v17, %v3096_v12  ;;  %v8902_v5 = vpop.f32.mrf.mxu2  ;;  %v3343_v7 = vrot.slane %v8249_v39, 1 }
 0x3b2   : > { %v2210_v53 = vrot.slane %v2189_v2, 7  ;;  %6301 = vmatmul.msk.bf16.gmra.mxu0 %vm3018_vm13, %v2897_v43  ;;  %6407 = vmatmul.msk.bf16.gmra.mxu3 %vm3018_vm13, %v8665_v46  ;;  %v2463_v43 = vpop.permute.xlu2 %2462 }
 0x3b3   : > { %11088 = vst [vmem:[#allocation171_spill] sm:$0xff] %v8897_v0  ;;  %v8936_v23 = vpop.f32.mrf.mxu1 }
 0x3b4   : > { %v8907_v4 = vsel %vm921_vm1, 0, %v2210_v53  ;;  %v8910_v37 = vsel %vm921_vm1, %v2210_v53, 0  ;;  %v3342_v53 = vrot.slane %v8252_v27, 1 }
 0x3b5   : > { %2534 = vrot.lane.b32.xlu0 %v8910_v37, %s6683_s16  ;;  %2472 = vrot.lane.b32.xlu2 %v8907_v4, %s6687_s28  ;;  %v8926_v2 = vpop.f32.mrf.mxu3 }
 0x3b6   : > { %2532 = vrot.lane.b32.xlu1 %v8907_v4, %s6683_s16  ;;  %11091 = vst [vmem:[#allocation174_spill] sm:$0xff] %v8926_v2  ;;  %v3344_v21 = vsel %vm1830_vm5, %v3342_v53, %v3343_v7 }
 0x3b8   : > { %v2399_v17 = vpop.permute.xlu0 %2398  ;;  %v8939_v10 = vpop.f32.mrf.mxu0 }
 0x3b9   : > { %v2333_v40 = vpop.permute.xlu1 %2332  ;;  %v8921_v22 = vpop.f32.mrf.mxu2  ;;  %11094 = vst [vmem:[#allocation175_spill] sm:$0xff] %v8939_v10 }
 0x3ba   : > { %v2588_v46 = vsel %vm2552_vm10, %v8276_v30, %v2333_v40  ;;  %11090 = vst [vmem:[#allocation173_spill] sm:$0xff] %v8921_v22  ;;  %v2650_v30 = vsel %vm1120_vm6, %v2586_v57, %v2397_v50  ;;  %v11092_v40 = vld [vmem:[#allocation96_spill] sm:$0xff] }
 0x3bb   : > { %v2652_v12 = vsel %vm1120_vm6, %v2588_v46, %v2399_v17  ;;  %11093 = vst [vmem:[#allocation96_spill] sm:$0xff] %v8936_v23  ;;  %v2715_v2 = vsel %vm2681_vm11, %v2650_v30, %v2461_v25 }
 0x3bc   : > { %v2717_v63 = vsel %vm2681_vm11, %v2652_v12, %v2463_v43 }
 0x3bd   : > { %2408 = vrot.lane.b32.xlu0 %v8751_v41, %s6684_s17  ;;  %2474 = vrot.lane.b32.xlu2 %v8910_v37, %s6687_s28 }
 0x3be   : > { %2194 = vrot.lane.b32.xlu1 %v11092_v40, %s6683_s16  ;;  %v3663_v40 = vshrl.u32 %v8864_v11, 16 }
 0x3c0   : > { %v2527_v17 = vpop.permute.xlu0 %2526  ;;  %6367 = vmatmul.msk.bf16.gmra.mxu2 %vm3018_vm13, %v3344_v21 }
 0x3c1   : > { %v2525_v46 = vpop.permute.xlu1 %2524  ;;  %v8945_v20 = vsel %vm1217_vm7, %v2717_v63, %v2527_v17  ;;  %v8975_v17 = vpop.f32.mrf.mxu3 }
 0x3c2   : > { %v8948_v50 = vsel %vm1217_vm7, %v2715_v2, %v2525_v46  ;;  %v3364_v57 = vrot.slane %v8945_v20, 1  ;;  %v2904_v53 = vshll.u32 %v8945_v20, 16  ;;  %v8955_v43 = vpop.f32.mrf.mxu2  ;;  %6408 = vmatmul.msk.bf16.gmra.mxu3 %vm3018_vm13, %v8745_v48  ;;  %v3976_v21 = vrot.slane %v8945_v20, 2  ;;  %v2335_v2 = vpop.permute.xlu2 %2334  ;;  %11096 = vst [vmem:[#allocation177_spill] sm:$0xff] %v8975_v17 }
 0x3c3   : > { %v10878_v7 = vshll.u32 %v8948_v50, 16  ;;  %6338 = vmatmul.msk.bf16.gmra.mxu1 %vm3018_vm13, %v8948_v50  ;;  %11095 = vst [vmem:[#allocation176_spill] sm:$0xff] %v8955_v43  ;;  %v3363_v25 = vrot.slane %v8948_v50, 1  ;;  %v2898_v12 = vshrl.u32 %v8948_v50, 16  ;;  %v3975_v63 = vrot.slane %v8948_v50, 2  ;;  %v3252_v10 = vpop.f32.mrf.mxu1 }
 0x3c4   : > { %v2906_v46 = vrot.slane %v2904_v53, 1 }
 0x3c5   : > { %2410 = vrot.lane.b32.xlu0 %v8754_v26, %s6684_s17  ;;  %2412 = vrot.lane.b32.xlu2 %v8907_v4, %s6684_s17  ;;  %v2902_v30 = vrot.slane %v10878_v7, 1  ;;  %v8972_v48 = vsel %vm1830_vm5, %v3363_v25, %v3364_v57  ;;  %v8978_v27 = vsel %vm3950_vm14, %v3975_v63, %v3976_v21  ;;  %v11098_v7 = vshll.u32 %v8864_v11, 16  ;;  %v11101_v63 = vld [vmem:[#allocation107_spill] sm:$0xff] }
 0x3c6   : > { %2344 = vrot.lane.b32.xlu1 %v8676_v1, %s6686_s27  ;;  %11097 = vst [vmem:[#allocation178_spill] sm:$0xff] %v8978_v27  ;;  %v3665_v25 = vrot.slane %v3663_v40, 1  ;;  %v3661_v21 = vrot.slane %v11100_v9, 2  ;;  %v3346_v27 = vrot.slane %v11101_v63, 1 }
 0x3c7   : > { %v2903_v23 = vor.u32 %v2902_v30, %v2898_v12  ;;  %v3666_v39 = vrot.slane %v11098_v7, 2  ;;  %v11099_v30 = vshrl.u32 %v8867_v34, 16  ;;  %v3345_v7 = vrot.slane %v8329_v32, 1 }
 0x3c8   : > { %v3101_v52 = vpop.f32.mrf.mxu0  ;;  %v2401_v22 = vpop.permute.xlu0 %2400 }
 0x3c9   : > { %v2191_v43 = vpop.permute.xlu1 %2190  ;;  %v8982_v0 = vadd.f32 %v3252_v10, %v3101_v52  ;;  %v2907_v57 = vsel %vm1294_vm9, %v2903_v23, %v2906_v46  ;;  %v3660_v17 = vrot.slane %v11099_v30, 1  ;;  %v3667_v34 = vor.u32 %v3666_v39, %v3665_v25  ;;  %v9008_v40 = vpop.f32.mrf.mxu3 }
 0x3ca   : > { %v2211_v13 = vrot.slane %v2191_v43, 7  ;;  %6302 = vmatmul.msk.bf16.gmra.mxu0 %vm3018_vm13, %v2907_v57  ;;  %v8991_v11 = vpop.f32.mrf.mxu2  ;;  %v2465_v10 = vpop.permute.xlu2 %2464  ;;  %v3347_v43 = vsel %vm1830_vm5, %v3345_v7, %v3346_v27  ;;  %11103 = vst [vmem:[#allocation179_spill] sm:$0xff] %v9008_v40  ;;  %v3672_v39 = vshrl.u32 %v8945_v20, 16  ;;  %v2590_v27 = vsel %vm2552_vm10, %v8361_v28, %v2335_v2  ;;  %v6534_v28 = vld [vmem:[%s10732_s5 + $0xc0] sm:$0xff] }
 0x3cb   : > { %11102 = vst [vmem:[#allocation107_spill] sm:$0xff] %v8991_v11  ;;  %v3662_v9 = vor.u32 %v3661_v21, %v3660_v17  ;;  %v2654_v21 = vsel %vm1120_vm6, %v2590_v27, %v2401_v22  ;;  %v11107_v20 = vshll.u32 %v8948_v50, 16  ;;  %4090 = vmatpush.bf16.msra.mxu0 %v6534_v28 }
 0x3cc   : > { %v8995_v52 = vsel %vm921_vm1, 0, %v2211_v13  ;;  %v8998_v23 = vsel %vm921_vm1, %v2211_v13, 0  ;;  %v3674_v7 = vrot.slane %v3672_v39, 1 }
 0x3cd   : > { %2414 = vrot.lane.b32.xlu2 %v8910_v37, %s6684_s17  ;;  %2538 = vrot.lane.b32.xlu0 %v8998_v23, %s6683_s16  ;;  %v3668_v46 = vsel %vm3596_vm12, %v3662_v9, %v3667_v34  ;;  %v3675_v9 = vrot.slane %v2904_v53, 2  ;;  %v9025_v34 = vpop.f32.mrf.mxu1  ;;  %v2719_v53 = vsel %vm2681_vm11, %v2654_v21, %v2465_v10 }
 0x3ce   : > { %2536 = vrot.lane.b32.xlu1 %v8995_v52, %s6683_s16  ;;  %11105 = vst [vmem:[#allocation181_spill] sm:$0xff] %v9025_v34 }
 0x3d0   : > { %6368 = vmatmul.msk.bf16.gmra.mxu2 %vm3018_vm13, %v3347_v43  ;;  %v2403_v57 = vpop.permute.xlu0 %2402  ;;  %v3669_v43 = vrot.slane %v2898_v12, 1 }
 0x3d1   : > { %v2337_v13 = vpop.permute.xlu1 %2336 }
 0x3d2   : > { %v9011_v30 = vpop.f32.mrf.mxu2  ;;  %6409 = vmatmul.msk.bf16.gmra.mxu3 %vm3018_vm13, %v3668_v46  ;;  %v2592_v11 = vsel %vm2552_vm10, %v8364_v3, %v2337_v13  ;;  %v2467_v25 = vpop.permute.xlu2 %2466  ;;  %v3670_v13 = vrot.slane %v11107_v20, 2 }
 0x3d3   : > { %11104 = vst [vmem:[#allocation180_spill] sm:$0xff] %v9011_v30  ;;  %v2656_v17 = vsel %vm1120_vm6, %v2592_v11, %v2403_v57  ;;  %v9027_v3 = vpop.f32.mrf.mxu0  ;;  %v9039_v11 = vpop.f32.mrf.mxu3 }
 0x3d4   : > { %11106 = vst [vmem:[#allocation182_spill] sm:$0xff] %v9027_v3  ;;  %v2721_v46 = vsel %vm2681_vm11, %v2656_v17, %v2467_v25  ;;  %v3671_v27 = vor.u32 %v3670_v13, %v3669_v43  ;;  %v3676_v17 = vor.u32 %v3675_v9, %v3674_v7 }
 0x3d5   : > { %2348 = vrot.lane.b32.xlu0 %v8754_v26, %s6686_s27  ;;  %11108 = vst [vmem:[#allocation183_spill] sm:$0xff] %v9039_v11 }
 0x3d6   : > { %2346 = vrot.lane.b32.xlu1 %v8751_v41, %s6686_s27 }
 0x3da   : > { %v2531_v40 = vpop.permute.xlu0 %2530  ;;  %v9032_v30 = vpop.f32.mrf.mxu2 }
 0x3db   : > { %v2529_v22 = vpop.permute.xlu1 %2528  ;;  %v2785_v2 = vsel %vm1217_vm7, %v2721_v46, %v2531_v40 }
 0x3dc   : > { %v2783_v12 = vsel %vm1217_vm7, %v2719_v53, %v2529_v22  ;;  %v3367_v50 = vrot.slane %v2785_v2, 1  ;;  %v2914_v39 = vshll.u32 %v2785_v2, 16  ;;  %v3979_v25 = vrot.slane %v2785_v2, 2  ;;  %v3257_v34 = vpop.f32.mrf.mxu1 }
 0x3dd   : > { %v2910_v57 = vshll.u32 %v2783_v12, 16  ;;  %6339 = vmatmul.msk.bf16.gmra.mxu1 %vm3018_vm13, %v2783_v12  ;;  %v3366_v20 = vrot.slane %v2783_v12, 1  ;;  %v2908_v10 = vshrl.u32 %v2783_v12, 16  ;;  %v3978_v46 = vrot.slane %v2783_v12, 2 }
 0x3de   : > { %2476 = vrot.lane.b32.xlu1 %v8995_v52, %s6687_s28  ;;  %v2916_v28 = vrot.slane %v2914_v39, 1  ;;  %v3677_v53 = vsel %vm3596_vm12, %v3671_v27, %v3676_v17  ;;  %v3681_v12 = vshrl.u32 %v2785_v2, 16  ;;  %v9063_v27 = vpop.f32.mrf.mxu3 }
 0x3df   : > { %v2912_v40 = vrot.slane %v2910_v57, 1  ;;  %v9048_v21 = vsel %vm1830_vm5, %v3366_v20, %v3367_v50  ;;  %v9053_v7 = vsel %vm3950_vm14, %v3978_v46, %v3979_v25  ;;  %11110 = vst [vmem:[#allocation185_spill] sm:$0xff] %v9063_v27  ;;  %v3678_v20 = vrot.slane %v2908_v10, 1 }
 0x3e0   : > { %6369 = vmatmul.msk.bf16.gmra.mxu2 %vm3018_vm13, %v8436_v49  ;;  %11109 = vst [vmem:[#allocation184_spill] sm:$0xff] %v9053_v7 }
 0x3e1   : > { %v2913_v22 = vor.u32 %v2912_v40, %v2908_v10  ;;  %v3679_v40 = vrot.slane %v2910_v57, 2 }
 0x3e2   : > { %v3106_v3 = vpop.f32.mrf.mxu0  ;;  %6410 = vmatmul.msk.bf16.gmra.mxu3 %vm3018_vm13, %v3677_v53 }
 0x3e3   : > { %v2193_v9 = vpop.permute.xlu1 %2192  ;;  %v9055_v43 = vadd.f32 %v3257_v34, %v3106_v3  ;;  %v9057_v49 = vpop.f32.mrf.mxu2  ;;  %v2917_v13 = vsel %vm1294_vm9, %v2913_v22, %v2916_v28  ;;  %v3683_v34 = vrot.slane %v3681_v12, 1  ;;  %v3684_v3 = vrot.slane %v2914_v39, 2 }
 0x3e4   : > { %v2212_v50 = vrot.slane %v2193_v9, 7  ;;  %6303 = vmatmul.msk.bf16.gmra.mxu0 %vm3018_vm13, %v2917_v13  ;;  %v3680_v46 = vor.u32 %v3679_v40, %v3678_v20  ;;  %v2339_v12 = vpop.permute.xlu2 %2338 }
 0x3e5   : > { %v3685_v28 = vor.u32 %v3684_v3, %v3683_v34  ;;  %v2405_v3 = vpop.permute.xlu0 %2404 }
 0x3e6   : > { %2478 = vrot.lane.b32.xlu1 %v8998_v23, %s6687_s28  ;;  %v2246_v17 = vsel %vm921_vm1, 0, %v2212_v50  ;;  %v9067_v25 = vsel %vm921_vm1, %v2212_v50, 0  ;;  %v9080_v22 = vpop.f32.mrf.mxu3  ;;  %v6533_v50 = vld [vmem:[%s10732_s5 + $0xb8] sm:$0xff] }
 0x3e7   : > { %2542 = vrot.lane.b32.xlu2 %v9067_v25, %s6683_s16  ;;  %2540 = vrot.lane.b32.xlu0 %v2246_v17, %s6683_s16  ;;  %11112 = vst [vmem:[#allocation187_spill] sm:$0xff] %v9080_v22  ;;  %v3686_v57 = vsel %vm3596_vm12, %v3680_v46, %v3685_v28  ;;  %v11120_v46 = vld [vmem:[#allocation109_spill] sm:$0xff] }
 0x3e8   : > { %4091 = vmatpush.bf16.msra.mxu0 %v6533_v50  ;;  %v1721_v28 = vadd.f32 %v8613_v15, %v11120_v46  ;;  %v11122_v50 = vld [vmem:[#allocation115_spill] sm:$0xff] }
 0x3eb   : > { %v9072_v2 = vpop.f32.mrf.mxu2 }
 0x3ec   : > { %11111 = vst [vmem:[#allocation186_spill] sm:$0xff] %v9072_v2  ;;  %v2469_v20 = vpop.permute.xlu2 %2468 }
 0x3ed   : > { %v2407_v22 = vpop.permute.xlu0 %2406 }
 0x3ee   : > { %2416 = vrot.lane.b32.xlu1 %v8995_v52, %s6684_s17  ;;  %v9091_v10 = vpop.f32.mrf.mxu3 }
 0x3ef   : > { %2352 = vrot.lane.b32.xlu2 %v8910_v37, %s6686_s27  ;;  %2350 = vrot.lane.b32.xlu0 %v8907_v4, %s6686_s27  ;;  %11114 = vst [vmem:[#allocation189_spill] sm:$0xff] %v9091_v10  ;;  %v2341_v10 = vpop.permute.xlu1 %2340 }
 0x3f0   : > { %6370 = vmatmul.msk.bf16.gmra.mxu2 %vm3018_vm13, %v8570_v35  ;;  %v2596_v15 = vsel %vm2552_vm10, %v8454_v51, %v2341_v10  ;;  %v9148_v51 = vpop.f32.mrf.mxu1  ;;  %v9150_v10 = vpop.f32.mrf.mxu0 }
 0x3f1   : > { %11126 = vst [vmem:[#allocation195_spill] sm:$0xff] %v9150_v10 }
 0x3f2   : > { %6411 = vmatmul.msk.bf16.gmra.mxu3 %vm3018_vm13, %v3686_v57 }
 0x3f3   : > { %v9086_v39 = vpop.f32.mrf.mxu2 }
 0x3f4   : > { %11113 = vst [vmem:[#allocation188_spill] sm:$0xff] %v9086_v39  ;;  %v2471_v27 = vpop.permute.xlu2 %2470 }
 0x3f6   : > { %2418 = vrot.lane.b32.xlu1 %v8998_v23, %s6684_s17  ;;  %v9101_v9 = vpop.f32.mrf.mxu3 }
 0x3f7   : > { %2480 = vrot.lane.b32.xlu0 %v2246_v17, %s6687_s28  ;;  %11117 = vst [vmem:[#allocation192_spill] sm:$0xff] %v9101_v9  ;;  %v2065_v9 = vadd.f32 %v11122_v50, %v1721_v28  ;;  %v2594_v50 = vsel %vm2552_vm10, %v8451_v6, %v2339_v12  ;;  %v1736_v12 = vadd.f32 %v8762_v60, %v8520_v19 }
 0x3fb   : > { %v9093_v53 = vpop.f32.mrf.mxu2 }
 0x3fc   : > { %11115 = vst [vmem:[#allocation190_spill] sm:$0xff] %v9093_v53 }
 0x3fe   : > { %v9109_v34 = vpop.f32.mrf.mxu3 }
 0x3ff   : > { %2482 = vrot.lane.b32.xlu0 %v9067_v25, %s6687_s28 }
 0x400   : > { %6371 = vmatmul.msk.bf16.gmra.mxu2 %vm3018_vm13, %v8658_v45 }
 0x403   : > { %v9099_v35 = vpop.f32.mrf.mxu2 }
 0x404   : > { %11116 = vst [vmem:[#allocation191_spill] sm:$0xff] %v9099_v35 }
 0x406   : > { %v9118_v40 = vpop.f32.mrf.mxu3 }
 0x407   : > { %2420 = vrot.lane.b32.xlu0 %v2246_v17, %s6684_s17 }
 0x40b   : > { %v9104_v13 = vpop.f32.mrf.mxu2 }
 0x40c   : > { %11118 = vst [vmem:[#allocation193_spill] sm:$0xff] %v9104_v13 }
 0x40e   : > { %v9139_v28 = vpop.f32.mrf.mxu3 }
 0x40f   : > { %2422 = vrot.lane.b32.xlu0 %v9067_v25, %s6684_s17 }
 0x410   : > { %6372 = vmatmul.msk.bf16.gmra.mxu2 %vm3018_vm13, %v8732_v24  ;;  %v9128_v24 = vld [vmem:[%s10731_s4] ss:$0 sm:$0xff] }
 0x411   : > { %v2101_v46 = vadd.f32 %v9128_v24, %v2065_v9 }
 0x413   : > { %v9115_v45 = vpop.f32.mrf.mxu2 }
 0x414   : > { %11119 = vst [vmem:[#allocation194_spill] sm:$0xff] %v9115_v45  ;;  %v11123_v45 = vld [vmem:[#allocation108_spill] sm:$0xff] }
 0x415   : > { %11125 = vst [vmem:[#allocation108_spill] sm:$0xff] %v9148_v51 }
 0x417   : > { %2358 = vrot.lane.b32.xlu0 %v2246_v17, %s6686_s27  ;;  %v1729_v17 = vadd.f32 %v8691_v42, %v8482_v29  ;;  %v2658_v29 = vsel %vm1120_vm6, %v2594_v50, %v2405_v3  ;;  %v2133_v42 = vmax.f32 %v2101_v46, 0.0 }
 0x418   : > { %v2723_v6 = vsel %vm2681_vm11, %v2658_v29, %v2469_v20 }
 0x419   : > { %v2068_v13 = vadd.f32 %v8486_v31, %v1729_v17 }
 0x41b   : > { %v9122_v57 = vpop.f32.mrf.mxu2  ;;  %v2104_v31 = vadd.f32 %v9128_v24, %v2068_v13 }
 0x41c   : > { %11121 = vst [vmem:[#allocation109_spill] sm:$0xff] %v9122_v57  ;;  %v2660_v57 = vsel %vm1120_vm6, %v2596_v15, %v2407_v22 }
 0x41f   : > { %6607 = vrot.lane.b32.xlu0 %v11123_v45, %s6687_s28 }
 0x420   : > { %6373 = vmatmul.msk.bf16.gmra.mxu2 %vm3018_vm13, %v8884_v44  ;;  %v2725_v44 = vsel %vm2681_vm11, %v2660_v57, %v2471_v27  ;;  %v2343_v27 = vpop.permute.xlu2 %2342 }
 0x423   : > { %v9144_v11 = vpop.f32.mrf.mxu2 }
 0x424   : > { %11124 = vst [vmem:[#allocation115_spill] sm:$0xff] %v9144_v11 }
 0x427   : > { %v2535_v9 = vpop.permute.xlu0 %2534  ;;  %5511 = vrot.lane.b32.xlu0 %v2133_v42, %s6684_s17  ;;  %v2136_v42 = vmax.f32 %v2104_v31, 0.0 }
 0x428   : > { %v2533_v35 = vpop.permute.xlu1 %2532  ;;  %v9156_v22 = vsel %vm1217_vm7, %v2725_v44, %v2535_v9  ;;  %v2071_v44 = vadd.f32 %v8526_v61, %v1736_v12  ;;  %v9174_v9 = vpop.f32.mrf.mxu3 }
 0x429   : > { %v9162_v3 = vsel %vm1217_vm7, %v2723_v6, %v2533_v35  ;;  %v2924_v17 = vshll.u32 %v9156_v22, 16  ;;  %v3690_v20 = vshrl.u32 %v9156_v22, 16  ;;  %v3982_v13 = vrot.slane %v9156_v22, 2  ;;  %11128 = vst [vmem:[#allocation197_spill] sm:$0xff] %v9174_v9  ;;  %v3262_v10 = vpop.f32.mrf.mxu1 }
 0x42a   : > { %v2918_v57 = vshrl.u32 %v9162_v3, 16  ;;  %v2920_v15 = vshll.u32 %v9162_v3, 16  ;;  %6340 = vmatmul.msk.bf16.gmra.mxu1 %vm3018_vm13, %v9162_v3  ;;  %v3981_v6 = vrot.slane %v9162_v3, 2 }
 0x42b   : > { %v3693_v46 = vrot.slane %v2924_v17, 2  ;;  %v3692_v50 = vrot.slane %v3690_v20, 1  ;;  %v9171_v19 = vpop.f32.mrf.mxu2  ;;  %v2926_v51 = vrot.slane %v2924_v17, 1  ;;  %v2107_v17 = vadd.f32 %v9128_v24, %v2071_v44 }
 0x42c   : > { %11127 = vst [vmem:[#allocation196_spill] sm:$0xff] %v9171_v19  ;;  %v2922_v60 = vrot.slane %v2920_v15, 1  ;;  %v3687_v35 = vrot.slane %v2918_v57, 1  ;;  %v3688_v29 = vrot.slane %v2920_v15, 2  ;;  %v9178_v20 = vsel %vm3950_vm14, %v3981_v6, %v3982_v13 }
 0x42d   : > { %v3694_v39 = vor.u32 %v3693_v46, %v3692_v50  ;;  %v2473_v46 = vpop.permute.xlu2 %2472 }
 0x42e   : > { %v2923_v11 = vor.u32 %v2922_v60, %v2918_v57  ;;  %v3689_v53 = vor.u32 %v3688_v29, %v3687_v35  ;;  %v1744_v57 = vadd.f32 %v8806_v58, %v8572_v33  ;;  %v2598_v60 = vsel %vm2552_vm10, %v8595_v14, %v2343_v27 }
 0x42f   : > { %v2409_v2 = vpop.permute.xlu0 %2408  ;;  %v3111_v7 = vpop.f32.mrf.mxu0  ;;  %5517 = vrot.lane.b32.xlu0 %v2136_v42, %s6684_s17 }
 0x430   : > { %v2195_v15 = vpop.permute.xlu1 %2194  ;;  %v9181_v31 = vadd.f32 %v3262_v10, %v3111_v7  ;;  %v2927_v61 = vsel %vm1294_vm9, %v2923_v11, %v2926_v51  ;;  %v3695_v12 = vsel %vm3596_vm12, %v3689_v53, %v3694_v39  ;;  %6374 = vmatmul.msk.bf16.gmra.mxu2 %vm3018_vm13, %v8972_v48  ;;  %v3228_v7 = vadd.f32 %v8738_v54, %v8714_v56  ;;  %v9207_v51 = vpop.f32.mrf.mxu3 }
 0x431   : > { %v2213_v9 = vrot.slane %v2195_v15, 7  ;;  %6304 = vmatmul.msk.bf16.gmra.mxu0 %vm3018_vm13, %v2927_v61  ;;  %6412 = vmatmul.msk.bf16.gmra.mxu3 %vm3018_vm13, %v3695_v12  ;;  %v2139_v53 = vmax.f32 %v2107_v17, 0.0  ;;  %v2074_v48 = vadd.f32 %v8592_v62, %v1744_v57  ;;  %v1751_v10 = vadd.f32 %v8839_v8, %v8667_v55  ;;  %v6532_v8 = vld [vmem:[%s10732_s5 + $0xb0] sm:$0xff]  ;;  %v9229_v27 = vpop.f32.mrf.mxu1 }
 0x432   : > { %11129 = vst [vmem:[#allocation198_spill] sm:$0xff] %v9229_v27  ;;  %4092 = vmatpush.bf16.msra.mxu0 %v6532_v8 }
 0x433   : > { %v9195_v11 = vsel %vm921_vm1, 0, %v2213_v9  ;;  %v9198_v39 = vsel %vm921_vm1, %v2213_v9, 0  ;;  %v3484_v33 = vpop.f32.mrf.mxu2  ;;  %v2110_v50 = vadd.f32 %v9128_v24, %v2074_v48  ;;  %v2077_v55 = vadd.f32 %v8687_v47, %v1751_v10 }
 0x434   : > { %2546 = vrot.lane.b32.xlu1 %v9198_v39, %s6683_s16  ;;  %2544 = vrot.lane.b32.xlu2 %v9195_v11, %s6683_s16  ;;  %v9204_v58 = vadd.f32 %v3484_v33, %v3228_v7  ;;  %v11132_v7 = vld [vmem:[#allocation103_spill] sm:$0xff] }
 0x435   : > { %v2475_v35 = vpop.permute.xlu2 %2474  ;;  %v2142_v14 = vmax.f32 %v2110_v50, 0.0  ;;  %v1759_v33 = vadd.f32 %v8902_v5, %v11132_v7 }
 0x437   : > { %v2411_v56 = vpop.permute.xlu0 %2410  ;;  %5523 = vrot.lane.b32.xlu0 %v2139_v53, %s6684_s17  ;;  %v9231_v42 = vpop.f32.mrf.mxu0 }
 0x438   : > { %v2345_v54 = vpop.permute.xlu1 %2344  ;;  %11130 = vst [vmem:[#allocation199_spill] sm:$0xff] %v9231_v42  ;;  %v9240_v61 = vpop.f32.mrf.mxu3 }
 0x439   : > { %v2600_v13 = vsel %vm2552_vm10, %v8598_v38, %v2345_v54  ;;  %v2662_v38 = vsel %vm1120_vm6, %v2598_v60, %v2409_v2  ;;  %v2113_v2 = vadd.f32 %v9128_v24, %v2077_v55  ;;  %11131 = vst [vmem:[#allocation200_spill] sm:$0xff] %v9240_v61 }
 0x43a   : > { %v2664_v62 = vsel %vm1120_vm6, %v2600_v13, %v2411_v56  ;;  %v2727_v15 = vsel %vm2681_vm11, %v2662_v38, %v2473_v46  ;;  %v2080_v38 = vadd.f32 %v8766_v36, %v1759_v33  ;;  %v11134_v33 = vld [vmem:[#allocation68_spill] sm:$0xff] }
 0x43b   : > { %v9222_v29 = vpop.f32.mrf.mxu2  ;;  %v2729_v44 = vsel %vm2681_vm11, %v2664_v62, %v2475_v35  ;;  %v2145_v35 = vmax.f32 %v2113_v2, 0.0 }
 0x43c   : > { %2356 = vrot.lane.b32.xlu1 %v8998_v23, %s6686_s27  ;;  %2354 = vrot.lane.b32.xlu2 %v8995_v52, %s6686_s27  ;;  %v2116_v36 = vadd.f32 %v9128_v24, %v2080_v38 }
 0x43d   : > { %v2413_v8 = vpop.permute.xlu2 %2412 }
 0x43f   : > { %v2539_v9 = vpop.permute.xlu0 %2538  ;;  %5529 = vrot.lane.b32.xlu0 %v2142_v14, %s6684_s17 }
 0x440   : > { %v2537_v6 = vpop.permute.xlu1 %2536  ;;  %v9237_v47 = vsel %vm1217_vm7, %v2729_v44, %v2539_v9  ;;  %6375 = vmatmul.msk.bf16.gmra.mxu2 %vm3018_vm13, %v9048_v21  ;;  %v3267_v9 = vpop.f32.mrf.mxu1 }
 0x441   : > { %v9243_v12 = vsel %vm1217_vm7, %v2727_v15, %v2537_v6  ;;  %v2934_v17 = vshll.u32 %v9237_v47, 16  ;;  %v3699_v57 = vshrl.u32 %v9237_v47, 16  ;;  %v3985_v48 = vrot.slane %v9237_v47, 2 }
 0x442   : > { %v2928_v46 = vshrl.u32 %v9243_v12, 16  ;;  %v2930_v53 = vshll.u32 %v9243_v12, 16  ;;  %6341 = vmatmul.msk.bf16.gmra.mxu1 %vm3018_vm13, %v9243_v12  ;;  %v3984_v10 = vrot.slane %v9243_v12, 2 }
 0x443   : > { %v3701_v56 = vrot.slane %v3699_v57, 1  ;;  %v3702_v54 = vrot.slane %v2934_v17, 2  ;;  %v3489_v5 = vpop.f32.mrf.mxu2  ;;  %v2936_v14 = vrot.slane %v2934_v17, 1  ;;  %v9276_v17 = vpop.f32.mrf.mxu3 }
 0x444   : > { %6602 = vrot.lane.b32.xlu1 %v11123_v45, %s6683_s16  ;;  %2484 = vrot.lane.b32.xlu2 %v9195_v11, %s6687_s28  ;;  %v2932_v13 = vrot.slane %v2930_v53, 1  ;;  %v3696_v50 = vrot.slane %v2928_v46, 1  ;;  %v3697_v60 = vrot.slane %v2930_v53, 2  ;;  %v9262_v62 = vadd.f32 %v3489_v5, %v8780_v59 }
 0x445   : > { %v3703_v55 = vor.u32 %v3702_v54, %v3701_v56  ;;  %v9265_v21 = vsel %vm3950_vm14, %v3984_v10, %v3985_v48  ;;  %v3370_v53 = vrot.slane %v9156_v22, 1  ;;  %v3369_v48 = vrot.slane %v9162_v3, 1  ;;  %v11135_v56 = vld [vmem:[#allocation110_spill] sm:$0xff]  ;;  %v11136_v54 = vld [vmem:[#allocation139_spill] sm:$0xff] }
 0x446   : > { %v2933_v45 = vor.u32 %v2932_v13, %v2928_v46  ;;  %v3698_v44 = vor.u32 %v3697_v60, %v3696_v50  ;;  %v1719_v46 = vadd.f32 %v8585_v18, %v11134_v33  ;;  %v1724_v10 = vadd.f32 %v11136_v54, %v11135_v56  ;;  %v2415_v60 = vpop.permute.xlu2 %2414  ;;  %v11140_v18 = vld [vmem:[#allocation142_spill] sm:$0xff]  ;;  %v11145_v56 = vld [vmem:[#allocation143_spill] sm:$0xff]  ;;  %v11146_v54 = vld [vmem:[#allocation124_spill] sm:$0xff] }
 0x447   : > { %v3116_v6 = vpop.f32.mrf.mxu0  ;;  %5535 = vrot.lane.b32.xlu0 %v2145_v35, %s6684_s17  ;;  %v2148_v5 = vmax.f32 %v2116_v36, 0.0  ;;  %v3371_v35 = vsel %vm1830_vm5, %v3369_v48, %v3370_v53  ;;  %v2349_v22 = vpop.permute.xlu0 %2348  ;;  %v11141_v3 = vld [vmem:[#allocation122_spill] sm:$0xff]  ;;  %v11144_v53 = vld [vmem:[#allocation120_spill] sm:$0xff] }
 0x448   : > { %v2347_v15 = vpop.permute.xlu1 %2346  ;;  %v9269_v57 = vadd.f32 %v3267_v9, %v3116_v6  ;;  %v2937_v59 = vsel %vm1294_vm9, %v2933_v45, %v2936_v14  ;;  %v3704_v2 = vsel %vm3596_vm12, %v3698_v44, %v3703_v55  ;;  %v11138_v55 = vld [vmem:[#allocation117_spill] sm:$0xff]  ;;  %v11139_v14 = vld [vmem:[#allocation119_spill] sm:$0xff]  ;;  %v2604_v36 = vsel %vm2552_vm10, %v8676_v1, %v2349_v22 }
 0x449   : > { %6305 = vmatmul.msk.bf16.gmra.mxu0 %vm3018_vm13, %v2937_v59  ;;  %6413 = vmatmul.msk.bf16.gmra.mxu3 %vm3018_vm13, %v3704_v2  ;;  %v2066_v38 = vadd.f32 %v11138_v55, %v1724_v10  ;;  %v1726_v45 = vadd.f32 %v11140_v18, %v11139_v14  ;;  %v11142_v44 = vld [vmem:[#allocation145_spill] sm:$0xff] }
 0x44a   : > { %v1731_v9 = vadd.f32 %v11142_v44, %v11141_v3  ;;  %v11149_v44 = vld [vmem:[#allocation125_spill] sm:$0xff] }
 0x44b   : > { %v9282_v7 = vpop.f32.mrf.mxu2  ;;  %v9304_v2 = vpop.f32.mrf.mxu3  ;;  %v2067_v48 = vadd.f32 %v11144_v53, %v1726_v45 }
 0x44c   : > { %2424 = vrot.lane.b32.xlu1 %v9195_v11, %s6684_s17  ;;  %2486 = vrot.lane.b32.xlu2 %v9198_v39, %s6687_s28  ;;  %11133 = vst [vmem:[#allocation103_spill] sm:$0xff] %v9282_v7  ;;  %v11137_v11 = vld [vmem:[#allocation104_spill] sm:$0xff] }
 0x44d   : > { %v2064_v50 = vadd.f32 %v11137_v11, %v1719_v46  ;;  %11143 = vst [vmem:[#allocation68_spill] sm:$0xff] %v9304_v2  ;;  %v2102_v46 = vadd.f32 %v9128_v24, %v2066_v38  ;;  %v2103_v38 = vadd.f32 %v9128_v24, %v2067_v48  ;;  %v3372_v48 = vrot.slane %v9243_v12, 1  ;;  %v11154_v2 = vld [vmem:[#allocation127_spill] sm:$0xff] }
 0x44f   : > { %5541 = vrot.lane.b32.xlu0 %v2148_v5, %s6684_s17  ;;  %v2100_v59 = vadd.f32 %v9128_v24, %v2064_v50  ;;  %v2668_v5 = vsel %vm1120_vm6, %v2604_v36, %v2415_v60  ;;  %v2543_v50 = vpop.permute.xlu2 %2542  ;;  %v2134_v55 = vmax.f32 %v2102_v46, 0.0  ;;  %v9323_v18 = vpop.f32.mrf.mxu0 }
 0x450   : > { %v2477_v13 = vpop.permute.xlu1 %2476  ;;  %6376 = vmatmul.msk.bf16.gmra.mxu2 %vm3018_vm13, %v3371_v35  ;;  %v9317_v35 = vpop.f32.mrf.mxu1  ;;  %11148 = vst [vmem:[#allocation139_spill] sm:$0xff] %v9323_v18 }
 0x451   : > { %v2132_v11 = vmax.f32 %v2100_v59, 0.0  ;;  %11147 = vst [vmem:[#allocation110_spill] sm:$0xff] %v9317_v35  ;;  %v3373_v59 = vrot.slane %v9237_v47, 1 }
 0x453   : > { %v3494_v6 = vpop.f32.mrf.mxu2  ;;  %v3374_v12 = vsel %vm1830_vm5, %v3372_v48, %v3373_v59  ;;  %v11157_v48 = vld [vmem:[#allocation133_spill] sm:$0xff] }
 0x454   : > { %2426 = vrot.lane.b32.xlu1 %v9198_v39, %s6684_s17  ;;  %2360 = vrot.lane.b32.xlu2 %v9067_v25, %s6686_s27  ;;  %v9309_v33 = vadd.f32 %v3494_v6, %v8810_v16  ;;  %v2602_v39 = vsel %vm2552_vm10, %v11145_v56, %v2347_v15  ;;  %v2069_v25 = vadd.f32 %v11146_v54, %v1731_v9  ;;  %v11150_v9 = vld [vmem:[#allocation148_spill] sm:$0xff]  ;;  %v11152_v54 = vld [vmem:[#allocation130_spill] sm:$0xff] }
 0x455   : > { %v2666_v1 = vsel %vm1120_vm6, %v2602_v39, %v2413_v8  ;;  %v1734_v6 = vadd.f32 %v11150_v9, %v11149_v44 }
 0x456   : > { %v2731_v14 = vsel %vm2681_vm11, %v2666_v1, %v2477_v13  ;;  %v2105_v60 = vadd.f32 %v9128_v24, %v2069_v25  ;;  %v11153_v25 = vld [vmem:[#allocation91_spill] sm:$0xff]  ;;  %v9343_v1 = vpop.f32.mrf.mxu3 }
 0x458   : > { %v2479_v10 = vpop.permute.xlu1 %2478  ;;  %v2137_v44 = vmax.f32 %v2105_v60, 0.0 }
 0x459   : > { %v2733_v16 = vsel %vm2681_vm11, %v2668_v5, %v2479_v10  ;;  %v2541_v45 = vpop.permute.xlu0 %2540  ;;  %v1739_v10 = vadd.f32 %v11153_v25, %v11152_v54  ;;  %v2070_v54 = vadd.f32 %v11154_v2, %v1734_v6  ;;  %v11155_v25 = vld [vmem:[#allocation131_spill] sm:$0xff] }
 0x45a   : > { %v9326_v15 = vsel %vm1217_vm7, %v2733_v16, %v2543_v50  ;;  %v2795_v8 = vsel %vm1217_vm7, %v2731_v14, %v2541_v45 }
 0x45b   : > { %v2944_v22 = vshll.u32 %v9326_v15, 16  ;;  %v3708_v3 = vshrl.u32 %v9326_v15, 16  ;;  %v2938_v13 = vshrl.u32 %v2795_v8, 16  ;;  %v2940_v36 = vshll.u32 %v2795_v8, 16  ;;  %v9337_v46 = vpop.f32.mrf.mxu2  ;;  %6342 = vmatmul.msk.bf16.gmra.mxu1 %vm3018_vm13, %v2795_v8 }
 0x45c   : > { %5513 = vrot.lane.b32.xlu1 %v2134_v55, %s6684_s17  ;;  %5509 = vrot.lane.b32.xlu2 %v2132_v11, %s6684_s17  ;;  %11151 = vst [vmem:[#allocation104_spill] sm:$0xff] %v9337_v46  ;;  %v3987_v39 = vrot.slane %v2795_v8, 2  ;;  %v3988_v11 = vrot.slane %v9326_v15, 2  ;;  %v2072_v61 = vadd.f32 %v11155_v25, %v1739_v10  ;;  %v2106_v6 = vadd.f32 %v9128_v24, %v2070_v54  ;;  %v11160_v10 = vld [vmem:[#allocation159_spill] sm:$0xff]  ;;  %v11164_v25 = vld [vmem:[#allocation81_spill] sm:$0xff] }
 0x45d   : > { %v3710_v53 = vrot.slane %v3708_v3, 1  ;;  %v3711_v56 = vrot.slane %v2944_v22, 2  ;;  %v2942_v5 = vrot.slane %v2940_v36, 1  ;;  %v3705_v47 = vrot.slane %v2938_v13, 1 }
 0x45e   : > { %v3706_v50 = vrot.slane %v2940_v36, 2  ;;  %v2946_v14 = vrot.slane %v2944_v22, 1  ;;  %v2135_v3 = vmax.f32 %v2103_v38, 0.0  ;;  %v9348_v9 = vsel %vm3950_vm14, %v3987_v39, %v3988_v11  ;;  %v3272_v36 = vpop.f32.mrf.mxu1  ;;  %v11156_v38 = vld [vmem:[#allocation162_spill] sm:$0xff]  ;;  %v11159_v39 = vld [vmem:[#allocation137_spill] sm:$0xff] }
 0x45f   : > { %v3712_v16 = vor.u32 %v3711_v56, %v3710_v53  ;;  %v2943_v55 = vor.u32 %v2942_v5, %v2938_v13  ;;  %v2108_v59 = vadd.f32 %v9128_v24, %v2072_v61  ;;  %v11158_v56 = vld [vmem:[#allocation154_spill] sm:$0xff]  ;;  %v1746_v5 = vadd.f32 %v11160_v10, %v11159_v39 }
 0x460   : > { %v3707_v45 = vor.u32 %v3706_v50, %v3705_v47  ;;  %6377 = vmatmul.msk.bf16.gmra.mxu2 %vm3018_vm13, %v3374_v12  ;;  %v9370_v47 = vpop.f32.mrf.mxu3  ;;  %v2138_v50 = vmax.f32 %v2106_v6, 0.0  ;;  %v11161_v11 = vld [vmem:[#allocation134_spill] sm:$0xff]  ;;  %v3375_v61 = vrot.slane %v2795_v8, 1 }
 0x461   : > { %v3121_v46 = vpop.f32.mrf.mxu0  ;;  %v2947_v53 = vsel %vm1294_vm9, %v2943_v55, %v2946_v14  ;;  %v11162_v14 = vld [vmem:[#allocation138_spill] sm:$0xff] }
 0x462   : > { %v3713_v22 = vsel %vm3596_vm12, %v3707_v45, %v3712_v16  ;;  %v9355_v13 = vadd.f32 %v3272_v36, %v3121_v46  ;;  %6306 = vmatmul.msk.bf16.gmra.mxu0 %vm3018_vm13, %v2947_v53  ;;  %v1741_v46 = vadd.f32 %v11158_v56, %v11157_v48  ;;  %v2140_v16 = vmax.f32 %v2108_v59, 0.0  ;;  %v11165_v36 = vld [vmem:[#allocation161_spill] sm:$0xff]  ;;  %v6531_v6 = vld [vmem:[%s10732_s5 + $0xa8] sm:$0xff]  ;;  %v11168_v56 = vld [vmem:[#allocation140_spill] sm:$0xff] }
 0x463   : > { %6414 = vmatmul.msk.bf16.gmra.mxu3 %vm3018_vm13, %v3713_v22  ;;  %v3499_v2 = vpop.f32.mrf.mxu2  ;;  %v2075_v45 = vadd.f32 %v11162_v14, %v1746_v5  ;;  %v1749_v53 = vadd.f32 %v11165_v36, %v11164_v25  ;;  %v11166_v22 = vld [vmem:[#allocation144_spill] sm:$0xff]  ;;  %4093 = vmatpush.bf16.msra.mxu0 %v6531_v6  ;;  %v11171_v14 = vld [vmem:[#allocation146_spill] sm:$0xff] }
 0x464   : > { %5519 = vrot.lane.b32.xlu1 %v2137_v44, %s6684_s17  ;;  %5515 = vrot.lane.b32.xlu2 %v2135_v3, %s6684_s17  ;;  %v9362_v60 = vadd.f32 %v3499_v2, %v11156_v38  ;;  %v2073_v55 = vadd.f32 %v11161_v11, %v1741_v46  ;;  %v3376_v44 = vrot.slane %v9326_v15, 1  ;;  %v11167_v2 = vld [vmem:[#allocation165_spill] sm:$0xff]  ;;  %v11169_v46 = vld [vmem:[#allocation86_spill] sm:$0xff] }
 0x465   : > { %v2111_v54 = vadd.f32 %v9128_v24, %v2075_v45  ;;  %v1754_v38 = vadd.f32 %v11167_v2, %v11166_v22  ;;  %v2076_v15 = vadd.f32 %v11168_v56, %v1749_v53  ;;  %v11172_v45 = vld [vmem:[#allocation169_spill] sm:$0xff]  ;;  %v11175_v53 = vld [vmem:[#allocation147_spill] sm:$0xff]  ;;  %v11176_v2 = vld [vmem:[#allocation152_spill] sm:$0xff] }
 0x466   : > { %v2109_v12 = vadd.f32 %v9128_v24, %v2073_v55  ;;  %v3377_v59 = vsel %vm1830_vm5, %v3375_v61, %v3376_v44  ;;  %v1756_v61 = vadd.f32 %v11172_v45, %v11171_v14  ;;  %v11173_v44 = vld [vmem:[#allocation102_spill] sm:$0xff] }
 0x467   : > { %v2143_v8 = vmax.f32 %v2111_v54, 0.0  ;;  %v2078_v39 = vadd.f32 %v11169_v46, %v1754_v38  ;;  %v2112_v11 = vadd.f32 %v9128_v24, %v2076_v15  ;;  %v11178_v56 = vld [vmem:[#allocation106_spill] sm:$0xff]  ;;  %v11179_v15 = vld [vmem:[#allocation176_spill] sm:$0xff] }
 0x468   : > { %v2141_v48 = vmax.f32 %v2109_v12, 0.0  ;;  %v9392_v10 = vpop.f32.mrf.mxu3  ;;  %v11174_v12 = vld [vmem:[#allocation173_spill] sm:$0xff]  ;;  %v2079_v22 = vadd.f32 %v11175_v53, %v1756_v61  ;;  %v1764_v46 = vadd.f32 %v11179_v15, %v11178_v56  ;;  %v2417_v53 = vpop.permute.xlu1 %2416 }
 0x469   : > { %v2114_v55 = vadd.f32 %v9128_v24, %v2078_v39  ;;  %v1761_v54 = vadd.f32 %v11174_v12, %v11173_v44  ;;  %v2144_v25 = vmax.f32 %v2112_v11, 0.0  ;;  %v2351_v39 = vpop.permute.xlu0 %2350  ;;  %v11180_v11 = vld [vmem:[#allocation156_spill] sm:$0xff]  ;;  %v2353_v44 = vpop.permute.xlu2 %2352 }
 0x46b   : > { %v9376_v3 = vpop.f32.mrf.mxu2  ;;  %v2146_v36 = vmax.f32 %v2114_v55, 0.0  ;;  %v2081_v38 = vadd.f32 %v11176_v2, %v1761_v54  ;;  %v2082_v55 = vadd.f32 %v11180_v11, %v1764_v46 }
 0x46c   : > { %5525 = vrot.lane.b32.xlu1 %v2140_v16, %s6684_s17  ;;  %5521 = vrot.lane.b32.xlu2 %v2138_v50, %s6684_s17  ;;  %11163 = vst [vmem:[#allocation117_spill] sm:$0xff] %v9376_v3  ;;  %v11170_v50 = vld [vmem:[#allocation171_spill] sm:$0xff] }
 0x46d   : > { %v2118_v61 = vadd.f32 %v9128_v24, %v2082_v55 }
 0x470   : > { %6378 = vmatmul.msk.bf16.gmra.mxu2 %vm3018_vm13, %v3377_v59  ;;  %v9411_v59 = vpop.f32.mrf.mxu3 }
 0x471   : > { %11177 = vst [vmem:[#allocation119_spill] sm:$0xff] %v9411_v59  ;;  %v2481_v54 = vpop.permute.xlu0 %2480 }
 0x473   : > { %v3504_v5 = vpop.f32.mrf.mxu2 }
 0x474   : > { %5531 = vrot.lane.b32.xlu1 %v2143_v8, %s6684_s17  ;;  %5527 = vrot.lane.b32.xlu2 %v2141_v48, %s6684_s17  ;;  %v9397_v16 = vadd.f32 %v3504_v5, %v11170_v50  ;;  %v2115_v48 = vadd.f32 %v9128_v24, %v2079_v22  ;;  %v2117_v8 = vadd.f32 %v9128_v24, %v2081_v38 }
 0x476   : > { %v2147_v5 = vmax.f32 %v2115_v48, 0.0  ;;  %v2149_v50 = vmax.f32 %v2117_v8, 0.0 }
 0x478   : > { %v9424_v12 = vpop.f32.mrf.mxu3 }
 0x479   : > { %11181 = vst [vmem:[#allocation142_spill] sm:$0xff] %v9424_v12  ;;  %v2483_v8 = vpop.permute.xlu0 %2482  ;;  %v11204_v12 = vld [vmem:[#allocation20_spill] sm:$0xff] }
 0x47b   : > { %v9409_v6 = vpop.f32.mrf.mxu2 }
 0x47c   : > { %5533 = vrot.lane.b32.xlu2 %v2144_v25, %s6684_s17  ;;  %5537 = vrot.lane.b32.xlu1 %v2146_v36, %s6684_s17  ;;  %v2150_v25 = vmax.f32 %v2118_v61, 0.0  ;;  %v2606_v36 = vsel %vm2552_vm10, %v8751_v41, %v2351_v39 }
 0x47d   : > { %v2670_v2 = vsel %vm1120_vm6, %v2606_v36, %v2417_v53  ;;  %v9454_v53 = vpop.f32.mrf.mxu1 }
 0x480   : > { %v9435_v48 = vpop.f32.mrf.mxu3 }
 0x481   : > { %11183 = vst [vmem:[#allocation145_spill] sm:$0xff] %v9435_v48  ;;  %v9444_v39 = vpop.permute.xlu0 %2420  ;;  %v11202_v48 = vld [vmem:[#allocation19_spill] sm:$0xff] }
 0x483   : > { %v3509_v14 = vpop.f32.mrf.mxu2 }
 0x484   : > { %5543 = vrot.lane.b32.xlu1 %v2149_v50, %s6684_s17  ;;  %5539 = vrot.lane.b32.xlu2 %v2147_v5, %s6684_s17  ;;  %v9421_v45 = vadd.f32 %v3509_v14, %v8982_v0  ;;  %v2735_v0 = vsel %vm2681_vm11, %v2670_v2, %v2481_v54  ;;  %v2419_v5 = vpop.permute.xlu1 %2418  ;;  %v2608_v14 = vsel %vm2552_vm10, %v8754_v26, %v2353_v44 }
 0x488   : > { %v9440_v15 = vpop.f32.mrf.mxu3 }
 0x489   : > { %11185 = vst [vmem:[#allocation143_spill] sm:$0xff] %v9440_v15  ;;  %v2423_v26 = vpop.permute.xlu0 %2422 }
 0x48b   : > { %v9429_v22 = vpop.f32.mrf.mxu2 }
 0x48c   : > { %5545 = vrot.lane.b32.xlu2 %v2150_v25, %s6684_s17  ;;  %11182 = vst [vmem:[#allocation122_spill] sm:$0xff] %v9429_v22  ;;  %v2672_v25 = vsel %vm1120_vm6, %v2608_v14, %v2419_v5 }
 0x48d   : > { %v2737_v2 = vsel %vm2681_vm11, %v2672_v25, %v2483_v8 }
 0x48e   : > { %v2545_v38 = vpop.permute.xlu2 %2544 }
 0x48f   : > { %v2799_v24 = vsel %vm1217_vm7, %v2735_v0, %v2545_v38  ;;  %v6530_v38 = vld [vmem:[%s10732_s5 + $0xa0] sm:$0xff] }
 0x490   : > { %6343 = vmatmul.msk.bf16.gmra.mxu1 %vm3018_vm13, %v2799_v24  ;;  %v2950_v50 = vshll.u32 %v2799_v24, 16  ;;  %v2948_v11 = vshrl.u32 %v2799_v24, 16  ;;  %v9448_v54 = vpop.f32.mrf.mxu3  ;;  %v3378_v3 = vrot.slane %v2799_v24, 1  ;;  %4094 = vmatpush.bf16.msra.mxu0 %v6530_v38  ;;  %v3990_v8 = vrot.slane %v2799_v24, 2 }
 0x491   : > { %11187 = vst [vmem:[#allocation125_spill] sm:$0xff] %v9448_v54 }
 0x492   : > { %v2952_v36 = vrot.slane %v2950_v50, 1  ;;  %v3714_v5 = vrot.slane %v2948_v11, 1  ;;  %v3715_v14 = vrot.slane %v2950_v50, 2 }
 0x493   : > { %v3514_v56 = vpop.f32.mrf.mxu2 }
 0x494   : > { %v9438_v41 = vadd.f32 %v3514_v56, %v9055_v43  ;;  %v9460_v56 = vpop.f32.mrf.mxu0  ;;  %v2953_v54 = vor.u32 %v2952_v36, %v2948_v11 }
 0x496   : > { %11184 = vst [vmem:[#allocation120_spill] sm:$0xff] %v9438_v41  ;;  %v2355_v55 = vpop.permute.xlu2 %2354  ;;  %v11205_v41 = vld [vmem:[#allocation12_spill] sm:$0xff] }
 0x49b   : > { %v9442_v46 = vpop.f32.mrf.mxu2 }
 0x49c   : > { %11186 = vst [vmem:[#allocation124_spill] sm:$0xff] %v9442_v46  ;;  %v11203_v46 = vld [vmem:[#allocation11_spill] sm:$0xff] }
 0x49e   : > { %v2485_v11 = vpop.permute.xlu2 %2484 }
 0x4a3   : > { %v3519_v61 = vpop.f32.mrf.mxu2 }
 0x4a4   : > { %v9452_v43 = vadd.f32 %v3519_v61, %v9181_v31 }
 0x4a6   : > { %11188 = vst [vmem:[#allocation148_spill] sm:$0xff] %v9452_v43  ;;  %v2547_v0 = vpop.permute.xlu1 %2546 }
 0x4a7   : > { %v2801_v44 = vsel %vm1217_vm7, %v2737_v2, %v2547_v0  ;;  %v3716_v0 = vor.u32 %v3715_v14, %v3714_v5 }
 0x4a8   : > { %v2954_v31 = vshll.u32 %v2801_v44, 16  ;;  %v3379_v61 = vrot.slane %v2801_v44, 1  ;;  %v3717_v35 = vshrl.u32 %v2801_v44, 16  ;;  %v3991_v18 = vrot.slane %v2801_v44, 2  ;;  %v11191_v44 = vld [vmem:[#allocation13_spill] sm:$0xff] }
 0x4a9   : > { %v4835_v38 = vrot.slane %v11191_v44, 1 }
 0x4aa   : > { %v2956_v25 = vrot.slane %v2954_v31, 1  ;;  %v3719_v7 = vrot.slane %v3717_v35, 1  ;;  %v3720_v27 = vrot.slane %v2954_v31, 2  ;;  %v3380_v42 = vsel %vm1830_vm5, %v3378_v3, %v3379_v61  ;;  %v3277_v61 = vpop.f32.mrf.mxu1 }
 0x4ab   : > { %6379 = vmatmul.msk.bf16.gmra.mxu2 %vm3018_vm13, %v3380_v42  ;;  %v9466_v15 = vsel %vm3950_vm14, %v3990_v8, %v3991_v18  ;;  %v9469_v50 = vpop.f32.mrf.mxu2  ;;  %v5044_v3 = vrot.slane %v11191_v44, 2  ;;  %v11192_v42 = vld [vmem:[#allocation14_spill] sm:$0xff] }
 0x4ac   : > { %11189 = vst [vmem:[#allocation130_spill] sm:$0xff] %v9466_v15  ;;  %v2957_v2 = vsel %vm1294_vm9, %v2953_v54, %v2956_v25  ;;  %v3721_v43 = vor.u32 %v3720_v27, %v3719_v7  ;;  %v5045_v36 = vrot.slane %v11192_v42, 2  ;;  %v11193_v18 = vld [vmem:[#allocation10_spill] sm:$0xff]  ;;  %v9480_v27 = vpop.f32.mrf.mxu3  ;;  %v2359_v7 = vpop.permute.xlu0 %2358  ;;  %v11196_v14 = vrot.slane %v11192_v42, 1 }
 0x4ad   : > { %11190 = vst [vmem:[#allocation91_spill] sm:$0xff] %v9469_v50  ;;  %6307 = vmatmul.msk.bf16.gmra.mxu0 %vm3018_vm13, %v2957_v2  ;;  %v5047_v31 = vrot.slane %v11193_v18, 2  ;;  %v11197_v2 = vld [vmem:[#allocation18_spill] sm:$0xff] }
 0x4ae   : > { %v2357_v35 = vpop.permute.xlu1 %2356  ;;  %v3722_v24 = vsel %vm3596_vm12, %v3716_v0, %v3721_v43  ;;  %v3126_v54 = vpop.f32.mrf.mxu0  ;;  %11195 = vst [vmem:[#allocation131_spill] sm:$0xff] %v9480_v27  ;;  %v4837_v8 = vsel %vm1830_vm5, %v4835_v38, %v11196_v14  ;;  %v4948_v0 = vmax.f32 %v11192_v42, %v11197_v2  ;;  %v5046_v18 = vsel %vm3950_vm14, %v5044_v3, %v5045_v36 }
 0x4af   : > { %6415 = vmatmul.msk.bf16.gmra.mxu3 %vm3018_vm13, %v3722_v24  ;;  %v9478_v5 = vadd.f32 %v3277_v61, %v3126_v54  ;;  %v2612_v43 = vsel %vm2552_vm10, %v8910_v37, %v2357_v35  ;;  %v4947_v25 = vmax.f32 %v11191_v44, %v4837_v8  ;;  %v5048_v24 = vsel %vm3950_vm14, %v5045_v36, %v5047_v31  ;;  %v2487_v42 = vpop.permute.xlu2 %2486 }
 0x4b0   : > { %v2610_v61 = vsel %vm2552_vm10, %v8907_v4, %v2355_v55  ;;  %v2676_v27 = vsel %vm1120_vm6, %v2612_v43, %v2423_v26 }
 0x4b1   : > { %11194 = vst [vmem:[#allocation127_spill] sm:$0xff] %v9478_v5  ;;  %v5156_v54 = vmax.f32 %v4947_v25, %v5046_v18  ;;  %v5157_v5 = vmax.f32 %v4948_v0, %v5048_v24  ;;  %v2674_v3 = vsel %vm1120_vm6, %v2610_v61, %v9444_v39  ;;  %v2741_v26 = vsel %vm2681_vm11, %v2676_v27, %v2487_v42  ;;  %v11199_v0 = vld [vmem:[#allocation21_spill] sm:$0xff] }
 0x4b2   : > { %v2739_v55 = vsel %vm2681_vm11, %v2674_v3, %v2485_v11  ;;  %v4843_v11 = vrot.slane %v11199_v0, 1  ;;  %v2614_v42 = vsel %vm2552_vm10, %v8995_v52, %v2359_v7 }
 0x4b3   : > { %v3524_v38 = vpop.f32.mrf.mxu2  ;;  %v5188_v44 = vpack.c.bf16 %v5156_v54, %v5156_v54  ;;  %v5189_v35 = vpack.c.bf16 %v5157_v5, %v5157_v5  ;;  %v4645_v54 = vmax.f32 %v11203_v46, %v11202_v48 }
 0x4b4   : > { %v9496_v14 = vadd.f32 %v3524_v38, %v9269_v57  ;;  %v9516_v18 = vpop.f32.mrf.mxu3  ;;  %v6608_v27 = vpop.permute.xlu0 %6607 }
 0x4b5   : > { %v9506_v31 = vunpack.c.l.b16 %v5188_v44  ;;  %v9508_v57 = vunpack.c.l.b16 %v5189_v35  ;;  %11200 = vst [vmem:[#allocation133_spill] sm:$0xff] %v9516_v18  ;;  %v6609_v38 = vunpack.i.l.bf16 %v6608_v27 }
 0x4b6   : > { %11198 = vst [vmem:[#allocation162_spill] sm:$0xff] %v9496_v14  ;;  %v9498_v37 = vpop.permute.xlu1 %6602  ;;  %v9532_v59 = vpop.f32.mrf.mxu0 }
 0x4b7   : > { %v10881_v36 = vunpack.i.h.bf16 %v9498_v37  ;;  %v6604_v4 = vunpack.i.l.bf16 %v9498_v37  ;;  %11207 = vst [vmem:[#allocation159_spill] sm:$0xff] %v9532_v59  ;;  %v2361_v59 = vpop.permute.xlu2 %2360 }
 0x4b9   : > { %v2805_v5 = vsel %vm1217_vm7, %v2741_v26, %v10881_v36  ;;  %v2803_v8 = vsel %vm1217_vm7, %v2739_v55, %v6604_v4 }
 0x4ba   : > { %v3726_v39 = vshrl.u32 %v2805_v5, 16  ;;  %6344 = vmatmul.msk.bf16.gmra.mxu1 %vm3018_vm13, %v2803_v8  ;;  %v3381_v43 = vrot.slane %v2803_v8, 1  ;;  %v3382_v25 = vrot.slane %v2805_v5, 1  ;;  %v2958_v2 = vshrl.u32 %v2803_v8, 16 }
 0x4bb   : > { %v2960_v24 = vshll.u32 %v2803_v8, 16  ;;  %v2964_v61 = vshll.u32 %v2805_v5, 16  ;;  %v9523_v55 = vpop.f32.mrf.mxu2 }
 0x4bc   : > { %v3383_v44 = vsel %vm1830_vm5, %v3381_v43, %v3382_v25  ;;  %v3723_v35 = vrot.slane %v2958_v2, 1  ;;  %v3728_v3 = vrot.slane %v3726_v39, 1  ;;  %11201 = vst [vmem:[#allocation154_spill] sm:$0xff] %v9523_v55  ;;  %v4646_v43 = vmax.f32 %v11205_v41, %v11204_v12  ;;  %v9530_v39 = vpop.f32.mrf.mxu1 }
 0x4bd   : > { %6380 = vmatmul.msk.bf16.gmra.mxu2 %vm3018_vm13, %v3383_v44  ;;  %v2962_v26 = vrot.slane %v2960_v24, 1  ;;  %v3724_v36 = vrot.slane %v2960_v24, 2  ;;  %v3729_v18 = vrot.slane %v2964_v61, 2  ;;  %v2966_v50 = vrot.slane %v2964_v61, 1  ;;  %11206 = vst [vmem:[#allocation137_spill] sm:$0xff] %v9530_v39 }
 0x4be   : > { %v2425_v14 = vpop.permute.xlu1 %2424  ;;  %v3993_v25 = vrot.slane %v2803_v8, 2  ;;  %v3994_v55 = vrot.slane %v2805_v5, 2  ;;  %v4840_v61 = vrot.slane %v4645_v54, 1  ;;  %v4841_v15 = vrot.slane %v4646_v43, 1 }
 0x4bf   : > { %v2678_v52 = vsel %vm1120_vm6, %v2614_v42, %v2425_v14  ;;  %v2963_v7 = vor.u32 %v2962_v26, %v2958_v2  ;;  %v3725_v44 = vor.u32 %v3724_v36, %v3723_v35  ;;  %v3730_v19 = vor.u32 %v3729_v18, %v3728_v3 }
 0x4c0   : > { %v2743_v24 = vsel %vm2681_vm11, %v2678_v52, %v6609_v38  ;;  %v5049_v41 = vrot.slane %v4645_v54, 2  ;;  %v5050_v8 = vrot.slane %v4646_v43, 2  ;;  %v4842_v14 = vsel %vm1830_vm5, %v4840_v61, %v4841_v15  ;;  %v9544_v38 = vpop.f32.mrf.mxu3 }
 0x4c1   : > { %v2967_v46 = vsel %vm1294_vm9, %v2963_v7, %v2966_v50  ;;  %v2806_v22 = vsel %vm1217_vm7, %v2743_v24, %v6604_v4  ;;  %v3731_v39 = vsel %vm3596_vm12, %v3725_v44, %v3730_v19  ;;  %v4844_v36 = vsel %vm1830_vm5, %v4841_v15, %v4843_v11 }
 0x4c2   : > { %6308 = vmatmul.msk.bf16.gmra.mxu0 %vm3018_vm13, %v2967_v46  ;;  %6416 = vmatmul.msk.bf16.gmra.mxu3 %vm3018_vm13, %v3731_v39  ;;  %v5051_v5 = vsel %vm3950_vm14, %v5049_v41, %v5050_v8  ;;  %v6610_v2 = vunpack.i.h.bf16 %v6608_v27  ;;  %v2968_v18 = vshrl.u32 %v2806_v22, 16  ;;  %v4949_v50 = vmax.f32 %v4645_v54, %v4842_v14 }
 0x4c3   : > { %v3529_v4 = vpop.f32.mrf.mxu2  ;;  %v2970_v35 = vshll.u32 %v2806_v22, 16  ;;  %v4950_v3 = vmax.f32 %v4646_v43, %v4844_v36  ;;  %v5052_v42 = vrot.slane %v11199_v0, 2  ;;  %v9548_v19 = vsel %vm3950_vm14, %v3993_v25, %v3994_v55 }
 0x4c4   : > { %v2616_v26 = vsel %vm2552_vm10, %v8998_v23, %v2361_v59  ;;  %v9553_v15 = vadd.f32 %v3529_v4, %v9355_v13  ;;  %v5158_v27 = vmax.f32 %v4949_v50, %v5051_v5  ;;  %v3275_v54 = vadd.f32 %v9454_v53, %v9460_v56  ;;  %v3282_v39 = vpop.f32.mrf.mxu1 }
 0x4c5   : > { %v5053_v0 = vsel %vm3950_vm14, %v5050_v8, %v5052_v42  ;;  %v11208_v13 = vunpack.i.h.bf16 %v9498_v37  ;;  %v3384_v44 = vrot.slane %v2806_v22, 1  ;;  %v3732_v24 = vrot.slane %v2968_v18, 1 }
 0x4c6   : > { %v2427_v11 = vpop.permute.xlu1 %2426  ;;  %v3131_v43 = vpop.f32.mrf.mxu0  ;;  %v5159_v7 = vmax.f32 %v4950_v3, %v5053_v0  ;;  %v5190_v23 = vpack.c.bf16 %v5158_v27, %v5158_v27  ;;  %v3733_v61 = vrot.slane %v2970_v35, 2  ;;  %v2972_v8 = vrot.slane %v2970_v35, 1  ;;  %v11212_v35 = vld [vmem:[#allocation26_spill] sm:$0xff] }
 0x4c7   : > { %v2680_v52 = vsel %vm1120_vm6, %v2616_v26, %v2427_v11  ;;  %v9560_v25 = vadd.f32 %v3282_v39, %v3131_v43  ;;  %v3996_v36 = vrot.slane %v2806_v22, 2  ;;  %v11209_v26 = vld [vmem:[#allocation25_spill] sm:$0xff]  ;;  %v11210_v11 = vld [vmem:[#allocation8_spill] sm:$0xff] }
 0x4c8   : > { %v2745_v55 = vsel %vm2681_vm11, %v2680_v52, %v6610_v2  ;;  %v5191_v41 = vpack.c.bf16 %v5159_v7, %v5159_v7  ;;  %v9566_v14 = vunpack.c.l.b16 %v5190_v23  ;;  %v11211_v27 = vmax.f32 %v11210_v11, %v11202_v48  ;;  %v11213_v52 = vld [vmem:[#allocation9_spill] sm:$0xff] }
 0x4c9   : > { %v2807_v59 = vsel %vm1217_vm7, %v2745_v55, %v11208_v13  ;;  %v11215_v55 = vld [vmem:[#allocation27_spill] sm:$0xff]  ;;  %v3734_v13 = vor.u32 %v3733_v61, %v3732_v24 }
 0x4ca   : > { %v3735_v53 = vshrl.u32 %v2807_v59, 16  ;;  %6345 = vmatmul.msk.bf16.gmra.mxu1 %vm3018_vm13, %v2806_v22  ;;  %v3385_v56 = vrot.slane %v2807_v59, 1  ;;  %v2974_v46 = vshll.u32 %v2807_v59, 16  ;;  %v3997_v5 = vrot.slane %v2807_v59, 2 }
 0x4cb   : > { %v3531_v3 = vpop.f32.mrf.mxu2  ;;  %v9570_v42 = vunpack.c.l.b16 %v5191_v41  ;;  %v4648_v39 = vmax.f32 %v11211_v27, %v11209_v26  ;;  %v11214_v22 = vmax.f32 %v11213_v52, %v11204_v12  ;;  %v4848_v7 = vrot.slane %v11215_v55, 1 }
 0x4cc   : > { %v3386_v2 = vsel %vm1830_vm5, %v3384_v44, %v3385_v56  ;;  %v2976_v50 = vrot.slane %v2974_v46, 1  ;;  %v3737_v37 = vrot.slane %v3735_v53, 1  ;;  %v3738_v4 = vrot.slane %v2974_v46, 2  ;;  %v3885_v44 = vpop.f32.mrf.mxu3 }
 0x4cd   : > { %6381 = vmatmul.msk.bf16.gmra.mxu2 %vm3018_vm13, %v3386_v2  ;;  %v4649_v43 = vmax.f32 %v11214_v22, %v11212_v35  ;;  %v9581_v0 = vsel %vm3950_vm14, %v3996_v36, %v3997_v5  ;;  %v3583_v23 = vadd.f32 %v3531_v3, %v3275_v54  ;;  %v2973_v53 = vor.u32 %v2972_v8, %v2968_v18 }
 0x4ce   : > { %v3739_v59 = vor.u32 %v3738_v4, %v3737_v37  ;;  %v5290_v56 = vpack.c.b16 %v9570_v42, %v9566_v14  ;;  %v4845_v46 = vrot.slane %v4648_v39, 1  ;;  %v5054_v36 = vrot.slane %v4648_v39, 2  ;;  %v9597_v42 = vpop.f32.mrf.mxu1  ;;  %v9599_v22 = vpop.f32.mrf.mxu0 }
 0x4cf   : > { %v4846_v2 = vrot.slane %v4649_v43, 1  ;;  %v9587_v11 = vadd.f32 %v3885_v44, %v3583_v23  ;;  %v2977_v27 = vsel %vm1294_vm9, %v2973_v53, %v2976_v50  ;;  %v5055_v5 = vrot.slane %v4649_v43, 2  ;;  %v11219_v53 = vld [vmem:[#allocation31_spill] sm:$0xff] }
 0x4d0   : > { %v3740_v41 = vsel %vm3596_vm12, %v3734_v13, %v3739_v59  ;;  %v5057_v52 = vrot.slane %v11215_v55, 2  ;;  %v11218_v59 = vld [vmem:[#allocation33_spill] sm:$0xff] }
 0x4d1   : > { %v4847_v54 = vsel %vm1830_vm5, %v4845_v46, %v4846_v2  ;;  %v4849_v18 = vsel %vm1830_vm5, %v4846_v2, %v4848_v7  ;;  %v5056_v8 = vsel %vm3950_vm14, %v5054_v36, %v5055_v5  ;;  %v11216_v7 = vpack.c.b16 %v9508_v57, %v9506_v31  ;;  %v11221_v2 = vld [vmem:[#allocation32_spill] sm:$0xff] }
 0x4d2   : > { %6309 = vmatmul.msk.bf16.gmra.mxu0 %vm3018_vm13, %v2977_v27  ;;  %6417 = vmatmul.msk.bf16.gmra.mxu3 %vm3018_vm13, %v3740_v41  ;;  %v4951_v24 = vmax.f32 %v4648_v39, %v4847_v54  ;;  %v4952_v61 = vmax.f32 %v4649_v43, %v4849_v18  ;;  %v5058_v14 = vsel %vm3950_vm14, %v5055_v5, %v5057_v52  ;;  %v11217_v43 = vld [vmem:[#allocation114_spill] sm:$0xff]  ;;  %v4853_v44 = vrot.slane %v11218_v59, 1  ;;  %v11223_v5 = vld [vmem:[#allocation113_spill] sm:$0xff] }
 0x4d3   : > { %v3951_v13 = vrot.slane %v11217_v43, 2  ;;  %v11220_v46 = vmax.f32 %v11202_v48, %v11209_v26  ;;  %v11222_v27 = vmax.f32 %v11204_v12, %v11212_v35  ;;  %v3952_v52 = vrot.slane %v11223_v5, 2  ;;  %v11224_v5 = vld [vmem:[#allocation100_spill] sm:$0xff] }
 0x4d4   : > { %v5160_v37 = vmax.f32 %v4951_v24, %v5056_v8  ;;  %v5161_v50 = vmax.f32 %v4952_v61, %v5058_v14 }
 0x4d5   : > { %v4651_v41 = vmax.f32 %v11220_v46, %v11219_v53  ;;  %v4652_v36 = vmax.f32 %v11222_v27, %v11221_v2  ;;  %v3953_v24 = vsel %vm3950_vm14, %v3951_v13, %v3952_v52  ;;  %v3955_v52 = vrot.slane %v11224_v5, 2 }
 0x4d6   : > { %v5192_v4 = vpack.c.bf16 %v5160_v37, %v5160_v37  ;;  %v5193_v3 = vpack.c.bf16 %v5161_v50, %v5161_v50 }
 0x4d7   : > { %v4850_v31 = vrot.slane %v4651_v41, 1  ;;  %v4851_v57 = vrot.slane %v4652_v36, 1  ;;  %v5059_v14 = vrot.slane %v4651_v41, 2  ;;  %v5060_v50 = vrot.slane %v4652_v36, 2 }
 0x4d8   : > { %v5261_v55 = vunpack.c.l.b16 %v5192_v4  ;;  %v5262_v23 = vunpack.c.l.b16 %v5193_v3  ;;  %v3287_v54 = vpop.f32.mrf.mxu1  ;;  %v5062_v4 = vrot.slane %v11218_v59, 2  ;;  %v11227_v59 = vld [vmem:[#allocation37_spill] sm:$0xff] }
 0x4d9   : > { %v4852_v8 = vsel %vm1830_vm5, %v4850_v31, %v4851_v57  ;;  %v4854_v48 = vsel %vm1830_vm5, %v4851_v57, %v4853_v44  ;;  %v5061_v3 = vsel %vm3950_vm14, %v5059_v14, %v5060_v50 }
 0x4da   : > { %6454 = vmatmul.msk.bf16.vlgmr.msra.gmra.mxu1 %vm450_vm4, %v11216_v7  ;;  %v5291_v39 = vpack.c.b16 %v5262_v23, %v5261_v55  ;;  %v4953_v37 = vmax.f32 %v4651_v41, %v4852_v8  ;;  %v4954_v12 = vmax.f32 %v4652_v36, %v4854_v48  ;;  %v5063_v55 = vsel %vm3950_vm14, %v5060_v50, %v5062_v4  ;;  %v11225_v41 = vld [vmem:[#allocation101_spill] sm:$0xff]  ;;  %v11226_v36 = vld [vmem:[#allocation39_spill] sm:$0xff] }
 0x4db   : > { %v3954_v31 = vrot.slane %v11225_v41, 2  ;;  %v4858_v57 = vrot.slane %v11226_v36, 1  ;;  %v11230_v8 = vmax.f32 %v11212_v35, %v11221_v2 }
 0x4dc   : > { %v5162_v23 = vmax.f32 %v4953_v37, %v5061_v3  ;;  %v5163_v7 = vmax.f32 %v4954_v12, %v5063_v55 }
 0x4de   : > { %v5194_v43 = vpack.c.bf16 %v5162_v23, %v5162_v23  ;;  %v5195_v13 = vpack.c.bf16 %v5163_v7, %v5163_v7  ;;  %v5067_v23 = vrot.slane %v11226_v36, 2  ;;  %v11232_v36 = vld [vmem:[#allocation44_spill] sm:$0xff] }
 0x4df   : > { %v3136_v18 = vpop.f32.mrf.mxu0 }
 0x4e0   : > { %v9617_v61 = vadd.f32 %v3287_v54, %v3136_v18  ;;  %v5263_v46 = vunpack.c.l.b16 %v5194_v43  ;;  %v5264_v27 = vunpack.c.l.b16 %v5195_v13  ;;  %v11228_v54 = vmax.f32 %v11209_v26, %v11219_v53 }
 0x4e2   : > { %6438 = vmatmul.msk.bf16.vlgmr.msra.gmra.mxu0 %vm3018_vm13, %v3953_v24  ;;  %v5292_v44 = vpack.c.b16 %v5264_v27, %v5263_v46  ;;  %v4654_v18 = vmax.f32 %v11228_v54, %v11227_v59  ;;  %v11229_v24 = vld [vmem:[#allocation38_spill] sm:$0xff] }
 0x4e3   : > { %v4655_v48 = vmax.f32 %v11230_v8, %v11229_v24  ;;  %v11231_v54 = vld [vmem:[#allocation46_spill] sm:$0xff]  ;;  %v11233_v8 = vmax.f32 %v11219_v53, %v11227_v59 }
 0x4e4   : > { %v4855_v14 = vrot.slane %v4654_v18, 1  ;;  %v5064_v4 = vrot.slane %v4654_v18, 2 }
 0x4e5   : > { %v4856_v37 = vrot.slane %v4655_v48, 1  ;;  %v5065_v3 = vrot.slane %v4655_v48, 2 }
 0x4e7   : > { %v4857_v12 = vsel %vm1830_vm5, %v4855_v14, %v4856_v37  ;;  %v4859_v50 = vsel %vm1830_vm5, %v4856_v37, %v4858_v57  ;;  %v5066_v7 = vsel %vm3950_vm14, %v5064_v4, %v5065_v3  ;;  %v5068_v35 = vsel %vm3950_vm14, %v5065_v3, %v5067_v23  ;;  %v11234_v14 = vld [vmem:[#allocation45_spill] sm:$0xff] }
 0x4e8   : > { %v4955_v55 = vmax.f32 %v4654_v18, %v4857_v12  ;;  %v4956_v26 = vmax.f32 %v4655_v48, %v4859_v50  ;;  %v3957_v57 = vrot.slane %v8329_v32, 2  ;;  %v4863_v18 = vrot.slane %v11231_v54, 1 }
 0x4e9   : > { %v4657_v48 = vmax.f32 %v11233_v8, %v11232_v36  ;;  %v11235_v37 = vmax.f32 %v11221_v2, %v11229_v24  ;;  %v11239_v8 = vld [vmem:[#allocation54_spill] sm:$0xff] }
 0x4ea   : > { %6455 = vmatmul.msk.bf16.gmra.mxu1 %vm450_vm4, %v5290_v56  ;;  %v3956_v56 = vsel %vm3950_vm14, %v3954_v31, %v3955_v52  ;;  %v5164_v43 = vmax.f32 %v4955_v55, %v5066_v7  ;;  %v5165_v13 = vmax.f32 %v4956_v26, %v5068_v35  ;;  %v3958_v31 = vrot.slane %v11101_v63, 2 }
 0x4eb   : > { %v4860_v12 = vrot.slane %v4657_v48, 1  ;;  %v5069_v4 = vrot.slane %v4657_v48, 2  ;;  %v5072_v26 = vrot.slane %v11231_v54, 2 }
 0x4ec   : > { %v5196_v46 = vpack.c.bf16 %v5164_v43, %v5164_v43  ;;  %v5197_v27 = vpack.c.bf16 %v5165_v13, %v5165_v13 }
 0x4ee   : > { %v5265_v5 = vunpack.c.l.b16 %v5196_v46  ;;  %v5266_v52 = vunpack.c.l.b16 %v5197_v27 }
 0x4f0   : > { %v5293_v41 = vpack.c.b16 %v5266_v52, %v5265_v5  ;;  %v11236_v52 = vld [vmem:[#allocation55_spill] sm:$0xff] }
 0x4f2   : > { %6439 = vmatmul.msk.bf16.gmra.mxu0 %vm3018_vm13, %v3956_v56  ;;  %v4658_v56 = vmax.f32 %v11235_v37, %v11234_v14 }
 0x4f4   : > { %v4861_v50 = vrot.slane %v4658_v56, 1  ;;  %v5070_v3 = vrot.slane %v4658_v56, 2 }
 0x4f6   : > { %v4862_v63 = vsel %vm1830_vm5, %v4860_v12, %v4861_v50  ;;  %v4864_v32 = vsel %vm1830_vm5, %v4861_v50, %v4863_v18  ;;  %v5071_v23 = vsel %vm3950_vm14, %v5069_v4, %v5070_v3  ;;  %v5073_v2 = vsel %vm3950_vm14, %v5070_v3, %v5072_v26 }
 0x4f7   : > { %v4957_v55 = vmax.f32 %v4657_v48, %v4862_v63  ;;  %v4958_v53 = vmax.f32 %v4658_v56, %v4864_v32  ;;  %v11238_v18 = vmax.f32 %v11227_v59, %v11232_v36  ;;  %v11240_v48 = vmax.f32 %v11229_v24, %v11234_v14  ;;  %v11241_v32 = vld [vmem:[#allocation116_spill] sm:$0xff] }
 0x4f8   : > { %v5077_v59 = vrot.slane %v11236_v52, 2 }
 0x4f9   : > { %v5166_v7 = vmax.f32 %v4957_v55, %v5071_v23  ;;  %v5167_v35 = vmax.f32 %v4958_v53, %v5073_v2  ;;  %v4661_v37 = vmax.f32 %v11240_v48, %v11239_v8  ;;  %v11246_v48 = vmax.f32 %v11234_v14, %v11239_v8 }
 0x4fa   : > { %6456 = vmatmul.msk.bf16.gmra.mxu1 %vm450_vm4, %v5291_v39  ;;  %v3959_v39 = vsel %vm3950_vm14, %v3957_v57, %v3958_v31  ;;  %v4868_v31 = vrot.slane %v11236_v52, 1  ;;  %v11237_v57 = vld [vmem:[#allocation53_spill] sm:$0xff] }
 0x4fb   : > { %v5198_v43 = vpack.c.bf16 %v5166_v7, %v5166_v7  ;;  %v5199_v13 = vpack.c.bf16 %v5167_v35, %v5167_v35  ;;  %v4660_v54 = vmax.f32 %v11238_v18, %v11237_v57  ;;  %v4866_v12 = vrot.slane %v4661_v37, 1 }
 0x4fc   : > { %v5075_v63 = vrot.slane %v4661_v37, 2  ;;  %v11244_v52 = vmax.f32 %v11232_v36, %v11237_v57 }
 0x4fd   : > { %v5267_v46 = vunpack.c.l.b16 %v5198_v43  ;;  %v5268_v27 = vunpack.c.l.b16 %v5199_v13  ;;  %v4865_v56 = vrot.slane %v4660_v54, 1  ;;  %v11242_v13 = vld [vmem:[#allocation58_spill] sm:$0xff] }
 0x4fe   : > { %v5078_v24 = vsel %vm3950_vm14, %v5075_v63, %v5077_v59 }
 0x4ff   : > { %v5294_v5 = vpack.c.b16 %v5268_v27, %v5267_v46  ;;  %v4867_v50 = vsel %vm1830_vm5, %v4865_v56, %v4866_v12  ;;  %v4873_v46 = vrot.slane %v11242_v13, 1  ;;  %v9682_v27 = vpop.f32.mrf.mxu1 }
 0x500   : > { %v4959_v4 = vmax.f32 %v4660_v54, %v4867_v50 }
 0x502   : > { %6440 = vmatmul.msk.bf16.gmra.mxu0 %vm3018_vm13, %v3959_v39  ;;  %v4869_v39 = vsel %vm1830_vm5, %v4866_v12, %v4868_v31  ;;  %v11243_v31 = vld [vmem:[#allocation56_spill] sm:$0xff] }
 0x503   : > { %v4960_v3 = vmax.f32 %v4661_v37, %v4869_v39  ;;  %v4663_v18 = vmax.f32 %v11244_v52, %v11243_v31 }
 0x505   : > { %v5169_v26 = vmax.f32 %v4960_v3, %v5078_v24  ;;  %v4870_v56 = vrot.slane %v4663_v18, 1  ;;  %v5079_v39 = vrot.slane %v4663_v18, 2  ;;  %v5082_v3 = vrot.slane %v11242_v13, 2 }
 0x506   : > { %v11250_v13 = vmax.f32 %v11237_v57, %v11243_v31 }
 0x507   : > { %v5201_v2 = vpack.c.bf16 %v5169_v26, %v5169_v26 }
 0x509   : > { %v5270_v35 = vunpack.c.l.b16 %v5201_v2 }
 0x50a   : > { %6457 = vmatmul.msk.bf16.gmra.mxu1 %vm450_vm4, %v5292_v44  ;;  %v5074_v44 = vrot.slane %v4660_v54, 2  ;;  %v11245_v54 = vld [vmem:[#allocation57_spill] sm:$0xff] }
 0x50b   : > { %v4664_v37 = vmax.f32 %v11246_v48, %v11245_v54 }
 0x50c   : > { %v5076_v55 = vsel %vm3950_vm14, %v5074_v44, %v5075_v63  ;;  %v9694_v63 = vpop.f32.mrf.mxu0 }
 0x50d   : > { %v5168_v53 = vmax.f32 %v4959_v4, %v5076_v55  ;;  %v4871_v12 = vrot.slane %v4664_v37, 1  ;;  %v5080_v44 = vrot.slane %v4664_v37, 2  ;;  %v3292_v24 = vpop.f32.mrf.mxu1 }
 0x50f   : > { %v5200_v23 = vpack.c.bf16 %v5168_v53, %v5168_v53  ;;  %v4872_v50 = vsel %vm1830_vm5, %v4870_v56, %v4871_v12  ;;  %v5081_v14 = vsel %vm3950_vm14, %v5079_v39, %v5080_v44  ;;  %v5083_v59 = vsel %vm3950_vm14, %v5080_v44, %v5082_v3  ;;  %v11253_v44 = vld [vmem:[#allocation59_spill] sm:$0xff] }
 0x510   : > { %v4961_v36 = vmax.f32 %v4663_v18, %v4872_v50  ;;  %v11249_v18 = vld [vmem:[#allocation7_spill] sm:$0xff]  ;;  %v11252_v56 = vmax.f32 %v11239_v8, %v11245_v54  ;;  %v5087_v8 = vrot.slane %v11253_v44, 2 }
 0x511   : > { %v5269_v7 = vunpack.c.l.b16 %v5200_v23  ;;  %v4666_v48 = vmax.f32 %v11250_v13, %v11249_v18 }
 0x512   : > { %6441 = vmatmul.msk.bf16.gmra.mxu0 %vm3018_vm13, %v11241_v32  ;;  %v11247_v32 = vld [vmem:[#allocation136_spill] sm:$0xff]  ;;  %v5170_v55 = vmax.f32 %v4961_v36, %v5081_v14  ;;  %v11254_v14 = vld [vmem:[#allocation141_spill] sm:$0xff] }
 0x513   : > { %v5295_v43 = vpack.c.b16 %v5270_v35, %v5269_v7 }
 0x514   : > { %v5202_v26 = vpack.c.bf16 %v5170_v55, %v5170_v55 }
 0x515   : > { %v3294_v50 = vpop.f32.mrf.mxu1 }
 0x516   : > { %v5271_v2 = vunpack.c.l.b16 %v5202_v26 }
 0x51a   : > { %6458 = vmatmul.msk.bf16.gmra.mxu1 %vm450_vm4, %v5293_v41  ;;  %v4874_v41 = vsel %vm1830_vm5, %v4871_v12, %v4873_v46 }
 0x51b   : > { %v4962_v4 = vmax.f32 %v4664_v37, %v4874_v41  ;;  %v11251_v37 = vld [vmem:[#allocation15_spill] sm:$0xff]  ;;  %v4875_v41 = vrot.slane %v4666_v48, 1 }
 0x51c   : > { %v4667_v12 = vmax.f32 %v11252_v56, %v11251_v37 }
 0x51d   : > { %v5171_v53 = vmax.f32 %v4962_v4, %v5083_v59  ;;  %v5084_v4 = vrot.slane %v4666_v48, 2 }
 0x51e   : > { %v4876_v39 = vrot.slane %v4667_v12, 1  ;;  %v5085_v3 = vrot.slane %v4667_v12, 2 }
 0x51f   : > { %v5203_v23 = vpack.c.bf16 %v5171_v53, %v5171_v53 }
 0x520   : > { %v5086_v53 = vsel %vm3950_vm14, %v5084_v4, %v5085_v3  ;;  %v5088_v26 = vsel %vm3950_vm14, %v5085_v3, %v5087_v8 }
 0x521   : > { %v5272_v7 = vunpack.c.l.b16 %v5203_v23 }
 0x522   : > { %6442 = vmatmul.msk.bf16.gmra.mxu0 %vm3018_vm13, %v11247_v32  ;;  %v4878_v32 = vrot.slane %v11253_v44, 1  ;;  %v11258_v44 = vld [vmem:[#allocation17_spill] sm:$0xff] }
 0x523   : > { %v5296_v52 = vpack.c.b16 %v5272_v7, %v5271_v2 }
 0x524   : > { %v4879_v36 = vsel %vm1830_vm5, %v4876_v39, %v4878_v32  ;;  %v11259_v32 = vmax.f32 %v11245_v54, %v11251_v37 }
 0x525   : > { %v4964_v55 = vmax.f32 %v4667_v12, %v4879_v36  ;;  %v11256_v12 = vld [vmem:[#allocation16_spill] sm:$0xff] }
 0x527   : > { %v5173_v2 = vmax.f32 %v4964_v55, %v5088_v26  ;;  %v11262_v26 = vld [vmem:[#allocation149_spill] sm:$0xff] }
 0x529   : > { %v5205_v13 = vpack.c.bf16 %v5173_v2, %v5173_v2 }
 0x52a   : > { %v3141_v35 = vpop.f32.mrf.mxu0  ;;  %6459 = vmatmul.msk.bf16.gmra.mxu1 %vm450_vm4, %v5294_v5  ;;  %v4877_v5 = vsel %vm1830_vm5, %v4875_v41, %v4876_v39 }
 0x52b   : > { %v9702_v46 = vadd.f32 %v3292_v24, %v3141_v35  ;;  %v4963_v59 = vmax.f32 %v4666_v48, %v4877_v5  ;;  %v9724_v41 = vunpack.c.l.b16 %v5205_v13  ;;  %v4670_v5 = vmax.f32 %v11259_v32, %v11258_v44 }
 0x52d   : > { %11248 = vst [vmem:[#allocation134_spill] sm:$0xff] %v9702_v46  ;;  %v5172_v23 = vmax.f32 %v4963_v59, %v5086_v53  ;;  %v11285_v46 = vld [vmem:[#allocation178_spill] sm:$0xff] }
 0x52f   : > { %v5204_v7 = vpack.c.bf16 %v5172_v23, %v5172_v23 }
 0x531   : > { %v9722_v56 = vunpack.c.l.b16 %v5204_v7 }
 0x532   : > { %6443 = vmatmul.msk.bf16.gmra.mxu0 %vm3018_vm13, %v11254_v14  ;;  %v3143_v57 = vpop.f32.mrf.mxu0  ;;  %v4881_v14 = vrot.slane %v4670_v5, 1 }
 0x533   : > { %v9718_v24 = vadd.f32 %v3294_v50, %v3143_v57  ;;  %v5297_v48 = vpack.c.b16 %v9724_v41, %v9722_v56  ;;  %v11257_v50 = vmax.f32 %v11243_v31, %v11249_v18  ;;  %v11260_v57 = vld [vmem:[#allocation60_spill] sm:$0xff]  ;;  %v5090_v31 = vrot.slane %v4670_v5, 2 }
 0x534   : > { %v4883_v59 = vrot.slane %v11260_v57, 1  ;;  %v5092_v2 = vrot.slane %v11260_v57, 2 }
 0x535   : > { %11255 = vst [vmem:[#allocation138_spill] sm:$0xff] %v9718_v24  ;;  %v4669_v39 = vmax.f32 %v11257_v50, %v11256_v12 }
 0x536   : > { %v4884_v8 = vsel %vm1830_vm5, %v4881_v14, %v4883_v59  ;;  %v5093_v13 = vsel %vm3950_vm14, %v5090_v31, %v5092_v2 }
 0x537   : > { %v3297_v35 = vpop.f32.mrf.mxu1  ;;  %v4880_v3 = vrot.slane %v4669_v39, 1  ;;  %v5089_v53 = vrot.slane %v4669_v39, 2  ;;  %v4966_v54 = vmax.f32 %v4670_v5, %v4884_v8  ;;  %v11264_v5 = vld [vmem:[#allocation24_spill] sm:$0xff]  ;;  %v11266_v8 = vmax.f32 %v11249_v18, %v11256_v12 }
 0x538   : > { %v4888_v57 = vrot.slane %v11264_v5, 1 }
 0x539   : > { %v4882_v55 = vsel %vm1830_vm5, %v4880_v3, %v4881_v14  ;;  %v5091_v7 = vsel %vm3950_vm14, %v5089_v53, %v5090_v31  ;;  %v11267_v31 = vld [vmem:[#allocation23_spill] sm:$0xff] }
 0x53a   : > { %6460 = vmatmul.msk.bf16.gmra.mxu1 %vm450_vm4, %v5295_v43  ;;  %v4965_v23 = vmax.f32 %v4669_v39, %v4882_v55  ;;  %v11265_v55 = vld [vmem:[#allocation22_spill] sm:$0xff] }
 0x53b   : > { %v4672_v53 = vmax.f32 %v11266_v8, %v11265_v55  ;;  %v11271_v8 = vld [vmem:[#allocation111_spill] sm:$0xff] }
 0x53c   : > { %v5174_v56 = vmax.f32 %v4965_v23, %v5091_v7 }
 0x53d   : > { %v5094_v18 = vrot.slane %v4672_v53, 2 }
 0x53e   : > { %v5206_v41 = vpack.c.bf16 %v5174_v56, %v5174_v56 }
 0x53f   : > { %v3146_v36 = vpop.f32.mrf.mxu0  ;;  %v3299_v4 = vpop.f32.mrf.mxu1 }
 0x540   : > { %v9738_v43 = vadd.f32 %v3297_v35, %v3146_v36  ;;  %v5175_v35 = vmax.f32 %v4966_v54, %v5093_v13  ;;  %v9749_v14 = vunpack.c.l.b16 %v5206_v41  ;;  %v11270_v13 = vld [vmem:[#allocation170_spill] sm:$0xff] }
 0x542   : > { %11261 = vst [vmem:[#allocation81_spill] sm:$0xff] %v9738_v43  ;;  %6444 = vmatmul.msk.bf16.gmra.mxu0 %vm3018_vm13, %v11262_v26  ;;  %v5207_v36 = vpack.c.bf16 %v5175_v35, %v5175_v35 }
 0x544   : > { %v9751_v59 = vunpack.c.l.b16 %v5207_v36 }
 0x547   : > { %v3148_v50 = vpop.f32.mrf.mxu0  ;;  %v3302_v32 = vpop.f32.mrf.mxu1 }
 0x548   : > { %v9747_v3 = vadd.f32 %v3299_v4, %v3148_v50  ;;  %v11268_v4 = vmax.f32 %v11251_v37, %v11258_v44  ;;  %v5097_v37 = vrot.slane %v11264_v5, 2 }
 0x54a   : > { %11263 = vst [vmem:[#allocation161_spill] sm:$0xff] %v9747_v3  ;;  %6461 = vmatmul.msk.bf16.gmra.mxu1 %vm450_vm4, %v5296_v52  ;;  %v4673_v26 = vmax.f32 %v11268_v4, %v11267_v31  ;;  %v4885_v52 = vrot.slane %v4672_v53, 1  ;;  %v11272_v4 = vld [vmem:[#allocation107_spill] sm:$0xff] }
 0x54c   : > { %v4886_v7 = vrot.slane %v4673_v26, 1  ;;  %v5095_v36 = vrot.slane %v4673_v26, 2 }
 0x54e   : > { %v4887_v56 = vsel %vm1830_vm5, %v4885_v52, %v4886_v7  ;;  %v4889_v35 = vsel %vm1830_vm5, %v4886_v7, %v4888_v57  ;;  %v5098_v52 = vsel %vm3950_vm14, %v5095_v36, %v5097_v37 }
 0x54f   : > { %v3151_v23 = vpop.f32.mrf.mxu0  ;;  %v3304_v54 = vpop.f32.mrf.mxu1  ;;  %v4967_v41 = vmax.f32 %v4672_v53, %v4887_v56  ;;  %v4968_v50 = vmax.f32 %v4673_v26, %v4889_v35 }
 0x550   : > { %v9765_v2 = vadd.f32 %v3302_v32, %v3151_v23  ;;  %v9775_v32 = vld [vmem:[%s10735_s8] ss:$0 sm:$0xff]  ;;  %v1766_v23 = vadd.f32 %v11272_v4, %v11271_v8  ;;  %v3918_v4 = vadd.f32 %v9109_v34, %v9204_v58 }
 0x551   : > { %v5177_v57 = vmax.f32 %v4968_v50, %v5098_v52  ;;  %v11276_v50 = vld [vmem:[#allocation180_spill] sm:$0xff]  ;;  %v11280_v52 = vld [vmem:[#allocation29_spill] sm:$0xff] }
 0x552   : > { %11269 = vst [vmem:[#allocation144_spill] sm:$0xff] %v9765_v2  ;;  %6445 = vmatmul.msk.bf16.gmra.mxu0 %vm3018_vm13, %v11270_v13  ;;  %v5096_v13 = vsel %vm3950_vm14, %v5094_v18, %v5095_v36  ;;  %v11274_v2 = vld [vmem:[#allocation158_spill] sm:$0xff] }
 0x553   : > { %v5176_v39 = vmax.f32 %v4967_v41, %v5096_v13  ;;  %v5209_v35 = vpack.c.bf16 %v5177_v57, %v5177_v57  ;;  %v2083_v3 = vadd.f32 %v11274_v2, %v1766_v23  ;;  %v11275_v2 = vld [vmem:[#allocation105_spill] sm:$0xff]  ;;  %v11278_v23 = vld [vmem:[#allocation28_spill] sm:$0xff]  ;;  %v11281_v57 = vmax.f32 %v11258_v44, %v11267_v31 }
 0x554   : > { %v1769_v36 = vadd.f32 %v11276_v50, %v11275_v2 }
 0x555   : > { %v5208_v26 = vpack.c.bf16 %v5176_v39, %v5176_v39  ;;  %v9788_v18 = vunpack.c.l.b16 %v5209_v35 }
 0x557   : > { %v3153_v7 = vpop.f32.mrf.mxu0  ;;  %v5365_v53 = vpop.f32.mrf.mxu1  ;;  %v9786_v8 = vunpack.c.l.b16 %v5208_v26 }
 0x558   : > { %v9781_v56 = vadd.f32 %v3304_v54, %v3153_v7  ;;  %v5366_v5 = vadd.f32 %v9775_v32, %v5365_v53  ;;  %v9796_v54 = vld [vmem:[%s10731_s4] ss:$0 sm:$0xff]  ;;  %v4676_v7 = vmax.f32 %v11281_v57, %v11280_v52  ;;  %v11282_v53 = vld [vmem:[#allocation150_spill] sm:$0xff] }
 0x559   : > { %v2119_v39 = vadd.f32 %v9796_v54, %v2083_v3  ;;  %v11283_v3 = vld [vmem:[#allocation151_spill] sm:$0xff] }
 0x55a   : > { %11273 = vst [vmem:[#allocation165_spill] sm:$0xff] %v9781_v56  ;;  %v5445_v24 = vmax.f32 %v5366_v5, 0.0  ;;  %6462 = vmatmul.msk.bf16.gmra.mxu1 %vm450_vm4, %v5297_v48  ;;  %v11277_v48 = vld [vmem:[#allocation30_spill] sm:$0xff]  ;;  %v3230_v5 = vadd.f32 %v11283_v3, %v11282_v53  ;;  %v4891_v58 = vrot.slane %v4676_v7, 1  ;;  %v11284_v56 = vld [vmem:[#allocation163_spill] sm:$0xff] }
 0x55b   : > { %v4893_v37 = vrot.slane %v11277_v48, 1  ;;  %v2151_v41 = vmax.f32 %v2119_v39, 0.0  ;;  %v11286_v39 = vld [vmem:[#allocation71_spill] sm:$0xff] }
 0x55c   : > { %5765 = vrot.lane.b32.xlu0 %v5445_v24, %s6682_s14  ;;  %v11279_v24 = vmax.f32 %v11256_v12, %v11265_v55  ;;  %v2084_v12 = vadd.f32 %v11284_v56, %v1769_v36  ;;  %v5102_v56 = vrot.slane %v11277_v48, 2 }
 0x55d   : > { %v4894_v57 = vsel %vm1830_vm5, %v4891_v58, %v4893_v37 }
 0x55e   : > { %v4675_v13 = vmax.f32 %v11279_v24, %v11278_v23  ;;  %v3565_v24 = vadd.f32 %v9222_v29, %v3230_v5  ;;  %v1771_v29 = vadd.f32 %v9032_v30, %v11286_v39  ;;  %v11291_v39 = vld [vmem:[#allocation34_spill] sm:$0xff] }
 0x55f   : > { %v4096_v26 = vpop.f32.mrf.mxu0  ;;  %v5367_v35 = vpop.f32.mrf.mxu1 }
 0x560   : > { %v9814_v2 = vadd.f32 %v4096_v26, %v3918_v4  ;;  %v5368_v50 = vadd.f32 %v9775_v32, %v5367_v35  ;;  %v4890_v34 = vrot.slane %v4675_v13, 1  ;;  %v4970_v4 = vmax.f32 %v4676_v7, %v4894_v57 }
 0x561   : > { %v5099_v3 = vrot.slane %v4675_v13, 2  ;;  %v5100_v26 = vrot.slane %v4676_v7, 2  ;;  %v3919_v5 = vadd.f32 %v9118_v40, %v3565_v24 }
 0x562   : > { %v5446_v43 = vmax.f32 %v5368_v50, 0.0  ;;  %6446 = vmatmul.msk.bf16.gmra.mxu0 %vm3018_vm13, %v11285_v46  ;;  %v4892_v44 = vsel %vm1830_vm5, %v4890_v34, %v4891_v58  ;;  %v2120_v46 = vadd.f32 %v9796_v54, %v2084_v12  ;;  %v11287_v34 = vld [vmem:[#allocation164_spill] sm:$0xff]  ;;  %v11288_v12 = vpack.c.b16 %v9751_v59, %v9749_v14 }
 0x563   : > { %v4969_v53 = vmax.f32 %v4675_v13, %v4892_v44  ;;  %v5101_v36 = vsel %vm3950_vm14, %v5099_v3, %v5100_v26  ;;  %v5103_v37 = vsel %vm3950_vm14, %v5100_v26, %v5102_v56  ;;  %v2085_v58 = vadd.f32 %v11287_v34, %v1771_v29  ;;  %v11290_v56 = vld [vmem:[#allocation112_spill] sm:$0xff] }
 0x564   : > { %5767 = vrot.lane.b32.xlu1 %v5446_v43, %s6682_s14  ;;  %5547 = vrot.lane.b32.xlu0 %v2151_v41, %s6684_s17  ;;  %v5179_v50 = vmax.f32 %v4970_v4, %v5103_v37  ;;  %v2152_v44 = vmax.f32 %v2120_v46, 0.0  ;;  %v1774_v14 = vadd.f32 %v9057_v49, %v11290_v56  ;;  %v3920_v59 = vadd.f32 %v9139_v28, %v9262_v62  ;;  %v11293_v46 = vld [vmem:[#allocation35_spill] sm:$0xff]  ;;  %v11295_v28 = vld [vmem:[#allocation168_spill] sm:$0xff] }
 0x565   : > { %v5178_v35 = vmax.f32 %v4969_v53, %v5101_v36  ;;  %v11289_v53 = vld [vmem:[#allocation36_spill] sm:$0xff]  ;;  %v2121_v3 = vadd.f32 %v9796_v54, %v2085_v58  ;;  %v11292_v29 = vmax.f32 %v11265_v55, %v11278_v23 }
 0x566   : > { %v5211_v30 = vpack.c.bf16 %v5179_v50, %v5179_v50  ;;  %v4898_v4 = vrot.slane %v11289_v53, 1  ;;  %v2086_v62 = vadd.f32 %v11295_v28, %v1774_v14  ;;  %v11296_v58 = vld [vmem:[#allocation184_spill] sm:$0xff] }
 0x567   : > { %v4098_v13 = vpop.f32.mrf.mxu0  ;;  %v5370_v7 = vpop.f32.mrf.mxu1  ;;  %v5210_v48 = vpack.c.bf16 %v5178_v35, %v5178_v35  ;;  %v4678_v36 = vmax.f32 %v11292_v29, %v11291_v39  ;;  %v11298_v29 = vld [vmem:[#allocation186_spill] sm:$0xff] }
 0x568   : > { %v9832_v43 = vadd.f32 %v4098_v13, %v3919_v5  ;;  %v5371_v41 = vadd.f32 %v9775_v32, %v5370_v7  ;;  %v9842_v24 = vunpack.c.l.b16 %v5211_v30  ;;  %v11294_v5 = vmax.f32 %v11267_v31, %v11280_v52 }
 0x569   : > { %v9840_v40 = vunpack.c.l.b16 %v5210_v48  ;;  %v4895_v49 = vrot.slane %v4678_v36, 1  ;;  %v2153_v48 = vmax.f32 %v2121_v3, 0.0  ;;  %v5107_v3 = vrot.slane %v11289_v53, 2  ;;  %v11299_v53 = vld [vmem:[#allocation172_spill] sm:$0xff] }
 0x56a   : > { %v5447_v57 = vmax.f32 %v5371_v41, 0.0  ;;  %6463 = vmatmul.msk.bf16.gmra.mxu1 %vm450_vm4, %v11288_v12  ;;  %v4679_v37 = vmax.f32 %v11294_v5, %v11293_v46  ;;  %v2122_v14 = vadd.f32 %v9796_v54, %v2086_v62  ;;  %v11300_v62 = vpack.c.b16 %v9788_v18, %v9786_v8  ;;  %v11303_v18 = vld [vmem:[#allocation41_spill] sm:$0xff] }
 0x56b   : > { %v5300_v26 = vpack.c.b16 %v9842_v24, %v9840_v40  ;;  %v3922_v8 = vadd.f32 %v9207_v51, %v9309_v33  ;;  %v3924_v40 = vadd.f32 %v9276_v17, %v9362_v60  ;;  %v11314_v24 = vld [vmem:[#allocation48_spill] sm:$0xff] }
 0x56c   : > { %5769 = vrot.lane.b32.xlu2 %v5447_v57, %s6682_s14  ;;  %5549 = vrot.lane.b32.xlu1 %v2152_v44, %s6684_s17  ;;  %v4896_v41 = vrot.slane %v4679_v37, 1  ;;  %v5104_v57 = vrot.slane %v4678_v36, 2  ;;  %v5105_v12 = vrot.slane %v4679_v37, 2 }
 0x56e   : > { %v4897_v55 = vsel %vm1830_vm5, %v4895_v49, %v4896_v41  ;;  %v4899_v31 = vsel %vm1830_vm5, %v4896_v41, %v4898_v4  ;;  %v5106_v56 = vsel %vm3950_vm14, %v5104_v57, %v5105_v12  ;;  %v11302_v57 = vld [vmem:[#allocation188_spill] sm:$0xff] }
 0x56f   : > { %v4101_v35 = vpop.f32.mrf.mxu0  ;;  %v5372_v13 = vpop.f32.mrf.mxu1  ;;  %v4971_v30 = vmax.f32 %v4678_v36, %v4897_v55  ;;  %v4972_v44 = vmax.f32 %v4679_v37, %v4899_v31 }
 0x570   : > { %v9862_v7 = vadd.f32 %v4101_v35, %v3920_v59  ;;  %v5373_v50 = vadd.f32 %v9775_v32, %v5372_v13  ;;  %v11297_v59 = vld [vmem:[#allocation118_spill] sm:$0xff]  ;;  %v5108_v35 = vsel %vm3950_vm14, %v5105_v12, %v5107_v3  ;;  %v4903_v3 = vrot.slane %v11303_v18, 1 }
 0x571   : > { %v1776_v5 = vadd.f32 %v11298_v29, %v11297_v59  ;;  %v5180_v4 = vmax.f32 %v4971_v30, %v5106_v56  ;;  %v5181_v37 = vmax.f32 %v4972_v44, %v5108_v35  ;;  %v11301_v44 = vld [vmem:[#allocation121_spill] sm:$0xff]  ;;  %v11304_v59 = vld [vmem:[#allocation42_spill] sm:$0xff]  ;;  %v11305_v29 = vmax.f32 %v11278_v23, %v11291_v39  ;;  %v11306_v35 = vld [vmem:[#allocation43_spill] sm:$0xff] }
 0x572   : > { %v5448_v34 = vmax.f32 %v5373_v50, 0.0  ;;  %6447 = vmatmul.msk.bf16.gmra.mxu0 %vm3018_vm13, %v11296_v58  ;;  %v1779_v12 = vadd.f32 %v11302_v57, %v11301_v44  ;;  %v11309_v57 = vld [vmem:[#allocation76_spill] sm:$0xff] }
 0x573   : > { %v5212_v49 = vpack.c.bf16 %v5180_v4, %v5180_v4  ;;  %v5213_v41 = vpack.c.bf16 %v5181_v37, %v5181_v37  ;;  %v2087_v28 = vadd.f32 %v11299_v53, %v1776_v5  ;;  %v4681_v5 = vmax.f32 %v11305_v29, %v11304_v59 }
 0x574   : > { %5551 = vrot.lane.b32.xlu2 %v2153_v48, %s6684_s17  ;;  %5771 = vrot.lane.b32.xlu0 %v5448_v34, %s6682_s14  ;;  %v2154_v48 = vmax.f32 %v2122_v14, 0.0  ;;  %v11307_v4 = vmax.f32 %v11280_v52, %v11293_v46 }
 0x575   : > { %v9886_v58 = vunpack.c.l.b16 %v5212_v49  ;;  %v9888_v55 = vunpack.c.l.b16 %v5213_v41  ;;  %v2123_v30 = vadd.f32 %v9796_v54, %v2087_v28  ;;  %v4900_v49 = vrot.slane %v4681_v5, 1  ;;  %v11308_v41 = vld [vmem:[#allocation174_spill] sm:$0xff] }
 0x576   : > { %v5109_v28 = vrot.slane %v4681_v5, 2 }
 0x577   : > { %v9878_v13 = vpop.f32.mrf.mxu0  ;;  %v5375_v36 = vpop.f32.mrf.mxu1  ;;  %v5301_v31 = vpack.c.b16 %v9888_v55, %v9886_v58  ;;  %v2155_v33 = vmax.f32 %v2123_v30, 0.0  ;;  %v3926_v58 = vadd.f32 %v9343_v1, %v9397_v16  ;;  %v11326_v16 = vld [vmem:[#allocation129_spill] sm:$0xff] }
 0x578   : > { %v5376_v50 = vadd.f32 %v9775_v32, %v5375_v36  ;;  %v4682_v36 = vmax.f32 %v11307_v4, %v11306_v35 }
 0x57a   : > { %v5449_v34 = vmax.f32 %v5376_v50, 0.0  ;;  %6464 = vmatmul.msk.bf16.gmra.mxu1 %vm450_vm4, %v11300_v62  ;;  %v4901_v51 = vrot.slane %v4682_v36, 1  ;;  %v5110_v52 = vrot.slane %v4682_v36, 2  ;;  %v5112_v62 = vrot.slane %v11303_v18, 2  ;;  %v11311_v18 = vld [vmem:[#allocation177_spill] sm:$0xff] }
 0x57c   : > { %5773 = vrot.lane.b32.xlu1 %v5449_v34, %s6682_s14  ;;  %5553 = vrot.lane.b32.xlu0 %v2154_v48, %s6684_s17  ;;  %v2088_v48 = vadd.f32 %v11308_v41, %v1779_v12  ;;  %v4902_v23 = vsel %vm1830_vm5, %v4900_v49, %v4901_v51  ;;  %v4904_v39 = vsel %vm1830_vm5, %v4901_v51, %v4903_v3  ;;  %v11313_v41 = vld [vmem:[#allocation191_spill] sm:$0xff] }
 0x57d   : > { %v4973_v46 = vmax.f32 %v4681_v5, %v4902_v23  ;;  %v4974_v34 = vmax.f32 %v4682_v36, %v4904_v39  ;;  %v5111_v30 = vsel %vm3950_vm14, %v5109_v28, %v5110_v52 }
 0x57e   : > { %v2124_v44 = vadd.f32 %v9796_v54, %v2088_v48 }
 0x57f   : > { %v4106_v56 = vpop.f32.mrf.mxu0  ;;  %v5377_v14 = vpop.f32.mrf.mxu1  ;;  %v5182_v3 = vmax.f32 %v4973_v46, %v5111_v30 }
 0x580   : > { %v9908_v37 = vadd.f32 %v4106_v56, %v3922_v8  ;;  %v5378_v50 = vadd.f32 %v9775_v32, %v5377_v14  ;;  %v5113_v8 = vsel %vm3950_vm14, %v5110_v52, %v5112_v62  ;;  %v2156_v4 = vmax.f32 %v2124_v44, 0.0  ;;  %v11315_v62 = vld [vmem:[#allocation179_spill] sm:$0xff]  ;;  %v11316_v44 = vld [vmem:[#allocation50_spill] sm:$0xff] }
 0x581   : > { %v5183_v59 = vmax.f32 %v4974_v34, %v5113_v8  ;;  %v5214_v5 = vpack.c.bf16 %v5182_v3, %v5182_v3  ;;  %v5117_v34 = vrot.slane %v11314_v24, 2 }
 0x582   : > { %v5450_v53 = vmax.f32 %v5378_v50, 0.0  ;;  %6448 = vmatmul.msk.bf16.gmra.mxu0 %vm3018_vm13, %v9178_v20  ;;  %v11310_v20 = vld [vmem:[#allocation190_spill] sm:$0xff] }
 0x583   : > { %v1781_v12 = vadd.f32 %v11310_v20, %v11309_v57  ;;  %v5215_v35 = vpack.c.bf16 %v5183_v59, %v5183_v59  ;;  %v9932_v49 = vunpack.c.l.b16 %v5214_v5  ;;  %v4905_v57 = vrot.slane %v11316_v44, 1  ;;  %v11317_v20 = vld [vmem:[#allocation52_spill] sm:$0xff] }
 0x584   : > { %5775 = vrot.lane.b32.xlu2 %v5450_v53, %s6682_s14  ;;  %5555 = vrot.lane.b32.xlu1 %v2155_v33, %s6684_s17  ;;  %v11312_v33 = vld [vmem:[#allocation123_spill] sm:$0xff]  ;;  %v5115_v59 = vrot.slane %v11317_v20, 2 }
 0x585   : > { %v2089_v36 = vadd.f32 %v11311_v18, %v1781_v12  ;;  %v9934_v51 = vunpack.c.l.b16 %v5215_v35  ;;  %v1784_v48 = vadd.f32 %v11313_v41, %v11312_v33  ;;  %v4906_v12 = vrot.slane %v11317_v20, 1  ;;  %v11318_v18 = vld [vmem:[#allocation126_spill] sm:$0xff] }
 0x587   : > { %v9924_v56 = vpop.f32.mrf.mxu0  ;;  %v5380_v14 = vpop.f32.mrf.mxu1  ;;  %v5302_v53 = vpack.c.b16 %v9934_v51, %v9932_v49  ;;  %v2125_v23 = vadd.f32 %v9796_v54, %v2089_v36  ;;  %v2090_v30 = vadd.f32 %v11315_v62, %v1784_v48  ;;  %v4907_v17 = vsel %vm1830_vm5, %v4905_v57, %v4906_v12  ;;  %v11319_v36 = vld [vmem:[#allocation193_spill] sm:$0xff] }
 0x588   : > { %v5381_v29 = vadd.f32 %v9775_v32, %v5380_v14  ;;  %v5114_v14 = vrot.slane %v11316_v44, 2  ;;  %v9972_v62 = vpop.permute.xlu2 %5509  ;;  %v11332_v49 = vld [vmem:[#allocation181_spill] sm:$0xff] }
 0x589   : > { %v2157_v8 = vmax.f32 %v2125_v23, 0.0  ;;  %v2126_v35 = vadd.f32 %v9796_v54, %v2090_v30 }
 0x58a   : > { %v5451_v50 = vmax.f32 %v5381_v29, 0.0  ;;  %6465 = vmatmul.msk.bf16.gmra.mxu1 %vm450_vm4, %v5300_v26  ;;  %v4908_v26 = vrot.slane %v11314_v24, 1  ;;  %v4975_v29 = vmax.f32 %v11316_v44, %v4907_v17  ;;  %v11323_v17 = vld [vmem:[#allocation175_spill] sm:$0xff] }
 0x58c   : > { %5557 = vrot.lane.b32.xlu2 %v2156_v4, %s6684_s17  ;;  %5777 = vrot.lane.b32.xlu0 %v5451_v50, %s6682_s14  ;;  %v4909_v60 = vsel %vm1830_vm5, %v4906_v12, %v4908_v26  ;;  %v5118_v4 = vsel %vm3950_vm14, %v5115_v59, %v5117_v34  ;;  %v1786_v50 = vadd.f32 %v11319_v36, %v11318_v18  ;;  %v11321_v12 = vld [vmem:[#allocation128_spill] sm:$0xff] }
 0x58d   : > { %v4976_v5 = vmax.f32 %v11317_v20, %v4909_v60  ;;  %v11324_v60 = vld [vmem:[#allocation96_spill] sm:$0xff] }
 0x58f   : > { %v4111_v39 = vpop.f32.mrf.mxu0  ;;  %v5382_v28 = vpop.f32.mrf.mxu1  ;;  %v5185_v41 = vmax.f32 %v4976_v5, %v5118_v4 }
 0x590   : > { %v9946_v52 = vadd.f32 %v4111_v39, %v3924_v40  ;;  %v5383_v46 = vadd.f32 %v9775_v32, %v5382_v28  ;;  %v2158_v39 = vmax.f32 %v2126_v35, 0.0  ;;  %v11320_v28 = vld [vmem:[#allocation183_spill] sm:$0xff]  ;;  %v11325_v35 = vld [vmem:[#allocation185_spill] sm:$0xff]  ;;  %v10000_v36 = vpop.permute.xlu2 %5515 }
 0x591   : > { %v5217_v26 = vpack.c.bf16 %v5185_v41, %v5185_v41 }
 0x592   : > { %v5452_v3 = vmax.f32 %v5383_v46, 0.0  ;;  %6449 = vmatmul.msk.bf16.gmra.mxu0 %vm3018_vm13, %v9265_v21  ;;  %v5116_v21 = vsel %vm3950_vm14, %v5114_v14, %v5115_v59  ;;  %v2091_v46 = vadd.f32 %v11320_v28, %v1786_v50  ;;  %v3250_v14 = vadd.f32 %v11324_v60, %v11323_v17  ;;  %v11327_v50 = vld [vmem:[#allocation109_spill] sm:$0xff] }
 0x593   : > { %v5184_v33 = vmax.f32 %v4975_v29, %v5116_v21  ;;  %v9980_v44 = vunpack.c.l.b16 %v5217_v26  ;;  %v11328_v26 = vld [vmem:[#allocation187_spill] sm:$0xff]  ;;  %v11333_v17 = vld [vmem:[#allocation189_spill] sm:$0xff] }
 0x594   : > { %5779 = vrot.lane.b32.xlu1 %v5452_v3, %s6682_s14  ;;  %5559 = vrot.lane.b32.xlu0 %v2157_v8, %s6684_s17  ;;  %v2127_v20 = vadd.f32 %v9796_v54, %v2091_v46  ;;  %v11322_v8 = vld [vmem:[#allocation194_spill] sm:$0xff]  ;;  %v3573_v4 = vadd.f32 %v9409_v6, %v3250_v14  ;;  %v11329_v46 = vld [vmem:[#allocation132_spill] sm:$0xff] }
 0x595   : > { %v5216_v24 = vpack.c.bf16 %v5184_v33, %v5184_v33  ;;  %v1789_v3 = vadd.f32 %v11322_v8, %v11321_v12  ;;  %v1791_v33 = vadd.f32 %v11327_v50, %v11326_v16  ;;  %v11334_v14 = vld [vmem:[#allocation122_spill] sm:$0xff] }
 0x596   : > { %v2159_v5 = vmax.f32 %v2127_v20, 0.0  ;;  %v3927_v41 = vadd.f32 %v9370_v47, %v3573_v4  ;;  %v3928_v20 = vadd.f32 %v9392_v10, %v9421_v45  ;;  %v10036_v10 = vpop.permute.xlu1 %5513  ;;  %v11337_v4 = vld [vmem:[#allocation196_spill] sm:$0xff] }
 0x597   : > { %v9968_v48 = vpop.f32.mrf.mxu0  ;;  %v5385_v23 = vpop.f32.mrf.mxu1  ;;  %v9978_v34 = vunpack.c.l.b16 %v5216_v24  ;;  %v2092_v21 = vadd.f32 %v11325_v35, %v1789_v3  ;;  %v11331_v3 = vld [vmem:[#allocation182_spill] sm:$0xff] }
 0x598   : > { %v5386_v40 = vadd.f32 %v9775_v32, %v5385_v23  ;;  %v3255_v51 = vadd.f32 %v11332_v49, %v11331_v3  ;;  %v11335_v35 = vld [vmem:[#allocation130_spill] sm:$0xff]  ;;  %v11347_v49 = vld [vmem:[#allocation49_spill] sm:$0xff] }
 0x599   : > { %v5303_v57 = vpack.c.b16 %v9980_v44, %v9978_v34  ;;  %v2128_v1 = vadd.f32 %v9796_v54, %v2092_v21  ;;  %v10021_v44 = vpop.permute.xlu2 %5521  ;;  %v11336_v21 = vld [vmem:[#allocation135_spill] sm:$0xff] }
 0x59a   : > { %v5453_v30 = vmax.f32 %v5386_v40, 0.0  ;;  %6466 = vmatmul.msk.bf16.gmra.mxu1 %vm450_vm4, %v5301_v31 }
 0x59c   : > { %5781 = vrot.lane.b32.xlu2 %v5453_v30, %s6682_s14  ;;  %5561 = vrot.lane.b32.xlu1 %v2158_v39, %s6684_s17  ;;  %v2093_v39 = vadd.f32 %v11328_v26, %v1791_v33  ;;  %v11330_v30 = vld [vmem:[#allocation115_spill] sm:$0xff] }
 0x59d   : > { %v1794_v34 = vadd.f32 %v11330_v30, %v11329_v46  ;;  %v11344_v46 = vld [vmem:[#allocation192_spill] sm:$0xff] }
 0x59e   : > { %v2129_v47 = vadd.f32 %v9796_v54, %v2093_v39 }
 0x59f   : > { %v4116_v55 = vpop.f32.mrf.mxu0  ;;  %v5387_v31 = vpop.f32.mrf.mxu1  ;;  %v2094_v60 = vadd.f32 %v11333_v17, %v1794_v34 }
 0x5a0   : > { %v9993_v59 = vadd.f32 %v4116_v55, %v3926_v58  ;;  %v5388_v29 = vadd.f32 %v9775_v32, %v5387_v31  ;;  %v2161_v31 = vmax.f32 %v2129_v47, 0.0 }
 0x5a1   : > { %v2130_v45 = vadd.f32 %v9796_v54, %v2094_v60  ;;  %v10048_v26 = vpop.permute.xlu2 %5527 }
 0x5a2   : > { %v5454_v18 = vmax.f32 %v5388_v29, 0.0  ;;  %6450 = vmatmul.msk.bf16.gmra.mxu0 %vm3018_vm13, %v9348_v9  ;;  %v2160_v9 = vmax.f32 %v2128_v1, 0.0  ;;  %v3575_v29 = vadd.f32 %v11334_v14, %v3255_v51  ;;  %v11338_v1 = vld [vmem:[#allocation119_spill] sm:$0xff]  ;;  %11343 = vst [vmem:[#allocation140_spill] sm:$0xff] %v10048_v26  ;;  %v10066_v14 = vpop.permute.xlu1 %5519 }
 0x5a3   : > { %v2162_v47 = vmax.f32 %v2130_v45, 0.0 }
 0x5a4   : > { %5563 = vrot.lane.b32.xlu2 %v2159_v5, %s6684_s17  ;;  %5783 = vrot.lane.b32.xlu0 %v5454_v18, %s6682_s14  ;;  %v1796_v18 = vadd.f32 %v11337_v4, %v11336_v21  ;;  %v3929_v16 = vadd.f32 %v11338_v1, %v3575_v29  ;;  %v11350_v29 = vld [vmem:[#allocation120_spill] sm:$0xff]  ;;  %v11352_v21 = vld [vmem:[#allocation195_spill] sm:$0xff] }
 0x5a5   : > { %v11353_v4 = vld [vmem:[#allocation108_spill] sm:$0xff] }
 0x5a6   : > { %v2095_v30 = vadd.f32 %v11344_v46, %v1796_v18  ;;  %v3260_v18 = vadd.f32 %v11353_v4, %v11352_v21  ;;  %v11354_v46 = vld [vmem:[#allocation124_spill] sm:$0xff] }
 0x5a7   : > { %v4118_v23 = vpop.f32.mrf.mxu0  ;;  %v5390_v40 = vpop.f32.mrf.mxu1 }
 0x5a8   : > { %v10008_v6 = vadd.f32 %v4118_v23, %v3927_v41  ;;  %v5391_v24 = vadd.f32 %v9775_v32, %v5390_v40  ;;  %v11339_v41 = vld [vmem:[#allocation6_spill] sm:$0xff]  ;;  %v11340_v23 = vld [vmem:[#allocation40_spill] sm:$0xff]  ;;  %v11341_v40 = vld [vmem:[#allocation47_spill] sm:$0xff]  ;;  %v2131_v60 = vadd.f32 %v9796_v54, %v2095_v30  ;;  %v3577_v30 = vadd.f32 %v11354_v46, %v3260_v18 }
 0x5aa   : > { %v5455_v28 = vmax.f32 %v5391_v24, 0.0  ;;  %6467 = vmatmul.msk.bf16.gmra.mxu1 %vm450_vm4, %v5302_v53  ;;  %v10027_v53 = vpop.permute.xlu0 %5511  ;;  %v11342_v24 = vmax.f32 %v11340_v23, %v11341_v40 }
 0x5ac   : > { %5785 = vrot.lane.b32.xlu1 %v5455_v28, %s6682_s14  ;;  %5565 = vrot.lane.b32.xlu0 %v2160_v9, %s6684_s17  ;;  %v4689_v9 = vmax.f32 %v11342_v24, %v11339_v41 }
 0x5af   : > { %v4121_v12 = vpop.f32.mrf.mxu0  ;;  %v5392_v8 = vpop.f32.mrf.mxu1 }
 0x5b0   : > { %v10029_v58 = vadd.f32 %v4121_v12, %v3928_v20  ;;  %v5393_v55 = vadd.f32 %v9775_v32, %v5392_v8  ;;  %v4913_v12 = vrot.slane %v4689_v9, 1  ;;  %v11345_v8 = vld [vmem:[#allocation5_spill] sm:$0xff] }
 0x5b1   : > { %v11346_v3 = vunpack.c.l.bf16 %v11345_v8 }
 0x5b2   : > { %v5456_v5 = vmax.f32 %v5393_v55, 0.0  ;;  %6451 = vmatmul.msk.bf16.gmra.mxu0 %vm3018_vm13, %v11335_v35  ;;  %v10054_v34 = vpop.permute.xlu0 %5517  ;;  %v11348_v55 = vunpack.c.h.bf16 %v11345_v8  ;;  %v10083_v8 = vld [vmem:[%s10733_s6] ss:$0 sm:$0xff] }
 0x5b3   : > { %v4687_v51 = vmax.f32 %v11347_v49, %v11346_v3  ;;  %v5122_v49 = vrot.slane %v4689_v9, 2 }
 0x5b4   : > { %5787 = vrot.lane.b32.xlu2 %v5456_v5, %s6682_s14  ;;  %5567 = vrot.lane.b32.xlu1 %v2161_v31, %s6684_s17  ;;  %v11349_v31 = vld [vmem:[#allocation51_spill] sm:$0xff]  ;;  %v11351_v5 = vld [vmem:[#allocation142_spill] sm:$0xff] }
 0x5b5   : > { %v4688_v17 = vmax.f32 %v11349_v31, %v11348_v55  ;;  %v4910_v35 = vrot.slane %v4687_v51, 1  ;;  %v5119_v24 = vrot.slane %v4687_v51, 2 }
 0x5b7   : > { %v4123_v50 = vpop.f32.mrf.mxu0  ;;  %v5395_v33 = vpop.f32.mrf.mxu1  ;;  %v4911_v45 = vrot.slane %v4688_v17, 1 }
 0x5b8   : > { %v10050_v39 = vadd.f32 %v4123_v50, %v3929_v16  ;;  %v5396_v28 = vadd.f32 %v9775_v32, %v5395_v33 }
 0x5b9   : > { %v4912_v41 = vsel %vm1830_vm5, %v4910_v35, %v4911_v45  ;;  %v4914_v54 = vsel %vm1830_vm5, %v4911_v45, %v4913_v12  ;;  %v10096_v45 = vpop.permute.xlu1 %5525 }
 0x5ba   : > { %v5457_v20 = vmax.f32 %v5396_v28, 0.0  ;;  %6468 = vmatmul.msk.bf16.gmra.mxu1 %vm450_vm4, %v5303_v57  ;;  %v3930_v57 = vadd.f32 %v11351_v5, %v11350_v29  ;;  %v4977_v23 = vmax.f32 %v4687_v51, %v4912_v41  ;;  %v4978_v40 = vmax.f32 %v4688_v17, %v4914_v54  ;;  %v10088_v55 = vpop.permute.xlu0 %5523  ;;  %v11356_v29 = vld [vmem:[#allocation145_spill] sm:$0xff]  ;;  %11357 = vst [vmem:[#allocation171_spill] sm:$0xff] %v10096_v45 }
 0x5bb   : > { %v5120_v28 = vrot.slane %v4688_v17, 2  ;;  %v3931_v5 = vadd.f32 %v11356_v29, %v3577_v30  ;;  %v11362_v30 = vld [vmem:[#allocation199_spill] sm:$0xff] }
 0x5bc   : > { %5569 = vrot.lane.b32.xlu2 %v2162_v47, %s6684_s17  ;;  %5789 = vrot.lane.b32.xlu0 %v5457_v20, %s6682_s14  ;;  %v2163_v47 = vmax.f32 %v2131_v60, 0.0  ;;  %v10078_v20 = vpop.permute.xlu2 %5533  ;;  %v4212_v60 = vadd.f32 %v10083_v8, %v9814_v2  ;;  %v11366_v29 = vld [vmem:[#allocation91_spill] sm:$0xff] }
 0x5bd   : > { %11355 = vst [vmem:[#allocation86_spill] sm:$0xff] %v10078_v20  ;;  %v5121_v12 = vsel %vm3950_vm14, %v5119_v24, %v5120_v28  ;;  %v5123_v51 = vsel %vm3950_vm14, %v5120_v28, %v5122_v49  ;;  %v11361_v24 = vld [vmem:[#allocation143_spill] sm:$0xff] }
 0x5be   : > { %v5186_v31 = vmax.f32 %v4977_v23, %v5121_v12  ;;  %v5187_v17 = vmax.f32 %v4978_v40, %v5123_v51  ;;  %v4213_v23 = vadd.f32 %v10083_v8, %v9832_v43  ;;  %v11360_v40 = vld [vmem:[#allocation148_spill] sm:$0xff] }
 0x5bf   : > { %v4126_v1 = vpop.f32.mrf.mxu0  ;;  %v5397_v16 = vpop.f32.mrf.mxu1  ;;  %v3932_v28 = vadd.f32 %v11361_v24, %v11360_v40  ;;  %v11372_v40 = vld [vmem:[#allocation197_spill] sm:$0xff] }
 0x5c0   : > { %v10072_v50 = vadd.f32 %v4126_v1, %v3930_v57  ;;  %v5398_v33 = vadd.f32 %v9775_v32, %v5397_v16  ;;  %v5218_v57 = vpack.c.bf16 %v5186_v31, %v5186_v31  ;;  %v5219_v35 = vpack.c.bf16 %v5187_v17, %v5187_v17  ;;  %v11364_v31 = vld [vmem:[#allocation153_spill] sm:$0xff]  ;;  %v11365_v17 = vld [vmem:[#allocation155_spill] sm:$0xff] }
 0x5c1   : > { %v4244_v16 = vmax.f32 %v4212_v60, 0.0  ;;  %v3235_v60 = vadd.f32 %v11365_v17, %v11364_v31  ;;  %v4245_v43 = vmax.f32 %v4213_v23, 0.0  ;;  %v11375_v31 = vld [vmem:[#allocation131_spill] sm:$0xff] }
 0x5c2   : > { %v5458_v3 = vmax.f32 %v5398_v33, 0.0  ;;  %6452 = vmatmul.msk.bf16.gmra.mxu0 %vm3018_vm13, %v9548_v19  ;;  %v5287_v18 = vunpack.c.l.b16 %v5218_v57  ;;  %v5288_v1 = vunpack.c.l.b16 %v5219_v35  ;;  %v10106_v2 = vpop.permute.xlu0 %5529  ;;  %v10120_v57 = vpop.permute.xlu1 %5531 }
 0x5c3   : > { %11359 = vst [vmem:[#allocation169_spill] sm:$0xff] %v10106_v2 }
 0x5c4   : > { %5791 = vrot.lane.b32.xlu1 %v5458_v3, %s6682_s14  ;;  %5571 = vrot.lane.b32.xlu0 %v2163_v47, %s6684_s17  ;;  %v5304_v41 = vpack.c.b16 %v5288_v1, %v5287_v18  ;;  %v10101_v54 = vpop.permute.xlu2 %5539  ;;  %v11363_v3 = vld [vmem:[#allocation198_spill] sm:$0xff]  ;;  %11367 = vst [vmem:[#allocation102_spill] sm:$0xff] %v10120_v57  ;;  %v4214_v18 = vadd.f32 %v10083_v8, %v9862_v7  ;;  %v11370_v1 = vld [vmem:[#allocation125_spill] sm:$0xff]  ;;  %s323_s17 = sand.u32 1, %s6671_s10  }
 0x5c5   : > { %11358 = vst [vmem:[#allocation146_spill] sm:$0xff] %v10101_v54  ;;  %v3265_v49 = vadd.f32 %v11363_v3, %v11362_v30  ;;  %s6071_s28 = sshll.u32 %s323_s17, 8  ;;  %s5990_s25 = scalar_lea.sflag [#allocation3], %s323_s17 }
 0x5c6   : > { %s10329_s26 = scalar_lea.vmem [#allocation2], %s6071_s28 }
 0x5c7   : > { %v4128_v19 = vpop.f32.mrf.mxu0  ;;  %v5400_v9 = vpop.f32.mrf.mxu1  ;;  %s6002_s24 = sshll.u32 %s10329_s26, 4  ;;  %s6003_s24 = int_to_ptr.vmem [resolvable:$true] %s6002_s24 }
 0x5c8   : > { %v10098_v21 = vadd.f32 %v4128_v19, %v3931_v5  ;;  %v5401_v4 = vadd.f32 %v9775_v32, %v5400_v9  ;;  %v3579_v5 = vadd.f32 %v11366_v29, %v3265_v49  ;;  %v11368_v9 = vld [vmem:[#allocation103_spill] sm:$0xff] }
 0x5c9   : > { %v3567_v35 = vadd.f32 %v11368_v9, %v3235_v60 }
 0x5ca   : > { %v5459_v33 = vmax.f32 %v5401_v4, 0.0  ;;  %6469 = vmatmul.msk.bf16.gmra.mxu1 %vm450_vm4, %v5304_v41  ;;  %v10132_v23 = vpop.permute.xlu0 %5535  ;;  %v10139_v3 = vpop.permute.xlu1 %5537 }
 0x5cb   : > { %11371 = vst [vmem:[#allocation147_spill] sm:$0xff] %v10132_v23  ;;  %v3921_v24 = vadd.f32 %v11372_v40, %v3567_v35  ;;  %v11378_v35 = vld [vmem:[#allocation157_spill] sm:$0xff] }
 0x5cc   : > { %5793 = vrot.lane.b32.xlu2 %v5459_v33, %s6682_s14  ;;  %5637 = vrot.lane.b32.xlu1 %v4244_v16, %s6683_s16  ;;  %v10127_v4 = vpop.permute.xlu2 %5545  ;;  %v3933_v16 = vadd.f32 %v11370_v1, %v3579_v5  ;;  %11373 = vst [vmem:[#allocation152_spill] sm:$0xff] %v10139_v3  ;;  %v11376_v5 = vld [vmem:[#allocation139_spill] sm:$0xff] }
 0x5cd   : > { %11369 = vst [vmem:[#allocation173_spill] sm:$0xff] %v10127_v4 }
 0x5cf   : > { %v4131_v47 = vpop.f32.mrf.mxu0  ;;  %v5402_v46 = vpop.f32.mrf.mxu1 }
 0x5d0   : > { %v10114_v12 = vadd.f32 %v4131_v47, %v3932_v28  ;;  %v5403_v51 = vadd.f32 %v9775_v32, %v5402_v46  ;;  %v4246_v47 = vmax.f32 %v4214_v18, 0.0  ;;  %v4179_v46 = vadd.f32 %v9878_v13, %v3921_v24  ;;  %v11379_v18 = vld [vmem:[#allocation160_spill] sm:$0xff] }
 0x5d1   : > { %v3240_v1 = vadd.f32 %v11379_v18, %v11378_v35 }
 0x5d2   : > { %v5460_v19 = vmax.f32 %v5403_v51, 0.0  ;;  %6453 = vmatmul.msk.bf16.gmra.mxu0 %vm3018_vm13, %v9581_v0  ;;  %v4215_v7 = vadd.f32 %v10083_v8, %v4179_v46  ;;  %v11374_v51 = vld [vmem:[#allocation162_spill] sm:$0xff]  ;;  %v10161_v46 = vpop.permute.xlu1 %5543 }
 0x5d3   : > { %v3934_v17 = vadd.f32 %v11375_v31, %v11374_v51  ;;  %11383 = vst [vmem:[#allocation176_spill] sm:$0xff] %v10161_v46  ;;  %v11384_v51 = vld [vmem:[#allocation133_spill] sm:$0xff] }
 0x5d4   : > { %5795 = vrot.lane.b32.xlu0 %v5460_v19, %s6682_s14  ;;  %5639 = vrot.lane.b32.xlu2 %v4245_v43, %s6683_s16  ;;  %v10144_v49 = vpop.permute.xlu2 %5769  ;;  %v11377_v43 = vld [vmem:[#allocation110_spill] sm:$0xff]  ;;  %v4247_v40 = vmax.f32 %v4215_v7, 0.0 }
 0x5d5   : > { %v3270_v19 = vadd.f32 %v11377_v43, %v11376_v5  ;;  %v11385_v5 = vld [vmem:[#allocation200_spill] sm:$0xff] }
 0x5d7   : > { %v4133_v33 = vpop.f32.mrf.mxu0  ;;  %v5405_v41 = vpop.f32.mrf.mxu1 }
 0x5d8   : > { %v10135_v0 = vadd.f32 %v4133_v33, %v3933_v16  ;;  %v5406_v28 = vadd.f32 %v9775_v32, %v5405_v41  ;;  %v11380_v16 = vld [vmem:[#allocation154_spill] sm:$0xff]  ;;  %v10156_v41 = vpop.permute.xlu0 %5541 }
 0x5d9   : > { %v3581_v33 = vadd.f32 %v11380_v16, %v3270_v19  ;;  %11381 = vst [vmem:[#allocation106_spill] sm:$0xff] %v10156_v41  ;;  %v10177_v16 = vpop.f32.mrf.mxu3 }
 0x5da   : > { %v5461_v30 = vmax.f32 %v5406_v28, 0.0  ;;  %v11382_v28 = vld [vmem:[#allocation104_spill] sm:$0xff] }
 0x5db   : > { %v3935_v31 = vadd.f32 %v11384_v51, %v3581_v33 }
 0x5dc   : > { %5797 = vrot.lane.b32.xlu1 %v5461_v30, %s6682_s14  ;;  %5641 = vrot.lane.b32.xlu0 %v4246_v47, %s6683_s16  ;;  %v3569_v47 = vadd.f32 %v11382_v28, %v3240_v1  ;;  %v4216_v30 = vadd.f32 %v10083_v8, %v9908_v37  ;;  %v10169_v43 = vpop.permute.xlu2 %5551 }
 0x5dd   : > { %11386 = vst [vmem:[#allocation156_spill] sm:$0xff] %v10169_v43 }
 0x5de   : > { %v3923_v7 = vadd.f32 %v11385_v5, %v3569_v47  ;;  %v4248_v35 = vmax.f32 %v4216_v30, 0.0 }
 0x5df   : > { %v4136_v60 = vpop.f32.mrf.mxu0  ;;  %v5407_v29 = vpop.f32.mrf.mxu1 }
 0x5e0   : > { %v10150_v13 = vadd.f32 %v4136_v60, %v3934_v17  ;;  %v5408_v9 = vadd.f32 %v9775_v32, %v5407_v29  ;;  %v10166_v29 = vpop.f32.mrf.mxu2  ;;  %v4181_v18 = vadd.f32 %v9924_v56, %v3923_v7  ;;  %v10175_v1 = vpop.permute.xlu0 %5765 }
 0x5e2   : > { %v5462_v24 = vmax.f32 %v5408_v9, 0.0  ;;  %v4217_v33 = vadd.f32 %v10083_v8, %v4181_v18 }
 0x5e4   : > { %5799 = vrot.lane.b32.xlu2 %v5462_v24, %s6682_s14  ;;  %5643 = vrot.lane.b32.xlu1 %v4247_v40, %s6683_s16  ;;  %v10182_v40 = vpop.permute.xlu1 %5767  ;;  %v3936_v24 = vadd.f32 %v9544_v38, %v9553_v15  ;;  %v10186_v30 = vpop.permute.xlu2 %5775  ;;  %v4249_v7 = vmax.f32 %v4217_v33, 0.0  ;;  %v4218_v15 = vadd.f32 %v10083_v8, %v9946_v52 }
 0x5e5   : > { %v10200_v38 = vpop.f32.mrf.mxu3 }
 0x5e7   : > { %v4138_v17 = vpop.f32.mrf.mxu0  ;;  %v5410_v60 = vpop.f32.mrf.mxu1 }
 0x5e8   : > { %v10171_v19 = vadd.f32 %v4138_v17, %v3935_v31  ;;  %v5411_v9 = vadd.f32 %v9775_v32, %v5410_v60  ;;  %v11387_v31 = vld [vmem:[#allocation166_spill] sm:$0xff]  ;;  %v11388_v17 = vld [vmem:[#allocation167_spill] sm:$0xff]  ;;  %v10193_v5 = vpop.f32.mrf.mxu2 }
 0x5e9   : > { %v3245_v60 = vadd.f32 %v11388_v17, %v11387_v31 }
 0x5ea   : > { %v5463_v37 = vmax.f32 %v5411_v9, 0.0 }
 0x5ec   : > { %5801 = vrot.lane.b32.xlu0 %v5463_v37, %s6682_s14  ;;  %5645 = vrot.lane.b32.xlu2 %v4248_v35, %s6683_s16  ;;  %v11389_v35 = vld [vmem:[#allocation117_spill] sm:$0xff]  ;;  %v10196_v37 = vpop.permute.xlu0 %5547  ;;  %v10205_v17 = vpop.permute.xlu1 %5549 }
 0x5ed   : > { %v3571_v18 = vadd.f32 %v11389_v35, %v3245_v60  ;;  %11390 = vst [vmem:[#allocation13_spill] sm:$0xff] %v10196_v37  ;;  %v4250_v60 = vmax.f32 %v4218_v15, 0.0 }
 0x5ee   : > { %11392 = vst [vmem:[#allocation14_spill] sm:$0xff] %v10205_v17 }
 0x5ef   : > { %v4141_v28 = vpop.f32.mrf.mxu0  ;;  %v5412_v47 = vpop.f32.mrf.mxu1 }
 0x5f0   : > { %v10188_v56 = vadd.f32 %v4141_v28, %v3936_v24  ;;  %v5413_v51 = vadd.f32 %v9775_v32, %v5412_v47  ;;  %v11391_v47 = vld [vmem:[#allocation68_spill] sm:$0xff]  ;;  %v10214_v43 = vpop.f32.mrf.mxu2 }
 0x5f1   : > { %v3925_v31 = vadd.f32 %v11391_v47, %v3571_v18  ;;  %v10220_v18 = vpop.f32.mrf.mxu3 }
 0x5f2   : > { %v5464_v9 = vmax.f32 %v5413_v51, 0.0 }
 0x5f4   : > { %5803 = vrot.lane.b32.xlu1 %v5464_v9, %s6682_s14  ;;  %5647 = vrot.lane.b32.xlu0 %v4249_v7, %s6683_s16  ;;  %v4183_v9 = vadd.f32 %v9968_v48, %v3925_v31  ;;  %v10212_v7 = vpop.permute.xlu2 %5557  ;;  %v10216_v52 = vpop.permute.xlu0 %5771 }
 0x5f5   : > { %11393 = vst [vmem:[#allocation10_spill] sm:$0xff] %v10212_v7 }
 0x5f7   : > { %v4143_v24 = vpop.f32.mrf.mxu0  ;;  %v5415_v28 = vpop.f32.mrf.mxu1 }
 0x5f8   : > { %v10208_v33 = vadd.f32 %v4143_v24, %v9587_v11  ;;  %v5416_v51 = vadd.f32 %v9775_v32, %v5415_v28  ;;  %v4219_v11 = vadd.f32 %v10083_v8, %v4183_v9  ;;  %v10225_v28 = vpop.permute.xlu1 %5773  ;;  %v4220_v9 = vadd.f32 %v10083_v8, %v9993_v59 }
 0x5f9   : > { %v4221_v59 = vadd.f32 %v10083_v8, %v10008_v6  ;;  %v4222_v6 = vadd.f32 %v10083_v8, %v10029_v58  ;;  %v4223_v58 = vadd.f32 %v10083_v8, %v10050_v39  ;;  %v4224_v39 = vadd.f32 %v10083_v8, %v10072_v50 }
 0x5fa   : > { %v5465_v35 = vmax.f32 %v5416_v51, 0.0  ;;  %v4251_v47 = vmax.f32 %v4219_v11, 0.0  ;;  %v10241_v11 = vpop.f32.mrf.mxu3  ;;  %v4252_v4 = vmax.f32 %v4220_v9, 0.0 }
 0x5fc   : > { %5805 = vrot.lane.b32.xlu2 %v5465_v35, %s6682_s14  ;;  %5649 = vrot.lane.b32.xlu1 %v4250_v60, %s6683_s16  ;;  %v10228_v31 = vpop.permute.xlu2 %5781  ;;  %v10232_v60 = vpop.f32.mrf.mxu2 }
 0x5fd   : > { %11394 = vst [vmem:[#allocation18_spill] sm:$0xff] %v10228_v31  ;;  %v10236_v35 = vpop.permute.xlu0 %5553 }
 0x5fe   : > { %11395 = vst [vmem:[#allocation21_spill] sm:$0xff] %v10236_v35 }
 0x5ff   : > { %v10223_v24 = vpop.f32.mrf.mxu0  ;;  %v5417_v15 = vpop.f32.mrf.mxu1 }
 0x600   : > { %v5418_v48 = vadd.f32 %v9775_v32, %v5417_v15 }
 0x602   : > { %v5466_v51 = vmax.f32 %v5418_v48, 0.0  ;;  %v10243_v48 = vpop.permute.xlu1 %5555  ;;  %v10256_v9 = vpop.f32.mrf.mxu3 }
 0x603   : > { %11396 = vst [vmem:[#allocation19_spill] sm:$0xff] %v10243_v48 }
 0x604   : > { %5807 = vrot.lane.b32.xlu0 %v5466_v51, %s6682_s14  ;;  %5651 = vrot.lane.b32.xlu2 %v4251_v47, %s6683_s16  ;;  %v10245_v46 = vpop.permute.xlu2 %5563  ;;  %v10258_v48 = vpop.f32.mrf.mxu2 }
 0x605   : > { %11397 = vst [vmem:[#allocation11_spill] sm:$0xff] %v10245_v46  ;;  %v10251_v47 = vpop.permute.xlu0 %5777 }
 0x607   : > { %v10238_v7 = vpop.f32.mrf.mxu0  ;;  %v5420_v17 = vpop.f32.mrf.mxu1 }
 0x608   : > { %v5421_v15 = vadd.f32 %v9775_v32, %v5420_v17 }
 0x60a   : > { %v5467_v51 = vmax.f32 %v5421_v15, 0.0  ;;  %v4253_v15 = vmax.f32 %v4221_v59, 0.0  ;;  %v10260_v46 = vpop.permute.xlu1 %5779  ;;  %v4254_v59 = vmax.f32 %v4222_v6, 0.0  ;;  %v10273_v57 = vpop.f32.mrf.mxu3 }
 0x60c   : > { %5809 = vrot.lane.b32.xlu1 %v5467_v51, %s6682_s14  ;;  %5653 = vrot.lane.b32.xlu0 %v4252_v4, %s6683_s16 }
 0x60d   : > { %v10271_v20 = vpop.permute.xlu0 %5559 }
 0x60e   : > { %v10262_v35 = vpop.permute.xlu2 %5787  ;;  %11399 = vst [vmem:[#allocation12_spill] sm:$0xff] %v10271_v20  ;;  %v4255_v20 = vmax.f32 %v4223_v58, 0.0 }
 0x60f   : > { %v10253_v54 = vpop.f32.mrf.mxu0  ;;  %v5422_v17 = vpop.f32.mrf.mxu1  ;;  %11398 = vst [vmem:[#allocation20_spill] sm:$0xff] %v10262_v35 }
 0x610   : > { %v5423_v3 = vadd.f32 %v9775_v32, %v5422_v17 }
 0x612   : > { %v5468_v51 = vmax.f32 %v5423_v3, 0.0  ;;  %v10275_v3 = vpop.f32.mrf.mxu2  ;;  %v10277_v35 = vpop.permute.xlu1 %5561 }
 0x613   : > { %11400 = vst [vmem:[#allocation25_spill] sm:$0xff] %v10277_v35 }
 0x614   : > { %5811 = vrot.lane.b32.xlu2 %v5468_v51, %s6682_s14  ;;  %5655 = vrot.lane.b32.xlu1 %v4253_v15, %s6683_s16 }
 0x616   : > { %v10283_v15 = vpop.permute.xlu2 %5569 }
 0x617   : > { %v10268_v4 = vpop.f32.mrf.mxu0  ;;  %v5425_v17 = vpop.f32.mrf.mxu1  ;;  %11401 = vst [vmem:[#allocation8_spill] sm:$0xff] %v10283_v15 }
 0x618   : > { %v5426_v37 = vadd.f32 %v9775_v32, %v5425_v17  ;;  %v10288_v17 = vpop.permute.xlu0 %5783 }
 0x619   : > { %11402 = vst [vmem:[#allocation26_spill] sm:$0xff] %v10288_v17  ;;  %v4256_v17 = vmax.f32 %v4224_v39, 0.0  ;;  %v4225_v39 = vadd.f32 %v10083_v8, %v10098_v21 }
 0x61a   : > { %v5469_v41 = vmax.f32 %v5426_v37, 0.0  ;;  %v10290_v23 = vpop.f32.mrf.mxu2 }
 0x61c   : > { %5813 = vrot.lane.b32.xlu0 %v5469_v41, %s6682_s14  ;;  %5657 = vrot.lane.b32.xlu2 %v4254_v59, %s6683_s16  ;;  %v10292_v41 = vpop.f32.mrf.mxu3 }
 0x61e   : > { %v10294_v59 = vpop.permute.xlu1 %5785 }
 0x61f   : > { %v10285_v51 = vpop.f32.mrf.mxu0  ;;  %v5427_v6 = vpop.f32.mrf.mxu1  ;;  %11403 = vst [vmem:[#allocation9_spill] sm:$0xff] %v10294_v59 }
 0x620   : > { %v5428_v37 = vadd.f32 %v9775_v32, %v5427_v6  ;;  %v10306_v31 = vpop.permute.xlu0 %5565 }
 0x621   : > { %11405 = vst [vmem:[#allocation114_spill] sm:$0xff] %v10306_v31 }
 0x622   : > { %v5470_v35 = vmax.f32 %v5428_v37, 0.0 }
 0x624   : > { %5815 = vrot.lane.b32.xlu1 %v5470_v35, %s6682_s14  ;;  %5659 = vrot.lane.b32.xlu0 %v4255_v20, %s6683_s16  ;;  %v10312_v20 = vpop.f32.mrf.mxu2  ;;  %v10314_v50 = vpop.f32.mrf.mxu3  ;;  %v11406_v35 = vld [vmem:[#allocation62_spill] sm:$0xff] }
 0x626   : > { %v10300_v15 = vpop.permute.xlu2 %5793 }
 0x627   : > { %11404 = vst [vmem:[#allocation27_spill] sm:$0xff] %v10300_v15  ;;  %v10302_v6 = vpop.f32.mrf.mxu0  ;;  %v5430_v58 = vpop.f32.mrf.mxu1  ;;  %v5862_v15 = vsel %vm1120_vm6, %v11406_v35, %v10027_v53  ;;  %v4257_v53 = vmax.f32 %v4225_v39, 0.0 }
 0x628   : > { %v5431_v37 = vadd.f32 %v9775_v32, %v5430_v58  ;;  %v10321_v58 = vpop.permute.xlu1 %5567 }
 0x629   : > { %11407 = vst [vmem:[#allocation33_spill] sm:$0xff] %v10321_v58 }
 0x62a   : > { %v5471_v26 = vmax.f32 %v5431_v37, 0.0 }
 0x62c   : > { %5817 = vrot.lane.b32.xlu2 %v5471_v26, %s6682_s14  ;;  %5661 = vrot.lane.b32.xlu1 %v4256_v17, %s6683_s16 }
 0x62e   : > { %v5640_v37 = vpop.permute.xlu2 %5639  ;;  %v10332_v21 = vpop.permute.xlu0 %5789 }
 0x62f   : > { %v5894_v31 = vsel %vm1217_vm7, %v5862_v15, %v5640_v37  ;;  %v10324_v45 = vpop.f32.mrf.mxu0  ;;  %v5432_v26 = vpop.f32.mrf.mxu1  ;;  %11408 = vst [vmem:[#allocation31_spill] sm:$0xff] %v10332_v21  ;;  %v11410_v21 = vld [vmem:[#allocation127_spill] sm:$0xff] }
 0x630   : > { %v5926_v17 = vsel %vm1503_vm8, %v5894_v31, %v10182_v40  ;;  %v5433_v59 = vadd.f32 %v9775_v32, %v5432_v26  ;;  %v10336_v15 = vpop.f32.mrf.mxu2  ;;  %v10338_v37 = vpop.f32.mrf.mxu3  ;;  %v4226_v40 = vadd.f32 %v10083_v8, %v10114_v12  ;;  %v4228_v31 = vadd.f32 %v10083_v8, %v10150_v13  ;;  %v10351_v26 = vld [vmem:[%s10735_s8] ss:$0 sm:$0xff] }
 0x631   : > { %5958 = vst [vmem:[%s10329_s26 + $0x8] sm:$0xff] %v5926_v17  ;;  %v3584_v12 = vadd.f32 %v10166_v29, %v11410_v21  ;;  %v3586_v13 = vadd.f32 %v10214_v43, %v9560_v25  ;;  %v4229_v29 = vadd.f32 %v10083_v8, %v10171_v19  ;;  %v4231_v25 = vadd.f32 %v10083_v8, %v10208_v33 }
 0x632   : > { %v5472_v35 = vmax.f32 %v5433_v59, 0.0  ;;  %v4260_v58 = vmax.f32 %v4228_v31, 0.0  ;;  %v4227_v31 = vadd.f32 %v10083_v8, %v10135_v0  ;;  %v3285_v33 = vadd.f32 %v9597_v42, %v9599_v22  ;;  %v11416_v22 = vld [vmem:[#allocation70_spill] sm:$0xff] }
 0x634   : > { %5819 = vrot.lane.b32.xlu0 %v5472_v35, %s6682_s14  ;;  %5663 = vrot.lane.b32.xlu2 %v4257_v53, %s6683_s16  ;;  %v4258_v53 = vmax.f32 %v4226_v40, 0.0 }
 0x636   : > { %v10342_v32 = vpop.permute.xlu1 %5791 }
 0x637   : > { %11409 = vst [vmem:[#allocation32_spill] sm:$0xff] %v10342_v32  ;;  %v10346_v39 = vpop.f32.mrf.mxu0  ;;  %v5435_v59 = vpop.f32.mrf.mxu1 }
 0x638   : > { %v5436_v17 = vadd.f32 %v10351_v26, %v5435_v59  ;;  %v10360_v32 = vpop.permute.xlu0 %5571  ;;  %v11412_v59 = vld [vmem:[#allocation61_spill] sm:$0xff] }
 0x639   : > { %11411 = vst [vmem:[#allocation113_spill] sm:$0xff] %v10360_v32  ;;  %v5861_v40 = vsel %vm1120_vm6, %v11412_v59, %v9972_v62  ;;  %v3938_v62 = vadd.f32 %v10177_v16, %v3584_v12  ;;  %v11415_v59 = vld [vmem:[#allocation137_spill] sm:$0xff]  ;;  %v10384_v32 = vpop.f32.mrf.mxu3  ;;  %v3290_v16 = vadd.f32 %v9682_v27, %v9694_v63  ;;  %v4263_v12 = vmax.f32 %v4231_v25, 0.0 }
 0x63a   : > { %v5473_v35 = vmax.f32 %v5436_v17, 0.0  ;;  %v5865_v27 = vsel %vm1120_vm6, %v11416_v22, %v10054_v34  ;;  %v4230_v63 = vadd.f32 %v10083_v8, %v10188_v56 }
 0x63b   : > { %v4196_v2 = vadd.f32 %v10223_v24, %v3938_v62  ;;  %v3589_v42 = vadd.f32 %v10275_v3, %v3290_v16 }
 0x63c   : > { %5821 = vrot.lane.b32.xlu1 %v5473_v35, %s6682_s14  ;;  %5665 = vrot.lane.b32.xlu0 %v4258_v53, %s6683_s16  ;;  %v11414_v35 = vld [vmem:[#allocation159_spill] sm:$0xff] }
 0x63d   : > { %5669 = vrot.lane.b32.xlu2 %v4260_v58, %s6683_s16  ;;  %v10377_v58 = vpop.f32.mrf.mxu2  ;;  %v3280_v19 = vadd.f32 %v11415_v59, %v11414_v35  ;;  %v3587_v35 = vadd.f32 %v10232_v60, %v3285_v33  ;;  %v3943_v56 = vadd.f32 %v10273_v57, %v3589_v42  ;;  %v11417_v57 = vld [vmem:[#allocation65_spill] sm:$0xff] }
 0x63e   : > { %v5638_v21 = vpop.permute.xlu1 %5637  ;;  %v10370_v17 = vpop.permute.xlu2 %5799 }
 0x63f   : > { %11413 = vst [vmem:[#allocation100_spill] sm:$0xff] %v10370_v17  ;;  %v5893_v43 = vsel %vm1217_vm7, %v5861_v40, %v5638_v21  ;;  %v10375_v53 = vpop.f32.mrf.mxu0  ;;  %v3940_v17 = vadd.f32 %v10220_v18, %v3586_v13  ;;  %v4259_v40 = vmax.f32 %v4227_v31, 0.0  ;;  %v4261_v21 = vmax.f32 %v4229_v29, 0.0 }
 0x640   : > { %v5925_v0 = vsel %vm1503_vm8, %v5893_v43, %v10175_v1  ;;  %v3585_v43 = vadd.f32 %v10193_v5, %v3280_v19  ;;  %v3941_v31 = vadd.f32 %v10241_v11, %v3587_v35  ;;  %v4262_v29 = vmax.f32 %v4230_v63, 0.0 }
 0x641   : > { %5957 = vst [vmem:[%s10329_s26] sm:$0xff] %v5925_v0  ;;  %v4198_v1 = vadd.f32 %v10253_v54, %v3940_v17  ;;  %v4232_v54 = vadd.f32 %v10083_v8, %v4196_v2  ;;  %v10422_v0 = vpop.f32.mrf.mxu3  ;;  %v3588_v11 = vadd.f32 %v10258_v48, %v9617_v61  ;;  %v11419_v48 = vld [vmem:[#allocation81_spill] sm:$0xff] }
 0x642   : > { %v3939_v3 = vadd.f32 %v10200_v38, %v3585_v43  ;;  %v4199_v62 = vadd.f32 %v10268_v4, %v3941_v31  ;;  %v4201_v38 = vadd.f32 %v10302_v6, %v3943_v56  ;;  %v11423_v31 = vld [vmem:[#allocation165_spill] sm:$0xff] }
 0x643   : > { %v4234_v24 = vadd.f32 %v10083_v8, %v4198_v1  ;;  %v4264_v17 = vmax.f32 %v4232_v54, 0.0  ;;  %v3942_v1 = vadd.f32 %v10256_v9, %v3588_v11  ;;  %v11420_v9 = vld [vmem:[#allocation66_spill] sm:$0xff] }
 0x644   : > { %5667 = vrot.lane.b32.xlu1 %v4259_v40, %s6683_s16  ;;  %5671 = vrot.lane.b32.xlu0 %v4261_v21, %s6683_s16  ;;  %v4197_v25 = vadd.f32 %v10238_v7, %v3939_v3  ;;  %v5863_v7 = vsel %vm1120_vm6, %v11417_v57, %v10036_v10  ;;  %v4235_v6 = vadd.f32 %v10083_v8, %v4199_v62  ;;  %v5437_v62 = vpop.f32.mrf.mxu1 }
 0x645   : > { %5675 = vrot.lane.b32.xlu2 %v4263_v12, %s6683_s16  ;;  %v10418_v2 = vpop.f32.mrf.mxu2  ;;  %v4266_v59 = vmax.f32 %v4234_v24, 0.0  ;;  %v3592_v40 = vadd.f32 %v10336_v15, %v11419_v48  ;;  %v4237_v21 = vadd.f32 %v10083_v8, %v4201_v38  ;;  %v4200_v22 = vadd.f32 %v10285_v51, %v3942_v1 }
 0x646   : > { %v10406_v5 = vpop.permute.xlu0 %5795  ;;  %v5646_v18 = vpop.permute.xlu2 %5645  ;;  %v4233_v19 = vadd.f32 %v10083_v8, %v4197_v25  ;;  %v4267_v42 = vmax.f32 %v4235_v6, 0.0 }
 0x647   : > { %v5897_v60 = vsel %vm1217_vm7, %v5865_v27, %v5646_v18  ;;  %v10410_v13 = vpop.f32.mrf.mxu0  ;;  %v3946_v43 = vadd.f32 %v10338_v37, %v3592_v40  ;;  %v4269_v27 = vmax.f32 %v4237_v21, 0.0  ;;  %v11421_v37 = vld [vmem:[#allocation138_spill] sm:$0xff] }
 0x648   : > { %v5929_v34 = vsel %vm1503_vm8, %v5897_v60, %v10225_v28  ;;  %v11418_v28 = vld [vmem:[#allocation134_spill] sm:$0xff]  ;;  %v4265_v35 = vmax.f32 %v4233_v19, 0.0  ;;  %v3591_v51 = vadd.f32 %v10312_v20, %v11421_v37 }
 0x649   : > { %5961 = vst [vmem:[%s10329_s26 + $0x20] sm:$0xff] %v5929_v34  ;;  %v3590_v4 = vadd.f32 %v10290_v23, %v11418_v28  ;;  %v4204_v63 = vadd.f32 %v10375_v53, %v3946_v43  ;;  %v4236_v53 = vadd.f32 %v10083_v8, %v4200_v22 }
 0x64b   : > { %v3944_v10 = vadd.f32 %v10292_v41, %v3590_v4  ;;  %v3915_v41 = vpop.f32.mrf.mxu3 }
 0x64c   : > { %5673 = vrot.lane.b32.xlu1 %v4262_v29, %s6683_s16  ;;  %5677 = vrot.lane.b32.xlu0 %v4264_v17, %s6683_s16  ;;  %v3945_v29 = vadd.f32 %v10314_v50, %v3591_v51 }
 0x64d   : > { %5681 = vrot.lane.b32.xlu2 %v4266_v59, %s6683_s16  ;;  %v4202_v15 = vadd.f32 %v10324_v45, %v3944_v10  ;;  %v3561_v54 = vpop.f32.mrf.mxu2  ;;  %v11422_v45 = vld [vmem:[#allocation161_spill] sm:$0xff]  ;;  %v4268_v59 = vmax.f32 %v4236_v53, 0.0 }
 0x64e   : > { %v10437_v33 = vpop.permute.xlu1 %5797  ;;  %v5642_v61 = vpop.permute.xlu0 %5641  ;;  %v3593_v18 = vadd.f32 %v10377_v58, %v11422_v45  ;;  %v3595_v34 = vadd.f32 %v3561_v54, %v11423_v31  ;;  %v4203_v11 = vadd.f32 %v10346_v39, %v3945_v29  ;;  %v11429_v53 = vld [vmem:[#allocation85_spill] sm:$0xff] }
 0x64f   : > { %v5895_v16 = vsel %vm1217_vm7, %v5863_v7, %v5642_v61  ;;  %v4171_v12 = vpop.f32.mrf.mxu0  ;;  %v4238_v24 = vadd.f32 %v10083_v8, %v4202_v15  ;;  %v11430_v31 = vld [vmem:[#allocation9_spill] sm:$0xff] }
 0x650   : > { %v5927_v23 = vsel %vm1503_vm8, %v5895_v16, %v10144_v49  ;;  %v5864_v49 = vsel %vm1120_vm6, %v11420_v9, %v10000_v36  ;;  %v4240_v36 = vadd.f32 %v10083_v8, %v4204_v63  ;;  %v3947_v20 = vadd.f32 %v10384_v32, %v3593_v18  ;;  %v11425_v32 = vld [vmem:[#allocation144_spill] sm:$0xff]  ;;  %v11428_v18 = vld [vmem:[#allocation169_spill] sm:$0xff] }
 0x651   : > { %5959 = vst [vmem:[%s10329_s26 + $0x10] sm:$0xff] %v5927_v23  ;;  %v3949_v25 = vadd.f32 %v3915_v41, %v3595_v34  ;;  %v4270_v38 = vmax.f32 %v4238_v24, 0.0  ;;  %v3594_v4 = vadd.f32 %v10418_v2, %v11425_v32  ;;  %v4239_v39 = vadd.f32 %v10083_v8, %v4203_v11  ;;  %v11438_v32 = vld [vmem:[#allocation92_spill] sm:$0xff] }
 0x652   : > { %v4205_v57 = vadd.f32 %v10410_v13, %v3947_v20  ;;  %v4272_v7 = vmax.f32 %v4240_v36, 0.0  ;;  %v5871_v24 = vsel %vm1120_vm6, %v11429_v53, %v11428_v18  ;;  %v11431_v36 = vld [vmem:[#allocation171_spill] sm:$0xff]  ;;  %v11450_v53 = vld [vmem:[#allocation21_spill] sm:$0xff] }
 0x653   : > { %v3948_v40 = vadd.f32 %v10422_v0, %v3594_v4  ;;  %v4271_v16 = vmax.f32 %v4239_v39, 0.0  ;;  %v11426_v0 = vld [vmem:[#allocation72_spill] sm:$0xff] }
 0x654   : > { %5679 = vrot.lane.b32.xlu1 %v4265_v35, %s6683_s16  ;;  %5683 = vrot.lane.b32.xlu0 %v4267_v42, %s6683_s16  ;;  %v4241_v13 = vadd.f32 %v10083_v8, %v4205_v57  ;;  %v5866_v43 = vsel %vm1120_vm6, %v11426_v0, %v10066_v14  ;;  %v11427_v14 = vld [vmem:[#allocation75_spill] sm:$0xff] }
 0x655   : > { %5687 = vrot.lane.b32.xlu2 %v4269_v27, %s6683_s16  ;;  %v4206_v10 = vadd.f32 %v4171_v12, %v3948_v40  ;;  %v5438_v12 = vadd.f32 %v10351_v26, %v5437_v62  ;;  %v11434_v62 = vld [vmem:[#allocation140_spill] sm:$0xff]  ;;  %v11440_v40 = vld [vmem:[#allocation102_spill] sm:$0xff] }
 0x656   : > { %v5644_v60 = vpop.permute.xlu1 %5643  ;;  %v10464_v3 = vpop.permute.xlu2 %5805  ;;  %v4273_v2 = vmax.f32 %v4241_v13, 0.0 }
 0x657   : > { %v5896_v56 = vsel %vm1217_vm7, %v5864_v49, %v5644_v60  ;;  %v4173_v17 = vpop.f32.mrf.mxu0  ;;  %v5474_v54 = vmax.f32 %v5438_v12, 0.0 }
 0x658   : > { %v5928_v58 = vsel %vm1503_vm8, %v5896_v56, %v10216_v52  ;;  %v4207_v28 = vadd.f32 %v4173_v17, %v3949_v25  ;;  %v11424_v52 = vld [vmem:[#allocation77_spill] sm:$0xff]  ;;  %v11433_v17 = vld [vmem:[#allocation18_spill] sm:$0xff] }
 0x659   : > { %5960 = vst [vmem:[%s10329_s26 + $0x18] sm:$0xff] %v5928_v58  ;;  %v5868_v50 = vsel %vm1120_vm6, %v11424_v52, %v10088_v55  ;;  %v5440_v55 = vpop.f32.mrf.mxu1 }
 0x65a   : > { %v4243_v61 = vadd.f32 %v10083_v8, %v4207_v28  ;;  %v5441_v23 = vadd.f32 %v10351_v26, %v5440_v55  ;;  %v11436_v28 = vld [vmem:[#allocation26_spill] sm:$0xff] }
 0x65c   : > { %5685 = vrot.lane.b32.xlu1 %v4268_v59, %s6683_s16  ;;  %5689 = vrot.lane.b32.xlu0 %v4270_v38, %s6683_s16  ;;  %v4275_v1 = vmax.f32 %v4243_v61, 0.0  ;;  %v5475_v15 = vmax.f32 %v5441_v23, 0.0  ;;  %v11435_v59 = vld [vmem:[#allocation82_spill] sm:$0xff]  ;;  %v11439_v61 = vld [vmem:[#allocation32_spill] sm:$0xff] }
 0x65d   : > { %5693 = vrot.lane.b32.xlu2 %v4272_v7, %s6683_s16  ;;  %v5870_v38 = vsel %vm1120_vm6, %v11435_v59, %v11434_v62 }
 0x65e   : > { %v10486_v19 = vpop.permute.xlu0 %5801  ;;  %v5652_v6 = vpop.permute.xlu2 %5651 }
 0x65f   : > { %v5900_v48 = vsel %vm1217_vm7, %v5868_v50, %v5652_v6  ;;  %v11437_v50 = vld [vmem:[#allocation147_spill] sm:$0xff] }
 0x660   : > { %v5932_v21 = vsel %vm1503_vm8, %v5900_v48, %v10260_v46  ;;  %v4242_v46 = vadd.f32 %v10083_v8, %v4206_v10  ;;  %v5867_v8 = vsel %vm1120_vm6, %v11427_v14, %v10021_v44  ;;  %v5874_v4 = vsel %vm1120_vm6, %v11438_v32, %v11437_v50  ;;  %v11442_v10 = vld [vmem:[#allocation106_spill] sm:$0xff]  ;;  %v11448_v14 = vld [vmem:[#allocation64_spill] sm:$0xff] }
 0x661   : > { %5964 = vst [vmem:[%s10329_s26 + $0x38] sm:$0xff] %v5932_v21  ;;  %v5442_v9 = vpop.f32.mrf.mxu1  ;;  %v11441_v21 = vld [vmem:[#allocation87_spill] sm:$0xff]  ;;  %v11459_v32 = vld [vmem:[#allocation176_spill] sm:$0xff] }
 0x662   : > { %v4274_v63 = vmax.f32 %v4242_v46, 0.0  ;;  %v5443_v49 = vadd.f32 %v10351_v26, %v5442_v9  ;;  %v5872_v55 = vsel %vm1120_vm6, %v11441_v21, %v11440_v40  ;;  %v11444_v46 = vld [vmem:[#allocation20_spill] sm:$0xff]  ;;  %v11447_v9 = vld [vmem:[#allocation13_spill] sm:$0xff] }
 0x663   : > { %v11462_v40 = vld [vmem:[#allocation88_spill] sm:$0xff] }
 0x664   : > { %5691 = vrot.lane.b32.xlu1 %v4271_v16, %s6683_s16  ;;  %5695 = vrot.lane.b32.xlu0 %v4273_v2, %s6683_s16  ;;  %v5476_v45 = vmax.f32 %v5443_v49, 0.0 }
 0x665   : > { %5699 = vrot.lane.b32.xlu2 %v4275_v1, %s6683_s16  ;;  %v11443_v1 = vld [vmem:[#allocation98_spill] sm:$0xff] }
 0x666   : > { %v10502_v35 = vpop.permute.xlu1 %5803  ;;  %v5648_v42 = vpop.permute.xlu0 %5647  ;;  %v5877_v23 = vsel %vm1120_vm6, %v11443_v1, %v11442_v10  ;;  %v11463_v1 = vld [vmem:[#allocation100_spill] sm:$0xff] }
 0x667   : > { %v5898_v22 = vsel %vm1217_vm7, %v5866_v43, %v5648_v42 }
 0x668   : > { %v5930_v27 = vsel %vm1503_vm8, %v5898_v22, %v10186_v30 }
 0x669   : > { %5962 = vst [vmem:[%s10329_s26 + $0x28] sm:$0xff] %v5930_v27  ;;  %v11446_v27 = vld [vmem:[#allocation90_spill] sm:$0xff] }
 0x66c   : > { %5825 = vrot.lane.b32.xlu0 %v5475_v15, %s6682_s14  ;;  %5697 = vrot.lane.b32.xlu1 %v4274_v63, %s6683_s16  ;;  %v11445_v15 = vld [vmem:[#allocation86_spill] sm:$0xff] }
 0x66d   : > { %5823 = vrot.lane.b32.xlu2 %v5474_v54, %s6682_s14  ;;  %v5873_v63 = vsel %vm1120_vm6, %v11446_v27, %v11445_v15  ;;  %v11467_v15 = vld [vmem:[#allocation67_spill] sm:$0xff] }
 0x66e   : > { %v5650_v41 = vpop.permute.xlu1 %5649  ;;  %v10516_v37 = vpop.permute.xlu2 %5811 }
 0x66f   : > { %v5899_v30 = vsel %vm1217_vm7, %v5867_v8, %v5650_v41  ;;  %v5880_v8 = vsel %vm1120_vm6, %v11448_v14, %v11447_v9 }
 0x670   : > { %v5931_v51 = vsel %vm1503_vm8, %v5899_v30, %v10251_v47  ;;  %v11432_v47 = vld [vmem:[#allocation80_spill] sm:$0xff]  ;;  %v11449_v30 = vld [vmem:[#allocation31_spill] sm:$0xff] }
 0x671   : > { %5963 = vst [vmem:[%s10329_s26 + $0x30] sm:$0xff] %v5931_v51  ;;  %v5869_v56 = vsel %vm1120_vm6, %v11432_v47, %v11431_v36  ;;  %v11452_v36 = vld [vmem:[#allocation152_spill] sm:$0xff]  ;;  %v11453_v47 = vld [vmem:[#allocation95_spill] sm:$0xff] }
 0x674   : > { %5827 = vrot.lane.b32.xlu1 %v5476_v45, %s6682_s14  ;;  %s6535_s14 = sshll.u32 %s6761_s13, 8 }
 0x675   : > { %s6001_s23 = scalar_lea.hbm %s10736_s9, %s6535_s14  ;;  %s6637_s14 = scalar_lea.hbm %s10736_s9, 512 }
 0x676   : > { %v10526_v44 = vpop.permute.xlu0 %5807  ;;  %v5658_v26 = vpop.permute.xlu2 %5657  ;;  %s6004_s13 = sshll.u32 %s6001_s23, 4  ;;  %s6005_s13 = int_to_ptr.hbm [resolvable:$true] %s6004_s13 }
 0x677   : > { %v5903_v60 = vsel %vm1217_vm7, %v5871_v24, %v5658_v26  ;;  %v11451_v24 = vld [vmem:[#allocation73_spill] sm:$0xff]  ;;  %s6631_s27 = sshra.s32 %s6005_s13, 4  ;;  %s6632_s27 = int_to_ptr.hbm [resolvable:$true] %s6631_s27 }
 0x678   : > { %v5935_v34 = vsel %vm1503_vm8, %v5903_v60, %v11430_v31  ;;  %v5883_v26 = vsel %vm1120_vm6, %v11451_v24, %v11450_v53  ;;  %s6633_s28 = scalar_lea.hbm %s6632_s27, 256  ;;  %p6638_p0 = scmp.lt.s32.totalorder %s6632_s27, %s10736_s9 }
 0x679   : > { %5967 = vst [vmem:[%s10329_s26 + $0x50] sm:$0xff] %v5935_v34  ;;  %p6634_p11 = scmp.ne.s32.totalorder %s6632_s27, %s6633_s28  ;;  %p6639_p1 = scmp.lt.s32.totalorder %s6637_s14, %s6633_s28 }
 0x67b   : > { %p6635_p12 = pnand %p6634_p11, %p6778_p5  ;;  %p6640_p2 = por %p6639_p1, %p6638_p0 }
 0x67d   : > { %p6636_p13 = pneg %p6635_p12 }
 0x67e   : > { %v5810_v29 = vpop.permute.xlu1 %5809  ;;  %v5654_v20 = vpop.permute.xlu0 %5653 }
 0x67f   : > { %v5901_v58 = vsel %vm1217_vm7, %v5869_v56, %v5654_v20  ;;  %v5875_v56 = vsel %vm1120_vm6, %v11453_v47, %v11452_v36  ;;  %v11473_v36 = vld [vmem:[#allocation78_spill] sm:$0xff]  ;;  %p6641_p3 = pnand %p6640_p2, %p6636_p13 }
 0x680   : > { %v5933_v25 = vsel %vm1503_vm8, %v5901_v58, %v11433_v17  ;;  %v11454_v58 = vld [vmem:[#allocation12_spill] sm:$0xff]  ;;  %v11455_v17 = vld [vmem:[#allocation79_spill] sm:$0xff] }
 0x681   : > { %5965 = vst [vmem:[%s10329_s26 + $0x40] sm:$0xff] %v5933_v25  ;;  %v5886_v25 = vsel %vm1120_vm6, %v11455_v17, %v11454_v58 }
 0x686   : > { %v5656_v11 = vpop.permute.xlu1 %5655  ;;  %v10542_v57 = vpop.permute.xlu2 %5817 }
 0x687   : > { %v5902_v7 = vsel %vm1217_vm7, %v5870_v38, %v5656_v11  ;;  %v11456_v38 = vld [vmem:[#allocation27_spill] sm:$0xff] }
 0x688   : > { %v5934_v52 = vsel %vm1503_vm8, %v5902_v7, %v11436_v28  ;;  %v11457_v28 = vld [vmem:[#allocation146_spill] sm:$0xff] }
 0x689   : > { %5966 = vst [vmem:[%s10329_s26 + $0x48] sm:$0xff] %v5934_v52  ;;  %v11458_v52 = vld [vmem:[#allocation97_spill] sm:$0xff] }
 0x68a   : > { %v5876_v50 = vsel %vm1120_vm6, %v11458_v52, %v11457_v28 }
 0x68e   : > { %v10551_v39 = vpop.permute.xlu0 %5813  ;;  %v5664_v13 = vpop.permute.xlu2 %5663 }
 0x68f   : > { %v5906_v6 = vsel %vm1217_vm7, %v5874_v4, %v5664_v13  ;;  %v11460_v4 = vld [vmem:[#allocation99_spill] sm:$0xff] }
 0x690   : > { %v5938_v48 = vsel %vm1503_vm8, %v5906_v6, %v11439_v61  ;;  %v5878_v13 = vsel %vm1120_vm6, %v11460_v4, %v11459_v32 }
 0x691   : > { %5970 = vst [vmem:[%s10329_s26 + $0x68] sm:$0xff] %v5938_v48  ;;  %v11461_v48 = vld [vmem:[#allocation114_spill] sm:$0xff] }
 0x692   : > { %v5889_v21 = vsel %vm1120_vm6, %v11462_v40, %v11461_v48 }
 0x696   : > { %v5816_v16 = vpop.permute.xlu1 %5815  ;;  %v5660_v2 = vpop.permute.xlu0 %5659 }
 0x697   : > { %v5904_v0 = vsel %vm1217_vm7, %v5872_v55, %v5660_v2  ;;  %v5670_v43 = vpop.permute.xlu2 %5669 }
 0x698   : > { %v5936_v42 = vsel %vm1503_vm8, %v5904_v0, %v11444_v46  ;;  %v5909_v12 = vsel %vm1217_vm7, %v5877_v23, %v5670_v43  ;;  %v11464_v46 = vld [vmem:[#allocation173_spill] sm:$0xff] }
 0x699   : > { %5968 = vst [vmem:[%s10329_s26 + $0x58] sm:$0xff] %v5936_v42  ;;  %v5941_v22 = vsel %vm1503_vm8, %v5909_v12, %v10437_v33  ;;  %v11465_v42 = vld [vmem:[#allocation63_spill] sm:$0xff] }
 0x69a   : > { %5973 = vst [vmem:[%s10329_s26 + $0x80] sm:$0xff] %v5941_v22  ;;  %v5879_v12 = vsel %vm1120_vm6, %v11465_v42, %v11464_v46  ;;  %v11466_v22 = vld [vmem:[#allocation14_spill] sm:$0xff] }
 0x69b   : > { %v5881_v27 = vsel %vm1120_vm6, %v11467_v15, %v11466_v22 }
 0x69e   : > { %v5662_v54 = vpop.permute.xlu1 %5661 }
 0x69f   : > { %v5905_v49 = vsel %vm1217_vm7, %v5873_v63, %v5662_v54  ;;  %v5676_v41 = vpop.permute.xlu2 %5675 }
 0x6a0   : > { %v5937_v51 = vsel %vm1503_vm8, %v5905_v49, %v11449_v30  ;;  %v5912_v45 = vsel %vm1217_vm7, %v5880_v8, %v5676_v41  ;;  %v11468_v49 = vld [vmem:[#allocation156_spill] sm:$0xff]  ;;  %v11469_v41 = vld [vmem:[#allocation69_spill] sm:$0xff] }
 0x6a1   : > { %5969 = vst [vmem:[%s10329_s26 + $0x60] sm:$0xff] %v5937_v51  ;;  %v5944_v33 = vsel %vm1503_vm8, %v5912_v45, %v10502_v35  ;;  %v5882_v30 = vsel %vm1120_vm6, %v11469_v41, %v11468_v49  ;;  %v11470_v51 = vld [vmem:[#allocation19_spill] sm:$0xff]  ;;  %v11471_v45 = vld [vmem:[#allocation74_spill] sm:$0xff] }
 0x6a2   : > { %5976 = vst [vmem:[%s10329_s26 + $0x98] sm:$0xff] %v5944_v33  ;;  %v5884_v33 = vsel %vm1120_vm6, %v11471_v45, %v11470_v51 }
 0x6a6   : > { %v10585_v18 = vpop.permute.xlu0 %5819 }
 0x6a7   : > { %v5682_v60 = vpop.permute.xlu2 %5681 }
 0x6a8   : > { %v5915_v31 = vsel %vm1217_vm7, %v5883_v26, %v5682_v60 }
 0x6a9   : > { %v5947_v34 = vsel %vm1503_vm8, %v5915_v31, %v5810_v29 }
 0x6aa   : > { %5979 = vst [vmem:[%s10329_s26 + $0xb0] sm:$0xff] %v5947_v34  ;;  %v11472_v34 = vld [vmem:[#allocation10_spill] sm:$0xff] }
 0x6ab   : > { %v5885_v47 = vsel %vm1120_vm6, %v11473_v36, %v11472_v34 }
 0x6ae   : > { %v5822_v35 = vpop.permute.xlu1 %5821  ;;  %v5666_v20 = vpop.permute.xlu0 %5665 }
 0x6af   : > { %v5907_v62 = vsel %vm1217_vm7, %v5875_v56, %v5666_v20  ;;  %v5688_v59 = vpop.permute.xlu2 %5687  ;;  %v11474_v56 = vld [vmem:[#allocation25_spill] sm:$0xff] }
 0x6b0   : > { %v5939_v11 = vsel %vm1503_vm8, %v5907_v62, %v11456_v38  ;;  %v5918_v29 = vsel %vm1217_vm7, %v5886_v25, %v5688_v59  ;;  %v11476_v59 = vld [vmem:[#allocation11_spill] sm:$0xff]  ;;  %v11477_v38 = vld [vmem:[#allocation84_spill] sm:$0xff] }
 0x6b1   : > { %5971 = vst [vmem:[%s10329_s26 + $0x70] sm:$0xff] %v5939_v11  ;;  %v5950_v7 = vsel %vm1503_vm8, %v5918_v29, %v5816_v16  ;;  %v5888_v11 = vsel %vm1120_vm6, %v11477_v38, %v11476_v59  ;;  %v11478_v29 = vld [vmem:[#allocation33_spill] sm:$0xff] }
 0x6b2   : > { %5982 = vst [vmem:[%s10329_s26 + $0xc8] sm:$0xff] %v5950_v7  ;;  %v11479_v7 = vld [vmem:[#allocation89_spill] sm:$0xff] }
 0x6b3   : > { %v5890_v28 = vsel %vm1120_vm6, %v11479_v7, %v11478_v29 }
 0x6b6   : > { %v5668_v6 = vpop.permute.xlu1 %5667  ;;  %v5672_v61 = vpop.permute.xlu0 %5671 }
 0x6b7   : > { %v5908_v55 = vsel %vm1217_vm7, %v5876_v50, %v5668_v6  ;;  %v5910_v16 = vsel %vm1217_vm7, %v5878_v13, %v5672_v61  ;;  %v5694_v2 = vpop.permute.xlu2 %5693  ;;  %v11480_v6 = vld [vmem:[#allocation8_spill] sm:$0xff]  ;;  %v11481_v61 = vld [vmem:[#allocation93_spill] sm:$0xff] }
 0x6b8   : > { %v5940_v10 = vsel %vm1503_vm8, %v5908_v55, %v10406_v5  ;;  %v5942_v23 = vsel %vm1503_vm8, %v5910_v16, %v11463_v1  ;;  %v5921_v0 = vsel %vm1217_vm7, %v5889_v21, %v5694_v2  ;;  %v5891_v48 = vsel %vm1120_vm6, %v11481_v61, %v11480_v6  ;;  %v11482_v16 = vld [vmem:[#allocation113_spill] sm:$0xff]  ;;  %v11483_v2 = vld [vmem:[#allocation94_spill] sm:$0xff] }
 0x6b9   : > { %5972 = vst [vmem:[%s10329_s26 + $0x78] sm:$0xff] %v5940_v10  ;;  %v5953_v43 = vsel %vm1503_vm8, %v5921_v0, %v5822_v35  ;;  %v11475_v35 = vld [vmem:[#allocation83_spill] sm:$0xff]  ;;  %v5892_v10 = vsel %vm1120_vm6, %v11483_v2, %v11482_v16 }
 0x6ba   : > { %5974 = vst [vmem:[%s10329_s26 + $0x88] sm:$0xff] %v5942_v23  ;;  %v5887_v20 = vsel %vm1120_vm6, %v11475_v35, %v11474_v56 }
 0x6bb   : > { %5985 = vst [vmem:[%s10329_s26 + $0xe0] sm:$0xff] %v5953_v43 }
 0x6be   : > { %v5674_v5 = vpop.permute.xlu1 %5673  ;;  %v5678_v63 = vpop.permute.xlu0 %5677 }
 0x6bf   : > { %v5911_v54 = vsel %vm1217_vm7, %v5879_v12, %v5674_v5  ;;  %v5913_v9 = vsel %vm1217_vm7, %v5881_v27, %v5678_v63  ;;  %v5700_v31 = vpop.permute.xlu2 %5699 }
 0x6c0   : > { %v5943_v14 = vsel %vm1503_vm8, %v5911_v54, %v10486_v19  ;;  %v5945_v8 = vsel %vm1503_vm8, %v5913_v9, %v10464_v3  ;;  %v5924_v1 = vsel %vm1217_vm7, %v5892_v10, %v5700_v31 }
 0x6c1   : > { %5975 = vst [vmem:[%s10329_s26 + $0x90] sm:$0xff] %v5943_v14 }
 0x6c2   : > { %5977 = vst [vmem:[%s10329_s26 + $0xa0] sm:$0xff] %v5945_v8 }
 0x6c6   : > { %v5680_v53 = vpop.permute.xlu1 %5679  ;;  %v5684_v24 = vpop.permute.xlu0 %5683 }
 0x6c7   : > { %v5914_v26 = vsel %vm1217_vm7, %v5882_v30, %v5680_v53  ;;  %v5916_v19 = vsel %vm1217_vm7, %v5884_v33, %v5684_v24  ;;  %v5824_v32 = vpop.permute.xlu2 %5823 }
 0x6c8   : > { %v5946_v3 = vsel %vm1503_vm8, %v5914_v26, %v10526_v44  ;;  %v5948_v60 = vsel %vm1503_vm8, %v5916_v19, %v10516_v37 }
 0x6c9   : > { %5978 = vst [vmem:[%s10329_s26 + $0xa8] sm:$0xff] %v5946_v3 }
 0x6ca   : > { %5980 = vst [vmem:[%s10329_s26 + $0xb8] sm:$0xff] %v5948_v60 }
 0x6ce   : > { %v5686_v58 = vpop.permute.xlu1 %5685  ;;  %v5690_v17 = vpop.permute.xlu0 %5689 }
 0x6cf   : > { %v5917_v25 = vsel %vm1217_vm7, %v5885_v47, %v5686_v58  ;;  %v5919_v44 = vsel %vm1217_vm7, %v5887_v20, %v5690_v17 }
 0x6d0   : > { %v5949_v37 = vsel %vm1503_vm8, %v5917_v25, %v10551_v39  ;;  %v5951_v62 = vsel %vm1503_vm8, %v5919_v44, %v10542_v57 }
 0x6d1   : > { %5981 = vst [vmem:[%s10329_s26 + $0xc0] sm:$0xff] %v5949_v37 }
 0x6d2   : > { %5983 = vst [vmem:[%s10329_s26 + $0xd0] sm:$0xff] %v5951_v62 }
 0x6d6   : > { %v5692_v52 = vpop.permute.xlu1 %5691  ;;  %v5696_v50 = vpop.permute.xlu0 %5695 }
 0x6d7   : > { %v5920_v39 = vsel %vm1217_vm7, %v5888_v11, %v5692_v52  ;;  %v5922_v4 = vsel %vm1217_vm7, %v5890_v28, %v5696_v50 }
 0x6d8   : > { %v5952_v57 = vsel %vm1503_vm8, %v5920_v39, %v10585_v18  ;;  %v5954_v13 = vsel %vm1503_vm8, %v5922_v4, %v5824_v32 }
 0x6d9   : > { %5984 = vst [vmem:[%s10329_s26 + $0xd8] sm:$0xff] %v5952_v57 }
 0x6da   : > { %5986 = vst [vmem:[%s10329_s26 + $0xe8] sm:$0xff] %v5954_v13 }
 0x6de   : > { %v5826_v40 = vpop.permute.xlu0 %5825  ;;  %v5698_v21 = vpop.permute.xlu1 %5697 }
 0x6df   : > { %v5923_v55 = vsel %vm1217_vm7, %v5891_v48, %v5698_v21 }
 0x6e0   : > { %v5955_v18 = vsel %vm1503_vm8, %v5923_v55, %v5826_v40 }
 0x6e1   : > { %5987 = vst [vmem:[%s10329_s26 + $0xf0] sm:$0xff] %v5955_v18 }
 0x6e6   : > { %v5828_v23 = vpop.permute.xlu1 %5827 }
 0x6e7   : > { %v5956_v0 = vsel %vm1503_vm8, %v5924_v1, %v5828_v23 }
 0x6e8   : > { %5988 = vst [vmem:[%s10329_s26 + $0xf8] sm:$0xff] %v5956_v0 }
 0x6e9   : > { %6644 = shalt.err (!%p6641_p3)
}
 0x6ea   : > { %s6688_s17 = smov 128   ;;  %s6689_s26 = smov 8  }
 0x6eb   : > { %6543 = dma.vmem_to_hbm [thread:$0]  (%p6778_p5), %s6003_s24, 4096, %s6005_s13, %s5990_s25, %s6688_s17, %s6688_s17, %s6689_s26  }
 0x6ec PF: > { %p6549_p4 = scmp.ge.s32.totalorder %s6679_s12, 2  ;;  %s6019_s23 = sand.u32 1, %s6667_s30  }
 0x6ed   : > { %s6020_s29 = scalar_lea.sflag [#allocation3], %s6019_s23 }
 0x6ee   : > { %p6546_p7 = pnand %p6549_p4, %p6782_p6 }
 0x6f0   : > { %p6547_p8 = pneg %p6546_p7 }
 0x6f2   : > { %6662 = dma.done.wait (%p6547_p8), %s6020_s29, 4096  }
 0x6f3   : > { %6664 = vsyncadd (%p6547_p8), %s6020_s29, 4294963200  ;;  %p19_p9 = scmp.ge.s32.totalorder %s6765_s15, 4   ;;  %s11484_s30 = smov %s6671_s10 }
 0x6f4   : > { %s11485_s10 = smov %s6675_s11  ;;  %s11486_s11 = smov %s6776_s18 }
 0x6f5   : > { %s11487_s12 = smov %s6765_s15  ;;  %21 = sbr.rel (!%p19_p9) target bundleno = 3 (0x3), region = 91 }
 0x6fa   :  { %6026 = vsyncpa [#allocation3], 1 }
 0x6fb   :  { %6028 = vsyncpa [#allocation3 + $0x1], 1 }

</bundles_post_ra>
